<compile_context>
chip_gen: v6e
topology: v6e:2x2x1
jax: 0.10.0
libtpu: 0.0.40
codegen_flags: <defaults>
</compile_context>

<pallas_src>
import jax
import jax.numpy as jnp
from jax import lax
from jax.experimental import pallas as pl
from jax.experimental.pallas import tpu as pltpu

EPS = 1e-5


# ----------------------------- Pallas kernel --------------------------------
def lateral_kernel(x_ref, w3_ref, t1_ref, w1_ref, b1_ref, o_ref, xpad):
    # x_ref  : (1, H, W, Cr) bf16   augmented (coords-first) image, unpadded,
    #                               auto-pipelined (double-buffered over batch)
    # w3_ref : (9*Cr, Cout)  bf16   folded 3x3 conv weight, K order (ky,kx,ci)
    # t1_ref : (1, Cout)     f32    folded conv bias + BN shift
    # w1_ref : (Cout, Cout)  f32    folded 1x1 attn weight, (out, in) layout
    # b1_ref : (Cout, 1)     f32    folded attn bias + BN shift
    # o_ref  : (1, Cout, H*W) f32   lane-dense NCHW-flattened output block
    # xpad   : (H+2, W+2, Cr) bf16  VMEM halo scratch (conv pad=1 fused here)
    h = x_ref.shape[1]
    w = x_ref.shape[2]
    cr = x_ref.shape[3]
    hw = h * w

    # Fused spatial zero-pad: zero the halo scratch, write the interior.
    # (Cheap: the scratch is a few KiB; re-zeroed every step so correctness
    #  does not depend on how the "parallel" batch axis is split across cores.)
    xpad[...] = jnp.zeros_like(xpad)
    xpad[1:h + 1, 1:w + 1, :] = x_ref[0]

    # im2col built ONCE as a value: 9 shifted taps concatenated along K.
    # Single fused MXU matmul, K = 9*Cr (vs 9 tiny K=Cr matmuls before).
    taps = [xpad[ky:ky + h, kx:kx + w, :].reshape(hw, cr)
            for ky in range(3) for kx in range(3)]
    patches = jnp.concatenate(taps, axis=1)                 # (HW, 9*Cr) bf16
    acc = jnp.dot(patches, w3_ref[...],
                  preferred_element_type=jnp.float32)       # (HW, Cout) f32

    # Folded conv-bias + BN + ReLU (f32 VPU; v5e has no bf16 VPU/EUP).
    y = jnp.maximum(acc + t1_ref[...], 0.0)                 # (HW, Cout)

    # Channels-major once: lane-dense store + lane-axis reduction for the pool.
    y_t = y.T                                               # (Cout, HW)

    # Attention path kept entirely in f32 (tiny Cout x Cout x 1 product).
    pooled = jnp.sum(y_t, axis=1, keepdims=True) * (1.0 / hw)      # (Cout, 1)
    a = jnp.dot(w1_ref[...], pooled,
                preferred_element_type=jnp.float32) + b1_ref[...]  # (Cout, 1)
    mask = jax.nn.sigmoid(a)                                        # (Cout, 1)

    o_ref[0] = y_t * mask                                   # broadcast over HW


# ------------------------------- JAX glue ------------------------------------
def add_coordinates_nhwc(x, with_r=True):
    """CoordConv coordinate channels, concatenated BEFORE the image channels."""
    n, h, w, _ = x.shape
    yy = 2.0 * jnp.arange(h, dtype=jnp.float32)[:, None] / max(h - 1, 1) - 1.0
    xx = 2.0 * jnp.arange(w, dtype=jnp.float32)[None, :] / max(w - 1, 1) - 1.0
    yy = jnp.broadcast_to(yy, (h, w))
    xx = jnp.broadcast_to(xx, (h, w))
    coords = [yy, xx]
    if with_r:
        rr = jnp.sqrt(yy ** 2 + xx ** 2)
        rr = rr / jnp.maximum(jnp.max(rr), 1e-12)
        coords.append(rr)
    coords = jnp.stack(coords, axis=-1)                           # (H, W, r)
    coords = jnp.broadcast_to(coords[None], (n, h, w, coords.shape[-1]))
    return jnp.concatenate([coords, x], axis=-1)                  # (N, H, W, Cr)


def _fold_params(params):
    """Fold eval-mode BN + conv biases into MXU-ready weights."""
    s1 = params["bn1_g"] / jnp.sqrt(params["bn1_v"] + EPS)
    t1 = params["bn1_b"] - params["bn1_m"] * s1
    s2 = params["bn2_g"] / jnp.sqrt(params["bn2_v"] + EPS)
    t2 = params["bn2_b"] - params["bn2_m"] * s2

    cout, cr = params["conv3_w"].shape[:2]
    # OIHW -> (ky, kx, ci, o), scale output channels by s1, flatten K to 9*Cr
    # in (ky, kx, ci) order to match the kernel's tap concatenation.
    w3 = jnp.transpose(params["conv3_w"], (2, 3, 1, 0)) * s1
    w3 = w3.reshape(9 * cr, cout).astype(jnp.bfloat16)
    t1p = (params["conv3_b"] * s1 + t1).reshape(1, cout).astype(jnp.float32)

    # 1x1 attention conv kept in (out, in) orientation, BN folded into rows.
    # Kept in f32 (review correctness concern: avoid the bf16 round-trip).
    w1 = (params["conv1_w"][:, :, 0, 0] * s2[:, None]).astype(jnp.float32)
    b1p = (params["conv1_b"] * s2 + t2).reshape(cout, 1).astype(jnp.float32)
    return w3, t1p, w1, b1p


def _vmem_limit_bytes():
    """Per-generation VMEM budget (v7x 64 MiB/TC, v5e/v6e 128 MiB) w/ headroom."""
    try:
        cap = int(pltpu.get_tpu_info().vmem_capacity_bytes)
    except Exception:
        cap = 64 * 1024 * 1024
    return min((cap * 3) // 4, 96 * 1024 * 1024)


def lateral_forward(x_nchw, params, with_r=True):
    x = jnp.transpose(x_nchw, (0, 2, 3, 1)).astype(jnp.float32)   # NCHW -> NHWC
    n, h, w, _ = x.shape
    # Augmented, UNPADDED input in bf16 (pad fused into the kernel).
    x_aug = add_coordinates_nhwc(x, with_r).astype(jnp.bfloat16)  # (N,H,W,Cr)
    cr = x_aug.shape[-1]

    w3, t1p, w1, b1p = _fold_params(params)
    cout = w3.shape[-1]
    hw = h * w

    out = pl.pallas_call(
        lateral_kernel,
        out_shape=jax.ShapeDtypeStruct((n, cout, hw), jnp.float32),
        grid_spec=pltpu.PrefetchScalarGridSpec(
            num_scalar_prefetch=0,
            grid=(n,),                                            # one step / image
            in_specs=[
                pl.BlockSpec((1, h, w, cr), lambda b: (b, 0, 0, 0)),  # image
                pl.BlockSpec((9 * cr, cout), lambda b: (0, 0)),       # folded 3x3 W
                pl.BlockSpec((1, cout), lambda b: (0, 0)),            # folded bias
                pl.BlockSpec((cout, cout), lambda b: (0, 0)),         # folded 1x1 W
                pl.BlockSpec((cout, 1), lambda b: (0, 0)),            # folded attn b
            ],
            out_specs=pl.BlockSpec((1, cout, hw), lambda b: (b, 0, 0)),
            scratch_shapes=[
                pltpu.VMEM((h + 2, w + 2, cr), jnp.bfloat16),         # halo scratch
            ],
        ),
        compiler_params=pltpu.CompilerParams(
            dimension_semantics=("parallel",),        # batch across v7x's 2 TCs
            vmem_limit_bytes=_vmem_limit_bytes(),
        ),
    )(x_aug, w3, t1p, w1, b1p)

    # Output is already NCHW-flattened (N, Cout, H*W) -> free reshape.
    return out.reshape(n, cout, h, w)


# --------------------------- parameter construction --------------------------
def init_params(key, in_channel, out_channel, with_r=True):
    r = 3 if with_r else 2
    cr = in_channel + r
    ks = jax.random.split(key, 12)
    p = {}
    # layer: Conv2d(in_channel+r, out_channel, 3, 1, 1) + BatchNorm2d + ReLU
    p["conv3_w"] = 0.1 * jax.random.normal(ks[0], (out_channel, cr, 3, 3), jnp.float32)
    p["conv3_b"] = 0.1 * jax.random.normal(ks[1], (out_channel,), jnp.float32)
    p["bn1_g"] = 1.0 + 0.1 * jax.random.normal(ks[2], (out_channel,), jnp.float32)
    p["bn1_b"] = 0.1 * jax.random.normal(ks[3], (out_channel,), jnp.float32)
    p["bn1_m"] = 0.05 * jax.random.normal(ks[4], (out_channel,), jnp.float32)
    p["bn1_v"] = jnp.abs(1.0 + 0.1 * jax.random.normal(ks[5], (out_channel,), jnp.float32))
    # attn: AdaptiveAvgPool2d((1,1)) + Conv2d(out, out, 1) + BatchNorm2d + Sigmoid
    p["conv1_w"] = 0.1 * jax.random.normal(ks[6], (out_channel, out_channel, 1, 1), jnp.float32)
    p["conv1_b"] = 0.1 * jax.random.normal(ks[7], (out_channel,), jnp.float32)
    p["bn2_g"] = 1.0 + 0.1 * jax.random.normal(ks[8], (out_channel,), jnp.float32)
    p["bn2_b"] = 0.1 * jax.random.normal(ks[9], (out_channel,), jnp.float32)
    p["bn2_m"] = 0.05 * jax.random.normal(ks[10], (out_channel,), jnp.float32)
    p["bn2_v"] = jnp.abs(1.0 + 0.1 * jax.random.normal(ks[11], (out_channel,), jnp.float32))
    return p


# ------------------------------ pure-JAX reference ---------------------------
def ref_forward(x_nchw, params, with_r=True):
    """f32 reference faithful to the PyTorch module (BN in eval mode)."""
    x = jnp.transpose(x_nchw, (0, 2, 3, 1)).astype(jnp.float32)
    x_aug = add_coordinates_nhwc(x, with_r)
    w3_hwio = jnp.transpose(params["conv3_w"], (2, 3, 1, 0))
    y = lax.conv_general_dilated(
        x_aug, w3_hwio, (1, 1), "SAME",
        dimension_numbers=("NHWC", "HWIO", "NHWC"),
        precision=lax.Precision.HIGHEST)
    y = y + params["conv3_b"]
    s1 = params["bn1_g"] / jnp.sqrt(params["bn1_v"] + EPS)
    t1 = params["bn1_b"] - params["bn1_m"] * s1
    y = jnp.maximum(y * s1 + t1, 0.0)
    pooled = jnp.mean(y, axis=(1, 2))                             # (N, Cout)
    w1 = params["conv1_w"][:, :, 0, 0]                            # (O, I)
    a = pooled @ w1.T + params["conv1_b"]
    s2 = params["bn2_g"] / jnp.sqrt(params["bn2_v"] + EPS)
    t2 = params["bn2_b"] - params["bn2_m"] * s2
    mask = jax.nn.sigmoid(a * s2 + t2)
    out = y * mask[:, None, None, :]
    return jnp.transpose(out, (0, 3, 1, 2))


# ----------------------------------- main -------------------------------------
if __name__ == "__main__":
    key = jax.random.PRNGKey(0)
    k_x, k_p = jax.random.split(key)

    N, CIN, H, W = 2, 4, 16, 16
    COUT = 8

    x = jax.random.normal(k_x, (N, CIN, H, W), jnp.float32)
    params = init_params(k_p, CIN, COUT, with_r=True)

    fwd = jax.jit(lambda xx, pp: lateral_forward(xx, pp, with_r=True))
    out = fwd(x, params)
    jax.block_until_ready(out)

    assert out.shape == (N, COUT, H, W), out.shape

    ref = ref_forward(x, params, with_r=True)
    max_err = float(jnp.max(jnp.abs(out - ref)))
    # bf16 MXU operands on the 3x3 conv vs f32 reference -> widened tolerance.
    if not bool(jnp.allclose(out, ref, rtol=2e-2, atol=2e-2)):
        raise AssertionError(
            f"Pallas output does not match JAX reference (max abs err={max_err})")

    print("KERNEL_OK")
</pallas_src>

<mosaic_0001>
module attributes {stable_mosaic.version = 11 : i64} {
  func.func @lateral_kernel(%arg0: i32, %arg1: memref<1x16x16x7xbf16, #tpu.memory_space<vmem>>, %arg2: memref<63x8xbf16, #tpu.memory_space<vmem>>, %arg3: memref<1x8xf32, #tpu.memory_space<vmem>>, %arg4: memref<8x8xf32, #tpu.memory_space<vmem>>, %arg5: memref<8x1xf32, #tpu.memory_space<vmem>>, %arg6: memref<1x8x256xf32, #tpu.memory_space<vmem>>, %arg7: memref<18x18x7xbf16, #tpu.memory_space<vmem>>) attributes {dimension_semantics = [#tpu.dimension_semantics<parallel>], iteration_bounds = array<i64: 2>, scalar_prefetch = 0 : i64, scratch_operands = 1 : i64, tpu.core_type = #tpu.core_type<tc>, window_params = [{transform_indices = @transform_0, window_bounds = array<i64: 1, 16, 16, 7>}, {pipeline_mode = #tpu.pipeline_mode<synchronous>, transform_indices = @transform_1, window_bounds = array<i64: 63, 8>}, {pipeline_mode = #tpu.pipeline_mode<synchronous>, transform_indices = @transform_2, window_bounds = array<i64: 1, 8>}, {pipeline_mode = #tpu.pipeline_mode<synchronous>, transform_indices = @transform_3, window_bounds = array<i64: 8, 8>}, {pipeline_mode = #tpu.pipeline_mode<synchronous>, transform_indices = @transform_4, window_bounds = array<i64: 8, 1>}, {transform_indices = @transform_5, window_bounds = array<i64: 1, 8, 256>}]} {
    %cst = arith.constant 0.000000e+00 : bf16
    %0 = vector.broadcast %cst : bf16 to vector<18x18x7xbf16>
    %c0 = arith.constant 0 : index
    %c0_0 = arith.constant 0 : index
    %c0_1 = arith.constant 0 : index
    %1 = vector.load %arg7[%c0, %c0_0, %c0_1] : memref<18x18x7xbf16, #tpu.memory_space<vmem>>, vector<18x18x7xbf16>
    tpu.vector_store %arg7[%c0, %c0_0, %c0_1], %0 {strides = array<i32>} : memref<18x18x7xbf16, #tpu.memory_space<vmem>>, vector<18x18x7xbf16>,
    %c0_2 = arith.constant 0 : index
    %c0_3 = arith.constant 0 : index
    %c0_4 = arith.constant 0 : index
    %c0_5 = arith.constant 0 : index
    %2 = vector.load %arg1[%c0_2, %c0_3, %c0_4, %c0_5] : memref<1x16x16x7xbf16, #tpu.memory_space<vmem>>, vector<1x16x16x7xbf16>
    %3 = vector.shape_cast %2 : vector<1x16x16x7xbf16> to vector<16x16x7xbf16>
    %c1 = arith.constant 1 : index
    %c1_6 = arith.constant 1 : index
    %c0_7 = arith.constant 0 : index
    %4 = vector.load %arg7[%c1, %c1_6, %c0_7] : memref<18x18x7xbf16, #tpu.memory_space<vmem>>, vector<16x16x7xbf16>
    tpu.vector_store %arg7[%c1, %c1_6, %c0_7], %3 {strides = array<i32>} : memref<18x18x7xbf16, #tpu.memory_space<vmem>>, vector<16x16x7xbf16>,
    %c0_8 = arith.constant 0 : index
    %c0_9 = arith.constant 0 : index
    %c0_10 = arith.constant 0 : index
    %5 = vector.load %arg7[%c0_8, %c0_9, %c0_10] : memref<18x18x7xbf16, #tpu.memory_space<vmem>>, vector<16x16x7xbf16>
    %6 = vector.shape_cast %5 : vector<16x16x7xbf16> to vector<256x7xbf16>
    %c0_11 = arith.constant 0 : index
    %c1_12 = arith.constant 1 : index
    %c0_13 = arith.constant 0 : index
    %7 = vector.load %arg7[%c0_11, %c1_12, %c0_13] : memref<18x18x7xbf16, #tpu.memory_space<vmem>>, vector<16x16x7xbf16>
    %8 = vector.shape_cast %7 : vector<16x16x7xbf16> to vector<256x7xbf16>
    %c0_14 = arith.constant 0 : index
    %c2 = arith.constant 2 : index
    %c0_15 = arith.constant 0 : index
    %9 = vector.load %arg7[%c0_14, %c2, %c0_15] : memref<18x18x7xbf16, #tpu.memory_space<vmem>>, vector<16x16x7xbf16>
    %10 = vector.shape_cast %9 : vector<16x16x7xbf16> to vector<256x7xbf16>
    %c1_16 = arith.constant 1 : index
    %c0_17 = arith.constant 0 : index
    %c0_18 = arith.constant 0 : index
    %11 = vector.load %arg7[%c1_16, %c0_17, %c0_18] : memref<18x18x7xbf16, #tpu.memory_space<vmem>>, vector<16x16x7xbf16>
    %12 = vector.shape_cast %11 : vector<16x16x7xbf16> to vector<256x7xbf16>
    %c1_19 = arith.constant 1 : index
    %c1_20 = arith.constant 1 : index
    %c0_21 = arith.constant 0 : index
    %13 = vector.load %arg7[%c1_19, %c1_20, %c0_21] : memref<18x18x7xbf16, #tpu.memory_space<vmem>>, vector<16x16x7xbf16>
    %14 = vector.shape_cast %13 : vector<16x16x7xbf16> to vector<256x7xbf16>
    %c1_22 = arith.constant 1 : index
    %c2_23 = arith.constant 2 : index
    %c0_24 = arith.constant 0 : index
    %15 = vector.load %arg7[%c1_22, %c2_23, %c0_24] : memref<18x18x7xbf16, #tpu.memory_space<vmem>>, vector<16x16x7xbf16>
    %16 = vector.shape_cast %15 : vector<16x16x7xbf16> to vector<256x7xbf16>
    %c2_25 = arith.constant 2 : index
    %c0_26 = arith.constant 0 : index
    %c0_27 = arith.constant 0 : index
    %17 = vector.load %arg7[%c2_25, %c0_26, %c0_27] : memref<18x18x7xbf16, #tpu.memory_space<vmem>>, vector<16x16x7xbf16>
    %18 = vector.shape_cast %17 : vector<16x16x7xbf16> to vector<256x7xbf16>
    %c2_28 = arith.constant 2 : index
    %c1_29 = arith.constant 1 : index
    %c0_30 = arith.constant 0 : index
    %19 = vector.load %arg7[%c2_28, %c1_29, %c0_30] : memref<18x18x7xbf16, #tpu.memory_space<vmem>>, vector<16x16x7xbf16>
    %20 = vector.shape_cast %19 : vector<16x16x7xbf16> to vector<256x7xbf16>
    %c2_31 = arith.constant 2 : index
    %c2_32 = arith.constant 2 : index
    %c0_33 = arith.constant 0 : index
    %21 = vector.load %arg7[%c2_31, %c2_32, %c0_33] : memref<18x18x7xbf16, #tpu.memory_space<vmem>>, vector<16x16x7xbf16>
    %22 = vector.shape_cast %21 : vector<16x16x7xbf16> to vector<256x7xbf16>
    %23 = tpu.concatenate %6, %8, %10, %12, %14, %16, %18, %20, %22 in 1 : vector<256x7xbf16>, vector<256x7xbf16>, vector<256x7xbf16>, vector<256x7xbf16>, vector<256x7xbf16>, vector<256x7xbf16>, vector<256x7xbf16>, vector<256x7xbf16>, vector<256x7xbf16> -> vector<256x63xbf16>
    %c0_34 = arith.constant 0 : index
    %c0_35 = arith.constant 0 : index
    %24 = vector.load %arg2[%c0_34, %c0_35] : memref<63x8xbf16, #tpu.memory_space<vmem>>, vector<63x8xbf16>
    %cst_36 = arith.constant dense<0.000000e+00> : vector<256x8xf32>
    %25 = tpu.matmul %23, %24, %cst_36 {dimension_numbers = #tpu.dot_dimension_numbers<[1], [0], [0], [1], [0, 0, 1, 1], [], []>} : vector<256x63xbf16>, vector<63x8xbf16>, vector<256x8xf32> -> vector<256x8xf32>
    %c0_37 = arith.constant 0 : index
    %c0_38 = arith.constant 0 : index
    %26 = vector.load %arg3[%c0_37, %c0_38] : memref<1x8xf32, #tpu.memory_space<vmem>>, vector<1x8xf32>
    %27 = vector.broadcast %26 : vector<1x8xf32> to vector<256x8xf32>
    %28 = arith.addf %25, %27 : vector<256x8xf32>
    %cst_39 = arith.constant 0.000000e+00 : f32
    %29 = vector.broadcast %cst_39 : f32 to vector<256x8xf32>
    %30 = arith.maximumf %28, %29 : vector<256x8xf32>
    %31 = tpu.transpose %30, [1, 0] : vector<256x8xf32> -> vector<8x256xf32>
    %cst_40 = arith.constant dense<0.000000e+00> : vector<8xf32>
    %32 = vector.multi_reduction <add>, %31, %cst_40 [1] : vector<8x256xf32> to vector<8xf32>
    %33 = vector.shape_cast %32 : vector<8xf32> to vector<8x1xf32>
    %cst_41 = arith.constant 3.906250e-03 : f32
    %34 = vector.broadcast %cst_41 : f32 to vector<8x1xf32>
    %35 = arith.mulf %33, %34 : vector<8x1xf32>
    %c0_42 = arith.constant 0 : index
    %c0_43 = arith.constant 0 : index
    %36 = vector.load %arg4[%c0_42, %c0_43] : memref<8x8xf32, #tpu.memory_space<vmem>>, vector<8x8xf32>
    %cst_44 = arith.constant dense<0.000000e+00> : vector<8x1xf32>
    %37 = tpu.matmul %36, %35, %cst_44 {dimension_numbers = #tpu.dot_dimension_numbers<[1], [0], [0], [1], [0, 0, 1, 1], [], []>} : vector<8x8xf32>, vector<8x1xf32>, vector<8x1xf32> -> vector<8x1xf32>
    %c0_45 = arith.constant 0 : index
    %c0_46 = arith.constant 0 : index
    %38 = vector.load %arg5[%c0_45, %c0_46] : memref<8x1xf32, #tpu.memory_space<vmem>>, vector<8x1xf32>
    %39 = arith.addf %37, %38 : vector<8x1xf32>
    %40 = arith.negf %39 : vector<8x1xf32>
    %41 = math.exp %40 : vector<8x1xf32>
    %cst_47 = arith.constant 1.000000e+00 : f32
    %42 = vector.broadcast %cst_47 : f32 to vector<8x1xf32>
    %43 = arith.addf %42, %41 : vector<8x1xf32>
    %44 = arith.divf %42, %43 : vector<8x1xf32>
    %45 = vector.broadcast %44 : vector<8x1xf32> to vector<8x256xf32>
    %46 = arith.mulf %31, %45 : vector<8x256xf32>
    %c0_48 = arith.constant 0 : index
    %c0_49 = arith.constant 0 : index
    %c0_50 = arith.constant 0 : index
    %47 = vector.load %arg6[%c0_48, %c0_49, %c0_50] : memref<1x8x256xf32, #tpu.memory_space<vmem>>, vector<1x8x256xf32>
    %48 = vector.shape_cast %47 : vector<1x8x256xf32> to vector<8x256xf32>
    %49 = vector.shape_cast %46 : vector<8x256xf32> to vector<1x8x256xf32>
    tpu.vector_store %arg6[%c0_48, %c0_49, %c0_50], %49 {strides = array<i32>} : memref<1x8x256xf32, #tpu.memory_space<vmem>>, vector<1x8x256xf32>,
    return
  }
  func.func @transform_0(%arg0: i32) -> (i32, i32, i32, i32) {
    %c0_i32 = arith.constant 0 : i32
    %c0_i32_0 = arith.constant 0 : i32
    %c0_i32_1 = arith.constant 0 : i32
    %c0_i32_2 = arith.constant 0 : i32
    return %arg0, %c0_i32, %c0_i32_0, %c0_i32_1 : i32, i32, i32, i32
  }
  func.func @transform_1(%arg0: i32) -> (i32, i32) {
    %c0_i32 = arith.constant 0 : i32
    %c0_i32_0 = arith.constant 0 : i32
    %c0_i32_1 = arith.constant 0 : i32
    return %c0_i32, %c0_i32_0 : i32, i32
  }
  func.func @transform_2(%arg0: i32) -> (i32, i32) {
    %c0_i32 = arith.constant 0 : i32
    %c0_i32_0 = arith.constant 0 : i32
    %c0_i32_1 = arith.constant 0 : i32
    return %c0_i32, %c0_i32_0 : i32, i32
  }
  func.func @transform_3(%arg0: i32) -> (i32, i32) {
    %c0_i32 = arith.constant 0 : i32
    %c0_i32_0 = arith.constant 0 : i32
    %c0_i32_1 = arith.constant 0 : i32
    return %c0_i32, %c0_i32_0 : i32, i32
  }
  func.func @transform_4(%arg0: i32) -> (i32, i32) {
    %c0_i32 = arith.constant 0 : i32
    %c0_i32_0 = arith.constant 0 : i32
    %c0_i32_1 = arith.constant 0 : i32
    return %c0_i32, %c0_i32_0 : i32, i32
  }
  func.func @transform_5(%arg0: i32) -> (i32, i32, i32) {
    %c0_i32 = arith.constant 0 : i32
    %c0_i32_0 = arith.constant 0 : i32
    %c0_i32_1 = arith.constant 0 : i32
    return %arg0, %c0_i32, %c0_i32_0 : i32, i32, i32
  }
}

</mosaic_0001>

<bundles_post_ra>
// kernel: _lambda_.1
= control target key start
LH: loop header
LB: loop body
LE: loop exit
PB: predicated region body
PF: predicated region fallthrough
CT: control target
= control target key end

     0   :  { %s4526_s18 = smov 0   ;;  %s6296_s0 = inlined_call_operand.vmem [shape: bf16[2,16,16,7], index: 0, kind: input, shape index: {}]   ;;  %s6297_s1 = inlined_call_operand.vmem [shape: bf16[63,8], index: 1, kind: input, shape index: {}]   ;;  %s6298_s2 = inlined_call_operand.vmem [shape: f32[1,8], index: 2, kind: input, shape index: {}]   ;;  %s6299_s3 = inlined_call_operand.vmem [shape: f32[8,8], index: 3, kind: input, shape index: {}]   ;;  %s6300_s4 = inlined_call_operand.vmem [shape: f32[8,1], index: 4, kind: input, shape index: {}]   ;;  %s6301_s5 = inlined_call_operand.vmem [shape: f32[2,8,256], index: 5, kind: output, shape index: {}]  }
   0x1 LB: > { %s4087_s19 = sadd.s32 4294967295, %s4482_s18   ;;  %p4091_p0 = scmp.ge.s32.totalorder %s4482_s18, 1  ;;  %s4482_s18 = sphi %s4526_s18, %s15_s18  }
   0x2   : > { %p187_p1 = scmp.lt.s32.totalorder %s4482_s18, 3 }
   0x4   : > { %p188_p2 = pnand %p4091_p0, %p187_p1 }
   0x5   : > { %p215_p3 = scmp.lt.s32.totalorder (!%p188_p2), %s4087_s19, 1  ;;  %s4485_s24 = smov (!%p188_p2), 14  }
   0x6   : > { %191 = sbr.rel (%p188_p2) target bundleno = 1308 (0x51c), region = 40  ;;  %s4486_s25 = smov (!%p188_p2), 7  }
   0x7   : > { %s4487_s26 = smov (!%p188_p2), 21   ;;  %s4488_s27 = smov (!%p188_p2), 42  }
   0x8   : > { %s4489_s28 = smov (!%p188_p2), 35   ;;  %s4490_s29 = smov (!%p188_p2), 56  }
   0x9   : > { %s4491_s30 = smov (!%p188_p2), 28   ;;  %s4492_s6 = smov (!%p188_p2), 49  }
   0xb   : > { %vm226_vm0 = vcmask 52224   ;;  %vm229_vm1 = vcmask 49152   ;;  %v6302_v0 = vmov 0   ;;  %vm1254_vm2 = vcmask 1042432   ;;  %s6320_s19 = smov (!%p215_p3, %s4087_s19), 1 }
   0xc   : > { %227 = vst.msk [vmem:[#allocation2] sm:$0xf] %vm226_vm0, %v6302_v0  ;;  %228 = vst.msk [vmem:[#allocation2 + $0x4] sm:$0xf] %vm226_vm0, %v6302_v0  ;;  %vm1255_vm3 = vcmask 1046532   ;;  %s4313_s20 = sshll.u32 %s6320_s19, 7 }
   0xd   : > { %230 = vst.msk [vmem:[#allocation2 + $0x8] sm:$0x1] %vm229_vm1, %v6302_v0  ;;  %233 = vst.msk [vmem:[#allocation2 + $0x14] sm:$0x1] %vm229_vm1, %v6302_v0  ;;  %vm803_vm4 = vsmask.f32 3328  ;;  %s4652_s23 = scalar_lea.vmem %s6296_s0, %s4313_s20 }
   0xe   : > { %231 = vst.msk [vmem:[#allocation2 + $0xc] sm:$0xf] %vm226_vm0, %v6302_v0  ;;  %232 = vst.msk [vmem:[#allocation2 + $0x10] sm:$0xf] %vm226_vm0, %v6302_v0  ;;  %vm804_vm5 = vsmask.f32 7440 }
   0xf   : > { %234 = vst.msk [vmem:[#allocation2 + $0x18] sm:$0xf] %vm226_vm0, %v6302_v0  ;;  %235 = vst.msk [vmem:[#allocation2 + $0x1c] sm:$0xf] %vm226_vm0, %v6302_v0  ;;  %vm314_vm6 = vsmask.f32 256 }
  0x10   : > { %236 = vst.msk [vmem:[#allocation2 + $0x20] sm:$0x1] %vm229_vm1, %v6302_v0  ;;  %239 = vst.msk [vmem:[#allocation2 + $0x2c] sm:$0x1] %vm229_vm1, %v6302_v0  ;;  %v284_v2 = vld [vmem:[%s4652_s23 + $0x8] sm:$0xf] }
  0x11   : > { %237 = vst.msk [vmem:[#allocation2 + $0x24] sm:$0xf] %vm226_vm0, %v6302_v0  ;;  %238 = vst.msk [vmem:[#allocation2 + $0x28] sm:$0xf] %vm226_vm0, %v6302_v0  ;;  %vm315_vm8 = vsmask.f32 4368 }
  0x12   : > { %240 = vst.msk [vmem:[#allocation2 + $0x30] sm:$0xf] %vm226_vm0, %v6302_v0  ;;  %241 = vst.msk [vmem:[#allocation2 + $0x34] sm:$0xf] %vm226_vm0, %v6302_v0  ;;  %vm639_vm9 = vsmask.f32 7938 }
  0x13   : > { %242 = vst.msk [vmem:[#allocation2 + $0x38] sm:$0x1] %vm229_vm1, %v6302_v0  ;;  %245 = vst.msk [vmem:[#allocation2 + $0x44] sm:$0x1] %vm229_vm1, %v6302_v0  ;;  %v756_v3 = vld [vmem:[#allocation2 + $0x4] sm:$0xf] }
  0x14   : > { %243 = vst.msk [vmem:[#allocation2 + $0x3c] sm:$0xf] %vm226_vm0, %v6302_v0  ;;  %244 = vst.msk [vmem:[#allocation2 + $0x40] sm:$0xf] %vm226_vm0, %v6302_v0  ;;  %v787_v4 = vld [vmem:[#allocation2 + $0x8] sm:$0x1] }
  0x15   : > { %246 = vst.msk [vmem:[#allocation2 + $0x48] sm:$0xf] %vm226_vm0, %v6302_v0  ;;  %247 = vst.msk [vmem:[#allocation2 + $0x4c] sm:$0xf] %vm226_vm0, %v6302_v0  ;;  %v1190_v5 = vld [vmem:[#allocation2] sm:$0xe] }
  0x16   : > { %248 = vst.msk [vmem:[#allocation2 + $0x50] sm:$0x1] %vm229_vm1, %v6302_v0  ;;  %251 = vst.msk [vmem:[#allocation2 + $0x5c] sm:$0x1] %vm229_vm1, %v6302_v0  ;;  %v4096_v6 = vrot.slane %v1190_v5, 9  ;;  %v1259_v7 = vrot.slane %v756_v3, 5 }
  0x17   : > { %249 = vst.msk [vmem:[#allocation2 + $0x54] sm:$0xf] %vm226_vm0, %v6302_v0  ;;  %250 = vst.msk [vmem:[#allocation2 + $0x58] sm:$0xf] %vm226_vm0, %v6302_v0  ;;  %v1262_v8 = vrot.slane %v787_v4, 5  ;;  %v816_v10 = vshll.u32 %v756_v3, 16 }
  0x18   : > { %252 = vst.msk [vmem:[#allocation2 + $0x60] sm:$0xf] %vm226_vm0, %v6302_v0  ;;  %253 = vst.msk [vmem:[#allocation2 + $0x64] sm:$0xf] %vm226_vm0, %v6302_v0  ;;  %v755_v9 = vld [vmem:[#allocation2] sm:$0xf] }
  0x19   : > { %254 = vst.msk [vmem:[#allocation2 + $0x68] sm:$0x1] %vm229_vm1, %v6302_v0  ;;  %257 = vst.msk [vmem:[#allocation2 + $0x74] sm:$0x1] %vm229_vm1, %v6302_v0  ;;  %v807_v11 = vshrl.u32 %v755_v9, 16  ;;  %v810_v12 = vshll.u32 %v755_v9, 16 }
  0x1a   : > { %255 = vst.msk [vmem:[#allocation2 + $0x6c] sm:$0xf] %vm226_vm0, %v6302_v0  ;;  %256 = vst.msk [vmem:[#allocation2 + $0x70] sm:$0xf] %vm226_vm0, %v6302_v0  ;;  %v820_v13 = vshrl.u32 %v756_v3, 16  ;;  %v826_v14 = vshll.u32 %v787_v4, 16 }
  0x1b   : > { %258 = vst.msk [vmem:[#allocation2 + $0x78] sm:$0xf] %vm226_vm0, %v6302_v0  ;;  %259 = vst.msk [vmem:[#allocation2 + $0x7c] sm:$0xf] %vm226_vm0, %v6302_v0  ;;  %v285_v15 = vld [vmem:[%s4652_s23 + $0xc] sm:$0xf] }
  0x1c   : > { %260 = vst.msk [vmem:[#allocation2 + $0x80] sm:$0x1] %vm229_vm1, %v6302_v0  ;;  %263 = vst.msk [vmem:[#allocation2 + $0x8c] sm:$0x1] %vm229_vm1, %v6302_v0  ;;  %v1261_v17 = vrot.slane %v1259_v7, 4  ;;  %v818_v18 = vrot.slane %v816_v10, 5 }
  0x1d   : > { %261 = vst.msk [vmem:[#allocation2 + $0x84] sm:$0xf] %vm226_vm0, %v6302_v0  ;;  %262 = vst.msk [vmem:[#allocation2 + $0x88] sm:$0xf] %vm226_vm0, %v6302_v0  ;;  %v335_v19 = vshrl.u32 %v284_v2, 16  ;;  %v809_v20 = vrot.slane %v807_v11, 4 }
  0x1e   : > { %264 = vst.msk [vmem:[#allocation2 + $0x90] sm:$0xf] %vm226_vm0, %v6302_v0  ;;  %265 = vst.msk [vmem:[#allocation2 + $0x94] sm:$0xf] %vm226_vm0, %v6302_v0  ;;  %v812_v21 = vrot.slane %v810_v12, 5  ;;  %v822_v22 = vrot.slane %v820_v13, 4 }
  0x1f   : > { %266 = vst.msk [vmem:[#allocation2 + $0x98] sm:$0x1] %vm229_vm1, %v6302_v0  ;;  %269 = vst.msk [vmem:[#allocation2 + $0xa4] sm:$0x1] %vm229_vm1, %v6302_v0  ;;  %v828_v23 = vrot.slane %v826_v14, 5  ;;  %v337_v26 = vrot.slane %v335_v19, 7 }
  0x20   : > { %267 = vst.msk [vmem:[#allocation2 + $0x9c] sm:$0xf] %vm226_vm0, %v6302_v0  ;;  %268 = vst.msk [vmem:[#allocation2 + $0xa0] sm:$0xf] %vm226_vm0, %v6302_v0  ;;  %v282_v24 = vld [vmem:[%s4652_s23] sm:$0xf]  ;;  %v813_v31 = vor.u32 %v812_v21, %v809_v20  ;;  %v823_v32 = vor.u32 %v822_v22, %v818_v18 }
  0x21   : > { %270 = vst.msk [vmem:[#allocation2 + $0xa8] sm:$0xf] %vm226_vm0, %v6302_v0  ;;  %271 = vst.msk [vmem:[#allocation2 + $0xac] sm:$0xf] %vm226_vm0, %v6302_v0  ;;  %v338_v27 = vshll.u32 %v284_v2, 16  ;;  %v343_v28 = vshrl.u32 %v285_v15, 16 }
  0x22   : > { %272 = vst.msk [vmem:[#allocation2 + $0xb0] sm:$0x1] %vm229_vm1, %v6302_v0  ;;  %275 = vst.msk [vmem:[#allocation2 + $0xbc] sm:$0x1] %vm229_vm1, %v6302_v0  ;;  %v283_v29 = vld [vmem:[%s4652_s23 + $0x4] sm:$0xf] }
  0x23   : > { %273 = vst.msk [vmem:[#allocation2 + $0xb4] sm:$0xf] %vm226_vm0, %v6302_v0  ;;  %274 = vst.msk [vmem:[#allocation2 + $0xb8] sm:$0xf] %vm226_vm0, %v6302_v0  ;;  %v346_v33 = vshll.u32 %v285_v15, 16  ;;  %v340_v37 = vor.u32 %v338_v27, %v337_v26  ;;  %v341_v38 = vrot.slane %v337_v26, 4 }
  0x24   : > { %276 = vst.msk [vmem:[#allocation2 + $0xc0] sm:$0xf] %vm226_vm0, %v6302_v0  ;;  %277 = vst.msk [vmem:[#allocation2 + $0xc4] sm:$0xf] %vm226_vm0, %v6302_v0  ;;  %v650_v35 = vld [vmem:[#allocation2 + $0x18] sm:$0xf] }
  0x25   : > { %278 = vst.msk [vmem:[#allocation2 + $0xc8] sm:$0x1] %vm229_vm1, %v6302_v0  ;;  %281 = vst.msk [vmem:[#allocation2 + $0xd4] sm:$0x1] %vm229_vm1, %v6302_v0  ;;  %v345_v39 = vrot.slane %v343_v28, 7  ;;  %v318_v40 = vshrl.u32 %v282_v24, 16 }
  0x26   : > { %279 = vst.msk [vmem:[#allocation2 + $0xcc] sm:$0xf] %vm226_vm0, %v6302_v0  ;;  %280 = vst.msk [vmem:[#allocation2 + $0xd0] sm:$0xf] %vm226_vm0, %v6302_v0  ;;  %v286_v41 = vld [vmem:[%s4652_s23 + $0x10] sm:$0xf] }
  0x27   : > { %vm4654_vm7 = vmor %vm1254_vm2, %vm1255_vm3  ;;  %v814_v42 = vrot.slane %v813_v31, 4  ;;  %v824_v43 = vrot.slane %v823_v32, 4  ;;  %v321_v45 = vshll.u32 %v282_v24, 16  ;;  %v326_v46 = vshrl.u32 %v283_v29, 16  ;;  %v287_v51 = vld [vmem:[%s4652_s23 + $0x14] sm:$0xf] }
  0x28   : > { %v1260_v16 = vsel %vm4654_vm7, %v4096_v6, %v1259_v7  ;;  %v1263_v25 = vsel %vm4654_vm7, %v1261_v17, %v1262_v8  ;;  %vm4668_vm10 = vmand %vm226_vm0, %vm639_vm9  ;;  %v348_v47 = vor.u32 %v346_v33, %v345_v39  ;;  %v320_v49 = vrot.slane %v318_v40, 7  ;;  %v641_v55 = vld [vmem:[#allocation2 + $0xc] sm:$0xf]  ;;  %v647_v61 = vld [vmem:[#allocation2 + $0x14] sm:$0x1] }
  0x29   : > { %v4176_v30 = vcombine.low %v1260_v16, %v1263_v25  ;;  %vm4674_vm11 = vmor %vm803_vm4, %vm804_vm5  ;;  %v651_v48 = vsel %vm4668_vm10, %v340_v37, %v650_v35  ;;  %v329_v50 = vshll.u32 %v283_v29, 16  ;;  %v328_v54 = vrot.slane %v326_v46, 7  ;;  %v654_v62 = vld [vmem:[#allocation2 + $0x20] sm:$0x1]  ;;  %v4703_v6 = vld [vmem:[%s4652_s23 + $0x18] sm:$0xf] }
  0x2a   : > { %vm4682_vm12 = vmor %vm314_vm6, %vm315_vm8  ;;  %v819_v52 = vsel %vm4674_vm11, %v814_v42, %v818_v18  ;;  %v829_v53 = vsel %vm4674_vm11, %v824_v43, %v828_v23  ;;  %652 = vst [vmem:[#allocation2 + $0x18] sm:$0xf] %v651_v48  ;;  %v352_v56 = vshrl.u32 %v286_v41, 16  ;;  %v323_v59 = vor.u32 %v321_v45, %v320_v49  ;;  %v657_v9 = vld [vmem:[#allocation2 + $0x24] sm:$0xf] }
  0x2b   : > { %2778 = vrot.lane.b32.xlu1 %v4176_v30, %s4485_s24  ;;  %v4160_v57 = vcombine.low %v819_v52, %v829_v53  ;;  %v349_v58 = vsel %vm4682_vm12, %v341_v38, %v348_v47  ;;  %v324_v60 = vrot.slane %v320_v49, 4  ;;  %vm4697_vm13 = vmand %vm229_vm1, %vm314_vm6  ;;  %v331_v2 = vor.u32 %v329_v50, %v328_v54  ;;  %v661_v22 = vld [vmem:[#allocation2 + $0x2c] sm:$0x1]  ;;  %v4719_v23 = vld [vmem:[%s4652_s23 + $0x1c] sm:$0xf] }
  0x2c   : > { %653 = vst.msk [vmem:[#allocation2 + $0x1c] sm:$0xf] %vm226_vm0, %v349_v58  ;;  %v354_v3 = vrot.slane %v352_v56, 7  ;;  %v355_v4 = vshll.u32 %v286_v41, 16  ;;  %v360_v5 = vshrl.u32 %v287_v51, 16  ;;  %v642_v7 = vsel %vm4668_vm10, %v323_v59, %v641_v55 }
  0x2d   : > { %2698 = vrot.lane.b32.xlu0 %v4160_v57, %s4486_s25  ;;  %v363_v8 = vshll.u32 %v287_v51, 16  ;;  %v333_v10 = vrot.slane %v328_v54, 4  ;;  %v350_v11 = vrot.slane %v345_v39, 4  ;;  %v332_v12 = vsel %vm4682_vm12, %v324_v60, %v331_v2  ;;  %643 = vst [vmem:[#allocation2 + $0xc] sm:$0xf] %v642_v7 }
  0x2e   : > { %v357_v13 = vor.u32 %v355_v4, %v354_v3  ;;  %v358_v14 = vrot.slane %v354_v3, 4  ;;  %v362_v15 = vrot.slane %v360_v5, 7  ;;  %644 = vst.msk [vmem:[#allocation2 + $0x10] sm:$0xf] %vm226_vm0, %v332_v12  ;;  %v369_v18 = vshrl.u32 %v4703_v6, 16 }
  0x2f   : > { %v648_v16 = vsel %vm4697_vm13, %v333_v10, %v647_v61  ;;  %v655_v17 = vsel %vm4697_vm13, %v350_v11, %v654_v62  ;;  %v372_v24 = vshll.u32 %v4703_v6, 16  ;;  %v377_v38 = vshrl.u32 %v4719_v23, 16 }
  0x30   : > { %v365_v19 = vor.u32 %v363_v8, %v362_v15  ;;  %v658_v20 = vsel %vm4668_vm10, %v357_v13, %v657_v9  ;;  %649 = vst [vmem:[#allocation2 + $0x14] sm:$0x1] %v648_v16  ;;  %656 = vst [vmem:[#allocation2 + $0x20] sm:$0x1] %v655_v17  ;;  %v367_v21 = vrot.slane %v362_v15, 4  ;;  %vm3322_vm14 = vcmask 56320  }
  0x31   : > { %v1371_v25 = vld [vmem:[#allocation2 + $0x18] sm:$0xf]  ;;  %659 = vst [vmem:[#allocation2 + $0x24] sm:$0xf] %v658_v20  ;;  %vm3371_vm15 = vcmask 113664   ;;  %vm3404_vm1 = vcmask 171008  }
  0x32   : > { %v4722_v26 = vld [vmem:[#allocation2 + $0x18] sm:$0xf]  ;;  %v1442_v28 = vshrl.u32 %v1371_v25, 16  ;;  %v1445_v29 = vshll.u32 %v1371_v25, 16  ;;  %v366_v30 = vsel %vm4682_vm12, %v358_v14, %v365_v19  ;;  %v662_v37 = vsel %vm4697_vm13, %v367_v21, %v661_v22 }
  0x33   : > { %v2410_v27 = vld [vmem:[#allocation2 + $0x18] sm:$0xe]  ;;  %v2027_v31 = vshrl.u32 %v4722_v26, 16  ;;  %v4727_v32 = vld [vmem:[#allocation2 + $0x1c] sm:$0xf]  ;;  %v2030_v35 = vshll.u32 %v4722_v26, 16 }
  0x34   : > { %660 = vst.msk [vmem:[#allocation2 + $0x28] sm:$0xf] %vm226_vm0, %v366_v30  ;;  %v4730_v33 = vld [vmem:[#allocation2 + $0x1c] sm:$0xf]  ;;  %v4193_v39 = vcombine.low %v1371_v25, %v4727_v32  ;;  %v4737_v40 = vrot.slane %v1442_v28, 4  ;;  %v4739_v41 = vrot.slane %v1445_v29, 5 }
  0x35   : > { %v4128_v42 = vrot.slane %v2410_v27, 9  ;;  %663 = vst [vmem:[#allocation2 + $0x2c] sm:$0x1] %v662_v37  ;;  %v1455_v43 = vshrl.u32 %v4727_v32, 16  ;;  %v1369_v45 = vld [vmem:[#allocation2 + $0xc] sm:$0xf]  ;;  %v4240_v52 = vcombine.low %v4722_v26, %v4730_v33 }
  0x36   : > { %v4742_v46 = vrot.slane %v2027_v31, 4  ;;  %v4744_v47 = vrot.slane %v2030_v35, 5  ;;  %v2040_v48 = vshrl.u32 %v4730_v33, 16  ;;  %2876 = vrot.lane.b32.xlu1 %v4193_v39, %s4487_s26  ;;  %v4748_v49 = vld [vmem:[#allocation2 + $0x10] sm:$0xf]  ;;  %v1418_v50 = vshrl.u32 %v1369_v45, 16 }
  0x37   : > { %v1421_v51 = vshll.u32 %v1369_v45, 16  ;;  %v1801_v53 = vld [vmem:[#allocation2 + $0xc] sm:$0xe]  ;;  %v4192_v54 = vcombine.low %v1369_v45, %v4748_v49  ;;  %v4753_v55 = vld [vmem:[#allocation2 + $0x14] sm:$0x1]  ;;  %v1867_v57 = vrot.slane %v4748_v49, 5  ;;  %v1448_v58 = vor.u32 %v4739_v41, %v4737_v40 }
  0x38   : > { %v4112_v56 = vrot.slane %v1801_v53, 9  ;;  %v4758_v59 = vrot.slane %v1418_v50, 4  ;;  %v1980_v61 = vld [vmem:[#allocation2 + $0x24] sm:$0xf]  ;;  %v1870_v62 = vrot.slane %v4753_v55, 5  ;;  %v2476_v2 = vrot.slane %v4730_v33, 5 }
  0x39   : > { %v4760_v60 = vrot.slane %v1421_v51, 5  ;;  %v1802_v3 = vld [vmem:[#allocation2 + $0x18] sm:$0xe]  ;;  %v1431_v4 = vshrl.u32 %v4748_v49, 16  ;;  %2874 = vrot.lane.b32.xlu0 %v4192_v54, %s4487_s26  ;;  %v2051_v5 = vshrl.u32 %v1980_v61, 16  ;;  %v2054_v7 = vshll.u32 %v1980_v61, 16 }
  0x3a   : > { %v1869_v8 = vrot.slane %v1867_v57, 4  ;;  %v4766_v9 = vld [vmem:[#allocation2 + $0x10] sm:$0xf]  ;;  %v1868_v11 = vsel %vm4654_vm7, %v4112_v56, %v1867_v57  ;;  %v4770_v12 = vld [vmem:[#allocation2 + $0x14] sm:$0x1]  ;;  %v2477_v14 = vsel %vm4654_vm7, %v4128_v42, %v2476_v2  ;;  %v2033_v16 = vor.u32 %v4744_v47, %v4742_v46 }
  0x3b   : > { %v1981_v10 = vld [vmem:[#allocation2 + $0x28] sm:$0xf]  ;;  %v1191_v13 = vld [vmem:[#allocation2 + $0xc] sm:$0xe]  ;;  %v1424_v15 = vor.u32 %v4760_v60, %v4758_v59  ;;  %v2053_v17 = vrot.slane %v2051_v5, 4  ;;  %v2056_v19 = vrot.slane %v2054_v7, 5 }
  0x3c   : > { %v2064_v20 = vshrl.u32 %v1981_v10, 16  ;;  %v4241_v21 = vcombine.low %v1980_v61, %v1981_v10  ;;  %v4778_v22 = vld [vmem:[#allocation2 + $0x20] sm:$0x1]  ;;  %v1871_v25 = vsel %vm4654_vm7, %v1869_v8, %v1870_v62  ;;  %v4097_v26 = vrot.slane %v1191_v13, 9  ;;  %v2011_v39 = vld [vmem:[#allocation2 + $0x2c] sm:$0x1] }
  0x3d   : > { %v1266_v27 = vrot.slane %v4766_v9, 5  ;;  %v1269_v28 = vrot.slane %v4770_v12, 5  ;;  %v1402_v29 = vld [vmem:[#allocation2 + $0x20] sm:$0x1]  ;;  %3130 = vrot.lane.b32.xlu0 %v4240_v52, %s4488_s27  ;;  %v4224_v30 = vcombine.low %v1868_v11, %v1871_v25  ;;  %v2478_v31 = vrot.slane %v2476_v2, 4 }
  0x3e   : > { %3132 = vrot.lane.b32.xlu1 %v4241_v21, %s4488_s27  ;;  %v2479_v35 = vrot.slane %v4778_v22, 5  ;;  %v4113_v37 = vrot.slane %v1802_v3, 9  ;;  %v1874_v42 = vrot.slane %v4727_v32, 5  ;;  %v1877_v45 = vrot.slane %v1402_v29, 5  ;;  %v2411_v50 = vld [vmem:[#allocation2 + $0x24] sm:$0xe] }
  0x3f   : > { %v1267_v40 = vsel %vm4654_vm7, %v4097_v26, %v1266_v27  ;;  %v1268_v41 = vrot.slane %v1266_v27, 4  ;;  %v4129_v53 = vrot.slane %v2411_v50, 9  ;;  %v2483_v54 = vrot.slane %v1981_v10, 5  ;;  %v757_v21 = vld [vmem:[#allocation2 + $0xc] sm:$0xf] }
  0x40   : > { %v2480_v51 = vsel %vm4654_vm7, %v2478_v31, %v2479_v35  ;;  %v2486_v52 = vrot.slane %v2011_v39, 5  ;;  %v1875_v61 = vsel %vm4654_vm7, %v4113_v37, %v1874_v42  ;;  %v1876_v62 = vrot.slane %v1874_v42, 4  ;;  %v1192_v47 = vld [vmem:[#allocation2 + $0x18] sm:$0xe] }
  0x41   : > { %v1270_v56 = vsel %vm4654_vm7, %v1268_v41, %v1269_v28  ;;  %v4272_v57 = vcombine.low %v2477_v14, %v2480_v51  ;;  %3034 = vrot.lane.b32.xlu0 %v4224_v30, %s4489_s28  ;;  %v2484_v3 = vsel %vm4654_vm7, %v4129_v53, %v2483_v54  ;;  %v2485_v5 = vrot.slane %v2483_v54, 4  ;;  %v4814_v51 = vld [vmem:[#allocation2 + $0x1c] sm:$0xf] }
  0x42   : > { %v4177_v2 = vcombine.low %v1267_v40, %v1270_v56  ;;  %v1449_v7 = vrot.slane %v1448_v58, 4  ;;  %v1878_v8 = vsel %vm4654_vm7, %v1876_v62, %v1877_v45  ;;  %v1451_v11 = vshll.u32 %v4727_v32, 16 }
  0x43   : > { %v1457_v13 = vrot.slane %v1455_v43, 4  ;;  %v1461_v14 = vshll.u32 %v1402_v29, 16  ;;  %v4225_v25 = vcombine.low %v1875_v61, %v1878_v8  ;;  %v2487_v26 = vsel %vm4654_vm7, %v2485_v5, %v2486_v52 }
  0x44   : > { %2780 = vrot.lane.b32.xlu1 %v4177_v2, %s4485_s24  ;;  %v2057_v27 = vor.u32 %v2056_v19, %v2053_v17  ;;  %v2060_v28 = vshll.u32 %v1981_v10, 16  ;;  %v4273_v30 = vcombine.low %v2484_v3, %v2487_v26  ;;  %v1453_v58 = vrot.slane %v1451_v11, 5  ;;  %v759_v17 = vld [vmem:[#allocation2 + $0x18] sm:$0xf] }
  0x45   : > { %v1463_v31 = vrot.slane %v1461_v14, 5  ;;  %v2066_v35 = vrot.slane %v2064_v20, 4  ;;  %3290 = vrot.lane.b32.xlu0 %v4272_v57, %s4490_s29  ;;  %v2070_v43 = vshll.u32 %v2011_v39, 16  ;;  %v831_v29 = vshrl.u32 %v757_v21, 16 }
  0x46   : > { %v2058_v37 = vrot.slane %v2057_v27, 4  ;;  %v2062_v32 = vrot.slane %v2060_v28, 5  ;;  %v1454_v40 = vsel %vm4674_vm11, %v1449_v7, %v1453_v58  ;;  %v1458_v41 = vor.u32 %v1457_v13, %v1453_v58  ;;  %v4821_v7 = vld [vmem:[#allocation2 + $0x20] sm:$0x1] }
  0x47   : > { %v834_v42 = vshll.u32 %v757_v21, 16  ;;  %v840_v45 = vshll.u32 %v4766_v9, 16  ;;  %v2072_v20 = vrot.slane %v2070_v43, 5  ;;  %v833_v50 = vrot.slane %v831_v29, 4 }
  0x48   : > { %3036 = vrot.lane.b32.xlu1 %v4225_v25, %s4489_s28  ;;  %v2063_v10 = vsel %vm4674_vm11, %v2058_v37, %v2062_v32  ;;  %v2067_v19 = vor.u32 %v2066_v35, %v2062_v32  ;;  %v1459_v39 = vrot.slane %v1458_v41, 4  ;;  %v844_v52 = vshrl.u32 %v4766_v9, 16 }
  0x49   : > { %v836_v53 = vrot.slane %v834_v42, 5  ;;  %v842_v54 = vrot.slane %v840_v45, 5  ;;  %3292 = vrot.lane.b32.xlu0 %v4273_v30, %s4490_s29  ;;  %v850_v57 = vshll.u32 %v4770_v12, 16  ;;  %v855_v61 = vshrl.u32 %v759_v17, 16 }
  0x4a   : > { %v2068_v56 = vrot.slane %v2067_v19, 4  ;;  %v858_v62 = vshll.u32 %v759_v17, 16  ;;  %v1464_v2 = vsel %vm4674_vm11, %v1459_v39, %v1463_v31  ;;  %v846_v5 = vrot.slane %v844_v52, 4  ;;  %v761_v31 = vld [vmem:[#allocation2 + $0x24] sm:$0xf] }
  0x4b   : > { %v837_v3 = vor.u32 %v836_v53, %v833_v50  ;;  %v864_v8 = vshll.u32 %v4814_v51, 16  ;;  %v4209_v11 = vcombine.low %v1454_v40, %v1464_v2  ;;  %v852_v13 = vrot.slane %v850_v57, 5  ;;  %v790_v50 = vld [vmem:[#allocation2 + $0x2c] sm:$0x1] }
  0x4c   : > { %v2073_v9 = vsel %vm4674_vm11, %v2068_v56, %v2072_v20  ;;  %v857_v14 = vrot.slane %v855_v61, 4  ;;  %v847_v12 = vor.u32 %v846_v5, %v842_v54  ;;  %v860_v26 = vrot.slane %v858_v62, 5 }
  0x4d   : > { %v4257_v21 = vcombine.low %v2063_v10, %v2073_v9  ;;  %v838_v25 = vrot.slane %v837_v3, 4  ;;  %2956 = vrot.lane.b32.xlu1 %v4209_v11, %s4491_s30  ;;  %v866_v27 = vrot.slane %v864_v8, 5  ;;  %v868_v28 = vshrl.u32 %v4814_v51, 16 }
  0x4e   : > { %v874_v30 = vshll.u32 %v4821_v7, 16  ;;  %v1425_v58 = vrot.slane %v1424_v15, 4  ;;  %v848_v37 = vrot.slane %v847_v12, 4  ;;  %v861_v32 = vor.u32 %v860_v26, %v857_v14  ;;  %v762_v15 = vld [vmem:[#allocation2 + $0x28] sm:$0xf] }
  0x4f   : > { %v843_v35 = vsel %vm4674_vm11, %v838_v25, %v842_v54  ;;  %v1427_v43 = vshll.u32 %v4748_v49, 16  ;;  %v870_v29 = vrot.slane %v868_v28, 4  ;;  %v1433_v41 = vrot.slane %v1431_v4, 4 }
  0x50   : > { %v876_v40 = vrot.slane %v874_v30, 5  ;;  %v1437_v42 = vshll.u32 %v4753_v55, 16  ;;  %v853_v45 = vsel %vm4674_vm11, %v848_v37, %v852_v13  ;;  %v862_v59 = vrot.slane %v861_v32, 4  ;;  %v1193_v13 = vld [vmem:[#allocation2 + $0x24] sm:$0xe] }
  0x51   : > { %v1429_v60 = vrot.slane %v1427_v43, 5  ;;  %v879_v17 = vshrl.u32 %v761_v31, 16  ;;  %3212 = vrot.lane.b32.xlu1 %v4257_v21, %s4492_s6  ;;  %v4161_v10 = vcombine.low %v843_v35, %v853_v45  ;;  %v871_v19 = vor.u32 %v870_v29, %v866_v27 }
  0x52   : > { %v1439_v20 = vrot.slane %v1437_v42, 5  ;;  %v882_v39 = vshll.u32 %v761_v31, 16  ;;  %v867_v49 = vsel %vm4674_vm11, %v862_v59, %v866_v27  ;;  %v888_v56 = vshll.u32 %v762_v15, 16 }
  0x53   : > { %v1430_v55 = vsel %vm4674_vm11, %v1425_v58, %v1429_v60  ;;  %v1434_v4 = vor.u32 %v1433_v41, %v1429_v60  ;;  %v881_v53 = vrot.slane %v879_v17, 4  ;;  %2700 = vrot.lane.b32.xlu0 %v4161_v10, %s4486_s25  ;;  %v872_v54 = vrot.slane %v871_v19, 4  ;;  %v1373_v10 = vld [vmem:[#allocation2 + $0x24] sm:$0xf]  ;;  %v1374_v19 = vld [vmem:[#allocation2 + $0x28] sm:$0xf] }
  0x54   : > { %v884_v52 = vrot.slane %v882_v39, 5  ;;  %v892_v57 = vshrl.u32 %v762_v15, 16  ;;  %v898_v62 = vshll.u32 %v790_v50, 16  ;;  %v2034_v2 = vrot.slane %v2033_v16, 4  ;;  %v664_v39 = vld [vmem:[#allocation2 + $0x30] sm:$0xf] }
  0x55   : > { %v1435_v61 = vrot.slane %v1434_v4, 4  ;;  %v2036_v3 = vshll.u32 %v4730_v33, 16  ;;  %v877_v5 = vsel %vm4674_vm11, %v872_v54, %v876_v40  ;;  %v890_v11 = vrot.slane %v888_v56, 5  ;;  %v1403_v4 = vld [vmem:[#allocation2 + $0x2c] sm:$0x1] }
  0x56   : > { %v885_v8 = vor.u32 %v884_v52, %v881_v53  ;;  %v894_v9 = vrot.slane %v892_v57, 4  ;;  %v4162_v14 = vcombine.low %v867_v49, %v877_v5  ;;  %v900_v25 = vrot.slane %v898_v62, 5  ;;  %v1803_v57 = vld [vmem:[#allocation2 + $0x24] sm:$0xe] }
  0x57   : > { %v1440_v21 = vsel %vm4674_vm11, %v1435_v61, %v1439_v20  ;;  %v2038_v12 = vrot.slane %v2036_v3, 5  ;;  %v2042_v46 = vrot.slane %v2040_v48, 4  ;;  %v2046_v30 = vshll.u32 %v4778_v22, 16 }
  0x58   : > { %v4208_v26 = vcombine.low %v1430_v55, %v1440_v21  ;;  %v886_v27 = vrot.slane %v885_v8, 4  ;;  %v895_v28 = vor.u32 %v894_v9, %v890_v11  ;;  %2702 = vrot.lane.b32.xlu1 %v4162_v14, %s4486_s25  ;;  %v4099_v58 = vrot.slane %v1193_v13, 9 }
  0x59   : > { %v2039_v16 = vsel %vm4674_vm11, %v2034_v2, %v2038_v12  ;;  %v1280_v31 = vrot.slane %v762_v15, 5  ;;  %v2043_v32 = vor.u32 %v2042_v46, %v2038_v12  ;;  %v1283_v43 = vrot.slane %v790_v50, 5  ;;  %v668_v2 = vld [vmem:[#allocation2 + $0x38] sm:$0x1]  ;;  %v4897_v46 = vld [vmem:[%s4652_s23 + $0x28] sm:$0xf] }
  0x5a   : > { %2954 = vrot.lane.b32.xlu0 %v4208_v26, %s4491_s30  ;;  %v891_v35 = vsel %vm4674_vm11, %v886_v27, %v890_v11  ;;  %v896_v37 = vrot.slane %v895_v28, 4  ;;  %v2048_v33 = vrot.slane %v2046_v30, 5  ;;  %v4098_v40 = vrot.slane %v1192_v47, 9  ;;  %v290_v11 = vld [vmem:[%s4652_s23 + $0x20] sm:$0xf] }
  0x5b   : > { %v1281_v48 = vsel %vm4654_vm7, %v4099_v58, %v1280_v31  ;;  %v1282_v29 = vrot.slane %v1280_v31, 4  ;;  %v2044_v22 = vrot.slane %v2043_v32, 4  ;;  %v1273_v42 = vrot.slane %v4814_v51, 5  ;;  %v291_v28 = vld [vmem:[%s4652_s23 + $0x24] sm:$0xf] }
  0x5c   : > { %v901_v41 = vsel %vm4674_vm11, %v896_v37, %v900_v25  ;;  %v1276_v45 = vrot.slane %v4821_v7, 5  ;;  %v371_v15 = vrot.slane %v369_v18, 7  ;;  %v379_v17 = vrot.slane %v377_v38, 7 }
  0x5d   : > { %v4163_v59 = vcombine.low %v891_v35, %v901_v41  ;;  %v1284_v60 = vsel %vm4654_vm7, %v1282_v29, %v1283_v43  ;;  %v2049_v20 = vsel %vm4674_vm11, %v2044_v22, %v2048_v33  ;;  %v1274_v51 = vsel %vm4654_vm7, %v4098_v40, %v1273_v42 }
  0x5e   : > { %v4179_v50 = vcombine.low %v1281_v48, %v1284_v60  ;;  %v1275_v7 = vrot.slane %v1273_v42, 4  ;;  %v4256_v49 = vcombine.low %v2039_v16, %v2049_v20  ;;  %v374_v18 = vor.u32 %v372_v24, %v371_v15  ;;  %v671_v42 = vld [vmem:[#allocation2 + $0x3c] sm:$0xf] }
  0x5f   : > { %2704 = vrot.lane.b32.xlu1 %v4163_v59, %s4486_s25  ;;  %v375_v55 = vrot.slane %v371_v15, 4  ;;  %v380_v38 = vshll.u32 %v4719_v23, 16  ;;  %v1466_v54 = vshrl.u32 %v1373_v10, 16  ;;  %v1469_v52 = vshll.u32 %v1373_v10, 16 }
  0x60   : > { %v1277_v53 = vsel %vm4654_vm7, %v1275_v7, %v1276_v45  ;;  %v1479_v56 = vshrl.u32 %v1374_v19, 16  ;;  %3210 = vrot.lane.b32.xlu0 %v4256_v49, %s4492_s6  ;;  %v665_v6 = vsel %vm4668_vm10, %v374_v18, %v664_v39  ;;  %v4194_v24 = vcombine.low %v1373_v10, %v1374_v19 }
  0x61   : > { %v4178_v61 = vcombine.low %v1274_v51, %v1277_v53  ;;  %v382_v62 = vor.u32 %v380_v38, %v379_v17  ;;  %666 = vst [vmem:[#allocation2 + $0x30] sm:$0xf] %v665_v6  ;;  %v1468_v23 = vrot.slane %v1466_v54, 4  ;;  %v1471_v3 = vrot.slane %v1469_v52, 5 }
  0x62   : > { %v384_v5 = vrot.slane %v379_v17, 4  ;;  %v1475_v8 = vshll.u32 %v1374_v19, 16  ;;  %v1481_v13 = vrot.slane %v1479_v56, 4  ;;  %v1485_v14 = vshll.u32 %v1403_v4, 16 }
  0x63   : > { %2784 = vrot.lane.b32.xlu1 %v4179_v50, %s4485_s24  ;;  %v383_v9 = vsel %vm4682_vm12, %v375_v55, %v382_v62  ;;  %v4114_v21 = vrot.slane %v1803_v57, 9  ;;  %v1472_v12 = vor.u32 %v1471_v3, %v1468_v23  ;;  %v1881_v27 = vrot.slane %v1374_v19, 5 }
  0x64   : > { %667 = vst.msk [vmem:[#allocation2 + $0x34] sm:$0xf] %vm226_vm0, %v383_v9  ;;  %v669_v25 = vsel %vm4697_vm13, %v384_v5, %v668_v2  ;;  %v1477_v26 = vrot.slane %v1475_v8, 5  ;;  %2782 = vrot.lane.b32.xlu0 %v4178_v61, %s4485_s24  ;;  %v1487_v47 = vrot.slane %v1485_v14, 5  ;;  %v1884_v16 = vrot.slane %v1403_v4, 5 }
  0x65   : > { %670 = vst [vmem:[#allocation2 + $0x38] sm:$0x1] %v669_v25  ;;  %v386_v30 = vshrl.u32 %v290_v11, 16  ;;  %v389_v58 = vshll.u32 %v290_v11, 16  ;;  %v1473_v31 = vrot.slane %v1472_v12, 4  ;;  %v1882_v37 = vsel %vm4654_vm7, %v4114_v21, %v1881_v27 }
  0x66   : > { %v1482_v35 = vor.u32 %v1481_v13, %v1477_v26  ;;  %v1883_v32 = vrot.slane %v1881_v27, 4  ;;  %v394_v33 = vshrl.u32 %v291_v28, 16  ;;  %v397_v48 = vshll.u32 %v291_v28, 16  ;;  %v675_v21 = vld [vmem:[#allocation2 + $0x44] sm:$0x1] }
  0x67   : > { %v388_v43 = vrot.slane %v386_v30, 7  ;;  %v403_v29 = vshrl.u32 %v4897_v46, 16  ;;  %v1478_v40 = vsel %vm4674_vm11, %v1473_v31, %v1477_v26  ;;  %v406_v45 = vshll.u32 %v4897_v46, 16 }
  0x68   : > { %v1483_v41 = vrot.slane %v1482_v35, 4  ;;  %v1885_v22 = vsel %vm4654_vm7, %v1883_v32, %v1884_v16  ;;  %v1375_v59 = vld [vmem:[#allocation2 + $0x30] sm:$0xf]  ;;  %2878 = vrot.lane.b32.xlu0 %v4194_v24, %s4487_s26  ;;  %v396_v19 = vrot.slane %v394_v33, 7  ;;  %vm3673_vm2 = vcmask 1046528  }
  0x69   : > { %v1804_v60 = vld [vmem:[#allocation2 + $0x30] sm:$0xe]  ;;  %v4226_v15 = vcombine.low %v1882_v37, %v1885_v22  ;;  %v391_v17 = vor.u32 %v389_v58, %v388_v43  ;;  %v392_v10 = vrot.slane %v388_v43, 4  ;;  %v1490_v20 = vshrl.u32 %v1375_v59, 16 }
  0x6a   : > { %v1493_v50 = vshll.u32 %v1375_v59, 16  ;;  %v1488_v51 = vsel %vm4674_vm11, %v1483_v41, %v1487_v47  ;;  %v4115_v7 = vrot.slane %v1804_v60, 9  ;;  %v1982_v39 = vld [vmem:[#allocation2 + $0x30] sm:$0xf]  ;;  %v399_v55 = vor.u32 %v397_v48, %v396_v19 }
  0x6b   : > { %v1376_v49 = vld [vmem:[#allocation2 + $0x34] sm:$0xf]  ;;  %v4210_v18 = vcombine.low %v1478_v40, %v1488_v51  ;;  %v672_v38 = vsel %vm4668_vm10, %v391_v17, %v671_v42  ;;  %v2075_v4 = vshrl.u32 %v1982_v39, 16  ;;  %v1492_v53 = vrot.slane %v1490_v20, 4  ;;  %v4932_v31 = vld [vmem:[#allocation2 + $0x30] sm:$0xf] }
  0x6c   : > { %v1495_v54 = vrot.slane %v1493_v50, 5  ;;  %v1503_v52 = vshrl.u32 %v1376_v49, 16  ;;  %v4195_v56 = vcombine.low %v1375_v59, %v1376_v49  ;;  %v1404_v57 = vld [vmem:[#allocation2 + $0x38] sm:$0x1]  ;;  %673 = vst [vmem:[#allocation2 + $0x3c] sm:$0xf] %v672_v38  ;;  %v400_v5 = vsel %vm4682_vm12, %v392_v10, %v399_v55 }
  0x6d   : > { %v1499_v61 = vshll.u32 %v1376_v49, 16  ;;  %v1509_v62 = vshll.u32 %v1404_v57, 16  ;;  %2958 = vrot.lane.b32.xlu0 %v4210_v18, %s4491_s30  ;;  %v1888_v6 = vrot.slane %v1376_v49, 5  ;;  %v1891_v24 = vrot.slane %v1404_v57, 5  ;;  %v4914_v2 = vld [vmem:[#allocation2 + $0x34] sm:$0xf] }
  0x6e   : > { %2880 = vrot.lane.b32.xlu1 %v4195_v56, %s4487_s26  ;;  %v1496_v23 = vor.u32 %v1495_v54, %v1492_v53  ;;  %v1505_v3 = vrot.slane %v1503_v52, 4  ;;  %v2077_v8 = vrot.slane %v2075_v4, 4  ;;  %674 = vst.msk [vmem:[#allocation2 + $0x40] sm:$0xf] %vm226_vm0, %v400_v5  ;;  %v2078_v12 = vshll.u32 %v1982_v39, 16 }
  0x6f   : > { %v1501_v11 = vrot.slane %v1499_v61, 5  ;;  %v1511_v9 = vrot.slane %v1509_v62, 5  ;;  %v4921_v13 = vsel %vm4654_vm7, %v4115_v7, %v1888_v6  ;;  %v1890_v14 = vrot.slane %v1888_v6, 4  ;;  %v4926_v28 = vld [vmem:[#allocation2 + $0x38] sm:$0x1] }
  0x70   : > { %v1497_v25 = vrot.slane %v1496_v23, 4  ;;  %v2088_v26 = vshrl.u32 %v4914_v2, 16  ;;  %v4242_v27 = vcombine.low %v1982_v39, %v4914_v2  ;;  %v401_v30 = vrot.slane %v396_v19, 4  ;;  %v4948_v20 = vld [vmem:[#allocation2 + $0x34] sm:$0xf] }
  0x71   : > { %v1506_v47 = vor.u32 %v1505_v3, %v1501_v11  ;;  %v1892_v16 = vsel %vm4654_vm7, %v1890_v14, %v1891_v24  ;;  %3038 = vrot.lane.b32.xlu0 %v4226_v15, %s4489_s28  ;;  %v2084_v58 = vshll.u32 %v4914_v2, 16  ;;  %v2080_v32 = vrot.slane %v2078_v12, 5  ;;  %v4960_v56 = vld [vmem:[#allocation2 + $0x38] sm:$0x1]  ;;  %v2412_v62 = vld [vmem:[#allocation2 + $0x30] sm:$0xe] }
  0x72   : > { %v1502_v35 = vsel %vm4674_vm11, %v1497_v25, %v1501_v11  ;;  %v4227_v37 = vcombine.low %v4921_v13, %v1892_v16  ;;  %v2090_v43 = vrot.slane %v2088_v26, 4  ;;  %v676_v40 = vsel %vm4697_vm13, %v401_v30, %v675_v21 }
  0x73   : > { %v1507_v33 = vrot.slane %v1506_v47, 4  ;;  %v4937_v48 = vld [vmem:[#allocation2 + $0x3c] sm:$0xf]  ;;  %v2086_v41 = vrot.slane %v2084_v58, 5  ;;  %v2094_v22 = vshll.u32 %v4926_v28, 16  ;;  %v2081_v60 = vor.u32 %v2080_v32, %v2077_v8 }
  0x74   : > { %v2099_v42 = vshrl.u32 %v4937_v48, 16  ;;  %v2102_v59 = vshll.u32 %v4937_v48, 16  ;;  %677 = vst [vmem:[#allocation2 + $0x44] sm:$0x1] %v676_v40  ;;  %v903_v15 = vshrl.u32 %v4932_v31, 16  ;;  %v906_v50 = vshll.u32 %v4932_v31, 16 }
  0x75   : > { %v1512_v17 = vsel %vm4674_vm11, %v1507_v33, %v1511_v9  ;;  %3134 = vrot.lane.b32.xlu0 %v4242_v27, %s4488_s27  ;;  %v2091_v10 = vor.u32 %v2090_v43, %v2086_v41  ;;  %v2096_v19 = vrot.slane %v2094_v22, 5  ;;  %v4951_v7 = vld [vmem:[#allocation2 + $0x40] sm:$0xf]  ;;  %v2082_v18 = vrot.slane %v2081_v60, 4  ;;  %v4966_v13 = vld [vmem:[#allocation2 + $0x3c] sm:$0xf] }
  0x76   : > { %v4211_v51 = vcombine.low %v1502_v35, %v1512_v17  ;;  %v2101_v39 = vrot.slane %v2099_v42, 4  ;;  %v2104_v49 = vrot.slane %v2102_v59, 5  ;;  %v2112_v55 = vshrl.u32 %v4951_v7, 16  ;;  %v4973_v58 = vld [vmem:[#allocation2 + $0x40] sm:$0xf] }
  0x77   : > { %v4243_v38 = vcombine.low %v4937_v48, %v4951_v7  ;;  %v2108_v4 = vshll.u32 %v4951_v7, 16  ;;  %v2092_v53 = vrot.slane %v2091_v10, 4  ;;  %v2087_v52 = vsel %vm4674_vm11, %v2082_v18, %v2086_v41  ;;  %v1195_v18 = vld [vmem:[#allocation2 + $0x3c] sm:$0xe] }
  0x78   : > { %2960 = vrot.lane.b32.xlu1 %v4211_v51, %s4491_s30  ;;  %v2105_v54 = vor.u32 %v2104_v49, %v2101_v39  ;;  %v905_v57 = vrot.slane %v903_v15, 4  ;;  %v908_v61 = vrot.slane %v906_v50, 5  ;;  %v2114_v24 = vrot.slane %v2112_v55, 4  ;;  %v1805_v46 = vld [vmem:[#allocation2 + $0x3c] sm:$0xe] }
  0x79   : > { %v2110_v6 = vrot.slane %v2108_v4, 5  ;;  %v2097_v23 = vsel %vm4674_vm11, %v2092_v53, %v2096_v19  ;;  %v912_v3 = vshll.u32 %v4948_v20, 16  ;;  %v916_v9 = vshrl.u32 %v4948_v20, 16  ;;  %v2413_v19 = vld [vmem:[#allocation2 + $0x3c] sm:$0xe] }
  0x7a   : > { %v2106_v5 = vrot.slane %v2105_v54, 4  ;;  %v4258_v8 = vcombine.low %v2087_v52, %v2097_v23  ;;  %v909_v11 = vor.u32 %v908_v61, %v905_v57  ;;  %v922_v12 = vshll.u32 %v4960_v56, 16 }
  0x7b   : > { %v2013_v14 = vld [vmem:[#allocation2 + $0x44] sm:$0x1]  ;;  %v2115_v21 = vor.u32 %v2114_v24, %v2110_v6  ;;  %v914_v25 = vrot.slane %v912_v3, 5  ;;  %v4130_v26 = vrot.slane %v2412_v62, 9  ;;  %v918_v30 = vrot.slane %v916_v9, 4 }
  0x7c   : > { %3040 = vrot.lane.b32.xlu1 %v4227_v37, %s4489_s28  ;;  %v2111_v27 = vsel %vm4674_vm11, %v2106_v5, %v2110_v6  ;;  %v2118_v47 = vshll.u32 %v2013_v14, 16  ;;  %3214 = vrot.lane.b32.xlu0 %v4258_v8, %s4492_s6  ;;  %v910_v16 = vrot.slane %v909_v11, 4  ;;  %v924_v32 = vrot.slane %v922_v12, 5  ;;  %v792_v59 = vld [vmem:[#allocation2 + $0x44] sm:$0x1] }
  0x7d   : > { %v2116_v35 = vrot.slane %v2115_v21, 4  ;;  %v2490_v43 = vrot.slane %v4914_v2, 5  ;;  %v2493_v33 = vrot.slane %v4926_v28, 5  ;;  %v919_v40 = vor.u32 %v918_v30, %v914_v25  ;;  %v1194_v62 = vld [vmem:[#allocation2 + $0x30] sm:$0xe] }
  0x7e   : > { %v2120_v48 = vrot.slane %v2118_v47, 5  ;;  %v915_v37 = vsel %vm4674_vm11, %v910_v16, %v914_v25  ;;  %v927_v41 = vshrl.u32 %v4966_v13, 16  ;;  %v930_v60 = vshll.u32 %v4966_v13, 16  ;;  %v293_v16 = vld [vmem:[%s4652_s23 + $0x2c] sm:$0xf] }
  0x7f   : > { %v2491_v22 = vsel %vm4654_vm7, %v4130_v26, %v2490_v43  ;;  %v2492_v42 = vrot.slane %v2490_v43, 4  ;;  %v936_v15 = vshll.u32 %v4973_v58, 16  ;;  %v920_v28 = vrot.slane %v919_v40, 4  ;;  %v1377_v30 = vld [vmem:[#allocation2 + $0x3c] sm:$0xf] }
  0x80   : > { %3136 = vrot.lane.b32.xlu1 %v4243_v38, %s4488_s27  ;;  %v2121_v2 = vsel %vm4674_vm11, %v2116_v35, %v2120_v48  ;;  %v929_v17 = vrot.slane %v927_v41, 4  ;;  %v940_v10 = vshrl.u32 %v4973_v58, 16  ;;  %v932_v39 = vrot.slane %v930_v60, 5 }
  0x81   : > { %v4259_v50 = vcombine.low %v2111_v27, %v2121_v2  ;;  %v2494_v51 = vsel %vm4654_vm7, %v2492_v42, %v2493_v33  ;;  %v938_v49 = vrot.slane %v936_v15, 5  ;;  %v925_v55 = vsel %vm4674_vm11, %v920_v28, %v924_v32  ;;  %v678_v15 = vld [vmem:[#allocation2 + $0x48] sm:$0xf] }
  0x82   : > { %v4274_v4 = vcombine.low %v2491_v22, %v2494_v51  ;;  %v942_v38 = vrot.slane %v940_v10, 4  ;;  %v946_v53 = vshll.u32 %v792_v59, 16  ;;  %v4164_v54 = vcombine.low %v915_v37, %v925_v55  ;;  %v1378_v22 = vld [vmem:[#allocation2 + $0x40] sm:$0xf] }
  0x83   : > { %v933_v52 = vor.u32 %v932_v39, %v929_v17  ;;  %v4131_v57 = vrot.slane %v2413_v19, 9  ;;  %v2497_v61 = vrot.slane %v4951_v7, 5  ;;  %v2500_v23 = vrot.slane %v2013_v14, 5 }
  0x84   : > { %3216 = vrot.lane.b32.xlu1 %v4259_v50, %s4492_s6  ;;  %3294 = vrot.lane.b32.xlu0 %v4274_v4, %s4490_s29  ;;  %v943_v6 = vor.u32 %v942_v38, %v938_v49  ;;  %v948_v24 = vrot.slane %v946_v53, 5  ;;  %v4101_v3 = vrot.slane %v1195_v18, 9  ;;  %v1294_v9 = vrot.slane %v4973_v58, 5  ;;  %v682_v4 = vld [vmem:[#allocation2 + $0x50] sm:$0x1] }
  0x85   : > { %v934_v5 = vrot.slane %v933_v52, 4  ;;  %v2498_v8 = vsel %vm4654_vm7, %v4131_v57, %v2497_v61  ;;  %v2499_v11 = vrot.slane %v2497_v61, 4  ;;  %v1297_v25 = vrot.slane %v792_v59, 5 }
  0x86   : > { %v944_v21 = vrot.slane %v943_v6, 4  ;;  %v4100_v7 = vrot.slane %v1194_v62, 9  ;;  %v1287_v12 = vrot.slane %v4948_v20, 5  ;;  %v1295_v14 = vsel %vm4654_vm7, %v4101_v3, %v1294_v9  ;;  %v294_v6 = vld [vmem:[%s4652_s23 + $0x30] sm:$0xf] }
  0x87   : > { %v939_v26 = vsel %vm4674_vm11, %v934_v5, %v938_v49  ;;  %v2501_v27 = vsel %vm4654_vm7, %v2499_v11, %v2500_v23  ;;  %v1296_v47 = vrot.slane %v1294_v9, 4  ;;  %v1290_v40 = vrot.slane %v4960_v56, 5  ;;  %v1405_v56 = vld [vmem:[#allocation2 + $0x44] sm:$0x1] }
  0x88   : > { %2706 = vrot.lane.b32.xlu1 %v4164_v54, %s4486_s25  ;;  %v949_v35 = vsel %vm4674_vm11, %v944_v21, %v948_v24  ;;  %v4275_v32 = vcombine.low %v2498_v8, %v2501_v27  ;;  %v1288_v43 = vsel %vm4654_vm7, %v4100_v7, %v1287_v12  ;;  %v1289_v33 = vrot.slane %v1287_v12, 4  ;;  %v295_v24 = vld [vmem:[%s4652_s23 + $0x34] sm:$0xf]  ;;  %v5034_v7 = vld [vmem:[%s4652_s23 + $0x38] sm:$0xf] }
  0x89   : > { %v4165_v48 = vcombine.low %v939_v26, %v949_v35  ;;  %v1298_v37 = vsel %vm4654_vm7, %v1296_v47, %v1297_v25  ;;  %v405_v41 = vrot.slane %v403_v29, 7  ;;  %v411_v59 = vshrl.u32 %v293_v16, 16 }
  0x8a   : > { %3296 = vrot.lane.b32.xlu0 %v4275_v32, %s4490_s29  ;;  %v4181_v42 = vcombine.low %v1295_v14, %v1298_v37  ;;  %v414_v60 = vshll.u32 %v293_v16, 16  ;;  %v1514_v2 = vshrl.u32 %v1377_v30, 16  ;;  %v1291_v28 = vsel %vm4654_vm7, %v1289_v33, %v1290_v40 }
  0x8b   : > { %v408_v17 = vor.u32 %v406_v45, %v405_v41  ;;  %v409_v10 = vrot.slane %v405_v41, 4  ;;  %v1517_v19 = vshll.u32 %v1377_v30, 16  ;;  %v4180_v29 = vcombine.low %v1288_v43, %v1291_v28 }
  0x8c   : > { %2708 = vrot.lane.b32.xlu1 %v4165_v48, %s4486_s25  ;;  %v413_v50 = vrot.slane %v411_v59, 7  ;;  %v1516_v51 = vrot.slane %v1514_v2, 4  ;;  %v1527_v39 = vshrl.u32 %v1378_v22, 16  ;;  %v4196_v55 = vcombine.low %v1377_v30, %v1378_v22 }
  0x8d   : > { %v679_v49 = vsel %vm4668_vm10, %v408_v17, %v678_v15  ;;  %v1519_v18 = vrot.slane %v1517_v19, 5  ;;  %v1523_v38 = vshll.u32 %v1378_v22, 16  ;;  %v1533_v52 = vshll.u32 %v1405_v56, 16 }
  0x8e   : > { %2786 = vrot.lane.b32.xlu0 %v4180_v29, %s4485_s24  ;;  %v416_v45 = vor.u32 %v414_v60, %v413_v50  ;;  %680 = vst [vmem:[#allocation2 + $0x48] sm:$0xf] %v679_v49  ;;  %v418_v53 = vrot.slane %v413_v50, 4  ;;  %v1529_v54 = vrot.slane %v1527_v39, 4  ;;  %v1895_v62 = vrot.slane %v1378_v22, 5 }
  0x8f   : > { %v1520_v57 = vor.u32 %v1519_v18, %v1516_v51  ;;  %v1525_v61 = vrot.slane %v1523_v38, 5  ;;  %v1535_v5 = vrot.slane %v1533_v52, 5  ;;  %v4116_v8 = vrot.slane %v1805_v46, 9  ;;  %v5051_v49 = vld [vmem:[#allocation2 + $0x4] sm:$0xf] }
  0x90   : > { %2788 = vrot.lane.b32.xlu1 %v4181_v42, %s4485_s24  ;;  %v417_v23 = vsel %vm4682_vm12, %v409_v10, %v416_v45  ;;  %v683_v3 = vsel %vm4697_vm13, %v418_v53, %v682_v4  ;;  %v1897_v21 = vrot.slane %v1895_v62, 4  ;;  %v1898_v25 = vrot.slane %v1405_v56, 5  ;;  %v685_v10 = vld [vmem:[#allocation2 + $0x54] sm:$0xf]  ;;  %v5053_v18 = vld [vmem:[#allocation2] sm:$0xf] }
  0x91   : > { %681 = vst.msk [vmem:[#allocation2 + $0x4c] sm:$0xf] %vm226_vm0, %v417_v23  ;;  %684 = vst [vmem:[#allocation2 + $0x50] sm:$0x1] %v683_v3  ;;  %v1521_v11 = vrot.slane %v1520_v57, 4  ;;  %v1530_v9 = vor.u32 %v1529_v54, %v1525_v61  ;;  %v420_v12 = vshrl.u32 %v294_v6, 16  ;;  %v1896_v40 = vsel %vm4654_vm7, %v4116_v8, %v1895_v62 }
  0x92   : > { %2882 = vrot.lane.b32.xlu0 %v4196_v55, %s4487_s26  ;;  %v428_v26 = vshrl.u32 %v295_v24, 16  ;;  %v423_v47 = vshll.u32 %v294_v6, 16  ;;  %v431_v16 = vshll.u32 %v295_v24, 16  ;;  %v437_v32 = vshrl.u32 %v5034_v7, 16 }
  0x93   : > { %v1526_v27 = vsel %vm4674_vm11, %v1521_v11, %v1525_v61  ;;  %v1531_v14 = vrot.slane %v1530_v9, 4  ;;  %v422_v30 = vrot.slane %v420_v12, 7  ;;  %v440_v43 = vshll.u32 %v5034_v7, 16  ;;  %v689_v9 = vld [vmem:[#allocation2 + $0x5c] sm:$0x1] }
  0x94   : > { %v5039_v35 = vrot.slane %v428_v26, 7  ;;  %v1899_v41 = vsel %vm4654_vm7, %v1897_v21, %v1898_v25  ;;  %v4144_v55 = vcombine.low %v5053_v18, %v5051_v49  ;;  %vm3674_vm3 = vcmask 1047552  }
  0x95   : > { %v1379_v33 = vld [vmem:[#allocation2 + $0x48] sm:$0xf]  ;;  %v1536_v48 = vsel %vm4674_vm11, %v1531_v14, %v1535_v5  ;;  %v425_v2 = vor.u32 %v423_v47, %v422_v30  ;;  %v426_v28 = vrot.slane %v422_v30, 4  ;;  %v4228_v39 = vcombine.low %v1896_v40, %v1899_v41 }
  0x96   : > { %v1806_v37 = vld [vmem:[#allocation2 + $0x48] sm:$0xe]  ;;  %v1538_v42 = vshrl.u32 %v1379_v33, 16  ;;  %v1541_v59 = vshll.u32 %v1379_v33, 16  ;;  %v4212_v60 = vcombine.low %v1526_v27, %v1536_v48  ;;  %v433_v17 = vor.u32 %v431_v16, %v5039_v35 }
  0x97   : > { %v1986_v22 = vld [vmem:[#allocation2 + $0x48] sm:$0xf]  ;;  %v4117_v15 = vrot.slane %v1806_v37, 9  ;;  %v686_v23 = vsel %vm4668_vm10, %v425_v2, %v685_v10  ;;  %v435_v30 = vrot.slane %v5039_v35, 4  ;;  %vm3437_vm4 = vcmask 228352  }
  0x98   : > { %v2123_v19 = vshrl.u32 %v1986_v22, 16  ;;  %v1380_v56 = vld [vmem:[#allocation2 + $0x4c] sm:$0xf]  ;;  %v1540_v29 = vrot.slane %v1538_v42, 4  ;;  %v1543_v50 = vrot.slane %v1541_v59, 5  ;;  %2962 = vrot.lane.b32.xlu0 %v4212_v60, %s4491_s30  ;;  %v434_v57 = vsel %vm4682_vm12, %v426_v28, %v433_v17 }
  0x99   : > { %v1406_v51 = vld [vmem:[#allocation2 + $0x50] sm:$0x1]  ;;  %v1551_v4 = vshrl.u32 %v1380_v56, 16  ;;  %v4197_v38 = vcombine.low %v1379_v33, %v1380_v56  ;;  %v1547_v46 = vshll.u32 %v1380_v56, 16  ;;  %v1902_v54 = vrot.slane %v1380_v56, 5 }
  0x9a   : > { %v1557_v45 = vshll.u32 %v1406_v51, 16  ;;  %v1544_v53 = vor.u32 %v1543_v50, %v1540_v29  ;;  %v1905_v52 = vrot.slane %v1406_v51, 5  ;;  %v5059_v61 = vld [vmem:[#allocation2 + $0x4c] sm:$0xf]  ;;  %688 = vst.msk [vmem:[#allocation2 + $0x58] sm:$0xf] %vm226_vm0, %v434_v57 }
  0x9b   : > { %2884 = vrot.lane.b32.xlu1 %v4197_v38, %s4487_s26  ;;  %v1549_v62 = vrot.slane %v1547_v46, 5  ;;  %v1553_v6 = vrot.slane %v1551_v4, 4  ;;  %v1903_v5 = vsel %vm4654_vm7, %v4117_v15, %v1902_v54  ;;  %v1904_v8 = vrot.slane %v1902_v54, 4  ;;  %687 = vst [vmem:[#allocation2 + $0x54] sm:$0xf] %v686_v23 }
  0x9c   : > { %v1559_v24 = vrot.slane %v1557_v45, 5  ;;  %v1545_v3 = vrot.slane %v1544_v53, 4  ;;  %3042 = vrot.lane.b32.xlu0 %v4228_v39, %s4489_s28  ;;  %v2125_v11 = vrot.slane %v2123_v19, 4  ;;  %v2126_v25 = vshll.u32 %v1986_v22, 16  ;;  %v5070_v27 = vld [vmem:[#allocation2 + $0x50] sm:$0x1] }
  0x9d   : > { %v1554_v21 = vor.u32 %v1553_v6, %v1549_v62  ;;  %v2136_v12 = vshrl.u32 %v5059_v61, 16  ;;  %v4244_v26 = vcombine.low %v1986_v22, %v5059_v61  ;;  %v767_v14 = vld [vmem:[#allocation2 + $0x48] sm:$0xf]  ;;  %v1906_v16 = vsel %vm4654_vm7, %v1904_v8, %v1905_v52  ;;  %v5078_v48 = vld [vmem:[#allocation2 + $0x4c] sm:$0xf] }
  0x9e   : > { %v1550_v47 = vsel %vm4674_vm11, %v1545_v3, %v1549_v62  ;;  %v2132_v33 = vshll.u32 %v5059_v61, 16  ;;  %v4229_v40 = vcombine.low %v1903_v5, %v1906_v16  ;;  %v2128_v41 = vrot.slane %v2126_v25, 5  ;;  %v2414_v3 = vld [vmem:[#allocation2 + $0x48] sm:$0xe] }
  0x9f   : > { %v1555_v37 = vrot.slane %v1554_v21, 4  ;;  %v2138_v42 = vrot.slane %v2136_v12, 4  ;;  %v690_v22 = vsel %vm4697_vm13, %v435_v30, %v689_v9  ;;  %v2142_v60 = vshll.u32 %v5070_v27, 16  ;;  %v5099_v21 = vpop.permute.xlu0 %2698 }
  0xa0   : > { %3138 = vrot.lane.b32.xlu0 %v4244_v26, %s4488_s27  ;;  %v2134_v59 = vrot.slane %v2132_v33, 5  ;;  %v951_v15 = vshrl.u32 %v767_v14, 16  ;;  %691 = vst [vmem:[#allocation2 + $0x5c] sm:$0x1] %v690_v22  ;;  %v2129_v2 = vor.u32 %v2128_v41, %v2125_v11  ;;  %v954_v28 = vshll.u32 %v767_v14, 16 }
  0xa1   : > { %v1560_v35 = vsel %vm4674_vm11, %v1555_v37, %v1559_v24  ;;  %v960_v17 = vshll.u32 %v5078_v48, 16  ;;  %v5087_v19 = vld [vmem:[#allocation2 + $0x58] sm:$0xf]  ;;  %v2144_v29 = vrot.slane %v2142_v60, 5  ;;  %v5095_v24 = vld [vmem:[#allocation2 + $0x50] sm:$0x1] }
  0xa2   : > { %v4213_v10 = vcombine.low %v1550_v47, %v1560_v35  ;;  %v2139_v56 = vor.u32 %v2138_v42, %v2134_v59  ;;  %v953_v50 = vrot.slane %v951_v15, 4  ;;  %v1988_v51 = vld [vmem:[#allocation2 + $0x54] sm:$0xf]  ;;  %v2160_v39 = vshrl.u32 %v5087_v19, 16  ;;  %v5107_v42 = vpop.permute.xlu1 %2778 }
  0xa3   : > { %v2156_v4 = vshll.u32 %v5087_v19, 16  ;;  %v2130_v38 = vrot.slane %v2129_v2, 4  ;;  %v956_v46 = vrot.slane %v954_v28, 5  ;;  %v2147_v45 = vshrl.u32 %v1988_v51, 16  ;;  %v769_v47 = vld [vmem:[#allocation2 + $0x54] sm:$0xf] }
  0xa4   : > { %2964 = vrot.lane.b32.xlu1 %v4213_v10, %s4491_s30  ;;  %v2150_v53 = vshll.u32 %v1988_v51, 16  ;;  %v4245_v54 = vcombine.low %v1988_v51, %v5087_v19  ;;  %v2140_v52 = vrot.slane %v2139_v56, 4  ;;  %v2162_v62 = vrot.slane %v2160_v39, 4 }
  0xa5   : > { %v2158_v57 = vrot.slane %v2156_v4, 5  ;;  %v2135_v6 = vsel %vm4674_vm11, %v2130_v38, %v2134_v59  ;;  %v957_v23 = vor.u32 %v956_v46, %v953_v50  ;;  %v2149_v5 = vrot.slane %v2147_v45, 4  ;;  %v2415_v50 = vld [vmem:[#allocation2 + $0x54] sm:$0xe] }
  0xa6   : > { %v2152_v8 = vrot.slane %v2150_v53, 5  ;;  %v2145_v11 = vsel %vm4674_vm11, %v2140_v52, %v2144_v29  ;;  %v962_v9 = vrot.slane %v960_v17, 5  ;;  %v964_v14 = vshrl.u32 %v5078_v48, 16 }
  0xa7   : > { %v2163_v25 = vor.u32 %v2162_v62, %v2158_v57  ;;  %v4260_v12 = vcombine.low %v2135_v6, %v2145_v11  ;;  %v958_v26 = vrot.slane %v957_v23, 4  ;;  %v5103_v16 = vld [vmem:[#allocation2 + $0x5c] sm:$0x1]  ;;  %v970_v33 = vshll.u32 %v5095_v24, 16 }
  0xa8   : > { %3044 = vrot.lane.b32.xlu1 %v4229_v40, %s4489_s28  ;;  %v2153_v30 = vor.u32 %v2152_v8, %v2149_v5  ;;  %v4132_v37 = vrot.slane %v2414_v3, 9  ;;  %v2504_v41 = vrot.slane %v5059_v61, 5  ;;  %v2166_v59 = vshll.u32 %v5103_v16, 16  ;;  %v770_v40 = vld [vmem:[#allocation2 + $0x58] sm:$0xf] }
  0xa9   : > { %v2164_v22 = vrot.slane %v2163_v25, 4  ;;  %3218 = vrot.lane.b32.xlu0 %v4260_v12, %s4492_s6  ;;  %v963_v60 = vsel %vm4674_vm11, %v958_v26, %v962_v9  ;;  %v966_v15 = vrot.slane %v964_v14, 4  ;;  %v972_v2 = vrot.slane %v970_v33, 5  ;;  %v794_v39 = vld [vmem:[#allocation2 + $0x5c] sm:$0x1] }
  0xaa   : > { %v2154_v35 = vrot.slane %v2153_v30, 4  ;;  %v2505_v28 = vsel %vm4654_vm7, %v4132_v37, %v2504_v41  ;;  %v2506_v17 = vrot.slane %v2504_v41, 4  ;;  %v2168_v10 = vrot.slane %v2166_v59, 5  ;;  %v1197_v5 = vld [vmem:[#allocation2 + $0x54] sm:$0xe] }
  0xab   : > { %v967_v61 = vor.u32 %v966_v15, %v962_v9  ;;  %v2507_v56 = vrot.slane %v5070_v27, 5  ;;  %v975_v29 = vshrl.u32 %v769_v47, 16  ;;  %v978_v4 = vshll.u32 %v769_v47, 16  ;;  %v5119_v45 = vpop.permute.xlu0 %2874  ;;  %v1196_v30 = vld [vmem:[#allocation2 + $0x48] sm:$0xe] }
  0xac   : > { %3140 = vrot.lane.b32.xlu1 %v4245_v54, %s4488_s27  ;;  %v2159_v51 = vsel %vm4674_vm11, %v2154_v35, %v2158_v57  ;;  %v984_v38 = vshll.u32 %v770_v40, 16  ;;  %v988_v46 = vshrl.u32 %v770_v40, 16  ;;  %v2169_v53 = vsel %vm4674_vm11, %v2164_v22, %v2168_v10  ;;  %v5125_v57 = vpop.permute.xlu1 %2876 }
  0xad   : > { %v968_v52 = vrot.slane %v967_v61, 4  ;;  %v2508_v27 = vsel %vm4654_vm7, %v2506_v17, %v2507_v56  ;;  %v977_v62 = vrot.slane %v975_v29, 4  ;;  %v4261_v6 = vcombine.low %v2159_v51, %v2169_v53  ;;  %v297_v29 = vld [vmem:[%s4652_s23 + $0x3c] sm:$0xf]  ;;  %v5155_v53 = vld [vmem:[#allocation2 + $0x58] sm:$0xf] }
  0xae   : > { %v4276_v23 = vcombine.low %v2505_v28, %v2508_v27  ;;  %v980_v54 = vrot.slane %v978_v4, 5  ;;  %v986_v3 = vrot.slane %v984_v38, 5  ;;  %v990_v11 = vrot.slane %v988_v46, 4  ;;  %v1381_v46 = vld [vmem:[#allocation2 + $0x54] sm:$0xf] }
  0xaf   : > { %v973_v8 = vsel %vm4674_vm11, %v968_v52, %v972_v2  ;;  %v994_v9 = vshll.u32 %v794_v39, 16  ;;  %v4133_v25 = vrot.slane %v2415_v50, 9  ;;  %v2511_v14 = vrot.slane %v5087_v19, 5  ;;  %v5133_v33 = vpop.permute.xlu0 %3130 }
  0xb0   : > { %3220 = vrot.lane.b32.xlu1 %v4261_v6, %s4492_s6  ;;  %v4166_v12 = vcombine.low %v963_v60, %v973_v8  ;;  %3298 = vrot.lane.b32.xlu0 %v4276_v23, %s4490_s29  ;;  %v981_v26 = vor.u32 %v980_v54, %v977_v62  ;;  %v2514_v47 = vrot.slane %v5103_v16, 5  ;;  %v991_v37 = vor.u32 %v990_v11, %v986_v3  ;;  %v5147_v50 = vpop.permute.xlu1 %3132  ;;  %v692_v62 = vld [vmem:[#allocation2 + $0x60] sm:$0xf]  ;;  %v5161_v6 = vld [vmem:[#allocation2 + $0x10] sm:$0xf] }
  0xb1   : > { %v996_v41 = vrot.slane %v994_v9, 5  ;;  %v4103_v22 = vrot.slane %v1197_v5, 9  ;;  %v1308_v59 = vrot.slane %v770_v40, 5  ;;  %v2512_v35 = vsel %vm4654_vm7, %v4133_v25, %v2511_v14  ;;  %v5163_v23 = vld [vmem:[#allocation2 + $0xc] sm:$0xf] }
  0xb2   : > { %v982_v15 = vrot.slane %v981_v26, 4  ;;  %v2513_v60 = vrot.slane %v2511_v14, 4  ;;  %v1311_v2 = vrot.slane %v794_v39, 5  ;;  %v992_v28 = vrot.slane %v991_v37, 4  ;;  %v5174_v26 = vld [vmem:[#allocation2 + $0x5c] sm:$0x1] }
  0xb3   : > { %v1309_v19 = vsel %vm4654_vm7, %v4103_v22, %v1308_v59  ;;  %v1310_v17 = vrot.slane %v1308_v59, 4  ;;  %v4102_v16 = vrot.slane %v1196_v30, 9  ;;  %v1301_v61 = vrot.slane %v5078_v48, 5  ;;  %v5157_v52 = vpop.permute.xlu0 %3034  ;;  %v696_v22 = vld [vmem:[#allocation2 + $0x68] sm:$0x1] }
  0xb4   : > { %2710 = vrot.lane.b32.xlu1 %v4166_v12, %s4486_s25  ;;  %v987_v10 = vsel %vm4674_vm11, %v982_v15, %v986_v3  ;;  %v2515_v40 = vsel %vm4654_vm7, %v2513_v60, %v2514_v47  ;;  %v1304_v56 = vrot.slane %v5095_v24, 5  ;;  %v997_v51 = vsel %vm4674_vm11, %v992_v28, %v996_v41 }
  0xb5   : > { %v4277_v39 = vcombine.low %v2512_v35, %v2515_v40  ;;  %v1312_v4 = vsel %vm4654_vm7, %v1310_v17, %v1311_v2  ;;  %v439_v38 = vrot.slane %v437_v32, 7  ;;  %v4167_v48 = vcombine.low %v987_v10, %v997_v51  ;;  %v298_v17 = vld [vmem:[%s4652_s23 + $0x40] sm:$0xf] }
  0xb6   : > { %v1302_v24 = vsel %vm4654_vm7, %v4102_v16, %v1301_v61  ;;  %v1303_v27 = vrot.slane %v1301_v61, 4  ;;  %v4145_v54 = vcombine.low %v5163_v23, %v5161_v6  ;;  %v4183_v32 = vcombine.low %v1309_v19, %v1312_v4  ;;  %v5179_v35 = vpop.permute.xlu1 %2780 }
  0xb7   : > { %3300 = vrot.lane.b32.xlu0 %v4277_v39, %s4490_s29  ;;  %v442_v3 = vor.u32 %v440_v43, %v439_v38  ;;  %v445_v5 = vshrl.u32 %v297_v29, 16  ;;  %v448_v8 = vshll.u32 %v297_v29, 16  ;;  %v1562_v9 = vshrl.u32 %v1381_v46, 16  ;;  %v1807_v43 = vld [vmem:[#allocation2 + $0x54] sm:$0xe]  ;;  %v5185_v16 = vpop.permute.xlu0 %3290 }
  0xb8   : > { %2712 = vrot.lane.b32.xlu1 %v4167_v48, %s4486_s25  ;;  %v1305_v11 = vsel %vm4654_vm7, %v1303_v27, %v1304_v56  ;;  %v1565_v25 = vshll.u32 %v1381_v46, 16  ;;  %v1575_v12 = vshrl.u32 %v5155_v53, 16  ;;  %v443_v47 = vrot.slane %v439_v38, 4  ;;  %v299_v29 = vld [vmem:[%s4652_s23 + $0x44] sm:$0xf] }
  0xb9   : > { %v4182_v14 = vcombine.low %v1302_v24, %v1305_v11  ;;  %v447_v30 = vrot.slane %v445_v5, 7  ;;  %v693_v7 = vsel %vm4668_vm10, %v442_v3, %v692_v62  ;;  %v1564_v37 = vrot.slane %v1562_v9, 4  ;;  %v5199_v3 = vld [vmem:[#allocation2 + $0x1c] sm:$0xf] }
  0xba   : > { %694 = vst [vmem:[#allocation2 + $0x60] sm:$0xf] %v693_v7  ;;  %v1567_v41 = vrot.slane %v1565_v25, 5  ;;  %v1571_v59 = vshll.u32 %v5155_v53, 16  ;;  %v1577_v15 = vrot.slane %v1575_v12, 4  ;;  %v4198_v2 = vcombine.low %v1381_v46, %v5155_v53  ;;  %v5205_v25 = vpop.permute.xlu1 %3036 }
  0xbb   : > { %2790 = vrot.lane.b32.xlu0 %v4182_v14, %s4485_s24  ;;  %v450_v60 = vor.u32 %v448_v8, %v447_v30  ;;  %v452_v28 = vrot.slane %v447_v30, 4  ;;  %v1581_v19 = vshll.u32 %v5174_v26, 16  ;;  %v4118_v61 = vrot.slane %v1807_v43, 9  ;;  %v5207_v12 = vld [vmem:[#allocation2 + $0x24] sm:$0xf] }
  0xbc   : > { %2792 = vrot.lane.b32.xlu1 %v4183_v32, %s4485_s24  ;;  %v1568_v10 = vor.u32 %v1567_v41, %v1564_v37  ;;  %v1573_v40 = vrot.slane %v1571_v59, 5  ;;  %v1909_v56 = vrot.slane %v5155_v53, 5  ;;  %v1912_v38 = vrot.slane %v5174_v26, 5  ;;  %v5197_v32 = vld [vmem:[#allocation2 + $0x18] sm:$0xf] }
  0xbd   : > { %v451_v51 = vsel %vm4682_vm12, %v443_v47, %v450_v60  ;;  %v697_v39 = vsel %vm4697_vm13, %v452_v28, %v696_v22  ;;  %v1583_v4 = vrot.slane %v1581_v19, 5  ;;  %v454_v53 = vshrl.u32 %v298_v17, 16  ;;  %v5209_v26 = vld [vmem:[#allocation2 + $0x28] sm:$0xf]  ;;  %v699_v41 = vld [vmem:[#allocation2 + $0x6c] sm:$0xf]  ;;  %v5222_v22 = vpop.permute.xlu0 %3292 }
  0xbe   : > { %695 = vst.msk [vmem:[#allocation2 + $0x64] sm:$0xf] %vm226_vm0, %v451_v51  ;;  %698 = vst [vmem:[#allocation2 + $0x68] sm:$0x1] %v697_v39  ;;  %v1569_v46 = vrot.slane %v1568_v10, 4  ;;  %v1578_v48 = vor.u32 %v1577_v15, %v1573_v40  ;;  %v1911_v24 = vrot.slane %v1909_v56, 4  ;;  %v1910_v30 = vsel %vm4654_vm7, %v4118_v61, %v1909_v56 }
  0xbf   : > { %2886 = vrot.lane.b32.xlu0 %v4198_v2, %s4487_s26  ;;  %v457_v27 = vshll.u32 %v298_v17, 16  ;;  %v462_v62 = vshrl.u32 %v299_v29, 16  ;;  %v465_v9 = vshll.u32 %v299_v29, 16  ;;  %v3325_v7 = vsel %vm3322_vm14, %v4144_v55, %v5099_v21 }
  0xc0   : > { %v1574_v8 = vsel %vm4674_vm11, %v1569_v46, %v1573_v40  ;;  %v1579_v11 = vrot.slane %v1578_v48, 4  ;;  %v456_v43 = vrot.slane %v454_v53, 7  ;;  %v1913_v28 = vsel %vm4654_vm7, %v1911_v24, %v1912_v38 }
  0xc1   : > { %v1383_v47 = vld [vmem:[#allocation2 + $0x60] sm:$0xf]  ;;  %v5220_v37 = vrot.slane %v462_v62, 7  ;;  %v4230_v39 = vcombine.low %v1910_v30, %v1913_v28  ;;  %v5237_v62 = vpop.permute.xlu1 %2956  ;;  %vm3470_vm5 = vcmask 285696   ;;  %vm3503_vm6 = vcmask 343040  }
  0xc2   : > { %v1586_v59 = vshrl.u32 %v1383_v47, 16  ;;  %v1589_v15 = vshll.u32 %v1383_v47, 16  ;;  %v1584_v60 = vsel %vm4674_vm11, %v1579_v11, %v1583_v4  ;;  %v1808_v2 = vld [vmem:[#allocation2 + $0x60] sm:$0xe]  ;;  %v459_v49 = vor.u32 %v457_v27, %v456_v43 }
  0xc3   : > { %v1990_v19 = vld [vmem:[#allocation2 + $0x60] sm:$0xf]  ;;  %v4214_v17 = vcombine.low %v1574_v8, %v1584_v60  ;;  %v460_v18 = vrot.slane %v456_v43, 4  ;;  %v467_v55 = vor.u32 %v465_v9, %v5220_v37  ;;  %v4119_v51 = vrot.slane %v1808_v2, 9 }
  0xc4   : > { %v1588_v21 = vrot.slane %v1586_v59, 4  ;;  %v1591_v10 = vrot.slane %v1589_v15, 5  ;;  %v2171_v40 = vshrl.u32 %v1990_v19, 16  ;;  %v2174_v61 = vshll.u32 %v1990_v19, 16 }
  0xc5   : > { %v1384_v56 = vld [vmem:[#allocation2 + $0x64] sm:$0xf]  ;;  %v1408_v29 = vld [vmem:[#allocation2 + $0x68] sm:$0x1]  ;;  %2966 = vrot.lane.b32.xlu0 %v4214_v17, %s4491_s30  ;;  %v468_v4 = vsel %vm4682_vm12, %v460_v18, %v467_v55  ;;  %v700_v38 = vsel %vm4668_vm10, %v459_v49, %v699_v41  ;;  %v2701_v43 = vpop.permute.xlu0 %2700  ;;  %vm3536_vm8 = vcmask 400384   ;;  %vm3569_vm9 = vcmask 457728  }
  0xc6   : > { %v1599_v46 = vshrl.u32 %v1384_v56, 16  ;;  %v4199_v48 = vcombine.low %v1383_v47, %v1384_v56  ;;  %v1592_v24 = vor.u32 %v1591_v10, %v1588_v21  ;;  %v1595_v53 = vshll.u32 %v1384_v56, 16  ;;  %701 = vst [vmem:[#allocation2 + $0x6c] sm:$0xf] %v700_v38  ;;  %702 = vst.msk [vmem:[#allocation2 + $0x70] sm:$0xf] %vm226_vm0, %v468_v4  ;;  %v5261_v38 = vpop.permute.xlu1 %3212 }
  0xc7   : > { %v5235_v27 = vld [vmem:[#allocation2 + $0x64] sm:$0xf]  ;;  %v1605_v8 = vshll.u32 %v1408_v29, 16  ;;  %v1916_v11 = vrot.slane %v1384_v56, 5  ;;  %v1919_v9 = vrot.slane %v1408_v29, 5  ;;  %v2173_v30 = vrot.slane %v2171_v40, 4 }
  0xc8   : > { %2888 = vrot.lane.b32.xlu1 %v4199_v48, %s4487_s26  ;;  %v1593_v59 = vrot.slane %v1592_v24, 4  ;;  %v1597_v41 = vrot.slane %v1595_v53, 5  ;;  %v1601_v15 = vrot.slane %v1599_v46, 4  ;;  %v2176_v47 = vrot.slane %v2174_v61, 5  ;;  %v703_v21 = vld [vmem:[#allocation2 + $0x74] sm:$0x1] }
  0xc9   : > { %v5242_v60 = vsel %vm4654_vm7, %v4119_v51, %v1916_v11  ;;  %v1918_v2 = vrot.slane %v1916_v11, 4  ;;  %3046 = vrot.lane.b32.xlu0 %v4230_v39, %s4489_s28  ;;  %v2184_v28 = vshrl.u32 %v5235_v27, 16  ;;  %v1607_v18 = vrot.slane %v1605_v8, 5  ;;  %v771_v4 = vld [vmem:[#allocation2 + $0x60] sm:$0xf] }
  0xca   : > { %v1602_v49 = vor.u32 %v1601_v15, %v1597_v41  ;;  %v4246_v55 = vcombine.low %v1990_v19, %v5235_v27  ;;  %v1598_v10 = vsel %vm4674_vm11, %v1593_v59, %v1597_v41  ;;  %v469_v61 = vrot.slane %v5220_v37, 4  ;;  %v5284_v59 = vld [vmem:[#allocation2 + $0x68] sm:$0x1] }
  0xcb   : > { %v1920_v40 = vsel %vm4654_vm7, %v1918_v2, %v1919_v9  ;;  %v5259_v39 = vsel %vm3371_vm15, %v3325_v7, %v5107_v42  ;;  %v2177_v19 = vor.u32 %v2176_v47, %v2173_v30  ;;  %v2180_v24 = vshll.u32 %v5235_v27, 16 }
  0xcc   : > { %v1603_v29 = vrot.slane %v1602_v49, 4  ;;  %v4231_v51 = vcombine.low %v5242_v60, %v1920_v40  ;;  %v704_v37 = vsel %vm4697_vm13, %v469_v61, %v703_v21  ;;  %v2186_v53 = vrot.slane %v2184_v28, 4  ;;  %v5277_v7 = vpop.permute.xlu0 %2954  ;;  %v5295_v61 = vld [vmem:[#allocation2 + $0x68] sm:$0x1] }
  0xcd   : > { %v5263_v46 = vld [vmem:[#allocation2 + $0x6c] sm:$0xf]  ;;  %v5265_v48 = vld [vmem:[#allocation2 + $0x70] sm:$0xf]  ;;  %3142 = vrot.lane.b32.xlu0 %v4246_v55, %s4488_s27  ;;  %v5275_v42 = vsel %vm3322_vm14, %v4145_v54, %v2701_v43  ;;  %705 = vst [vmem:[#allocation2 + $0x74] sm:$0x1] %v704_v37 }
  0xce   : > { %v1608_v8 = vsel %vm4674_vm11, %v1603_v29, %v1607_v18  ;;  %v2195_v11 = vshrl.u32 %v5263_v46, 16  ;;  %v2198_v9 = vshll.u32 %v5263_v46, 16  ;;  %v2208_v30 = vshrl.u32 %v5265_v48, 16  ;;  %v5289_v43 = vld [vmem:[#allocation2 + $0x64] sm:$0xf] }
  0xcf   : > { %v4215_v41 = vcombine.low %v1598_v10, %v1608_v8  ;;  %v4247_v6 = vcombine.low %v5263_v46, %v5265_v48  ;;  %v2204_v23 = vshll.u32 %v5265_v48, 16  ;;  %v2178_v54 = vrot.slane %v2177_v19, 4  ;;  %v2416_v19 = vld [vmem:[#allocation2 + $0x60] sm:$0xe]  ;;  %v5298_v46 = vpop.permute.xlu1 %2702  ;;  %v774_v17 = vld [vmem:[#allocation2 + $0x70] sm:$0xf] }
  0xd0   : > { %v2197_v15 = vrot.slane %v2195_v11, 4  ;;  %v2200_v47 = vrot.slane %v2198_v9, 5  ;;  %v2210_v60 = vrot.slane %v2208_v30, 4  ;;  %v2182_v2 = vrot.slane %v2180_v24, 5 }
  0xd1   : > { %2968 = vrot.lane.b32.xlu1 %v4215_v41, %s4491_s30  ;;  %v2206_v28 = vrot.slane %v2204_v23, 5  ;;  %v2190_v49 = vshll.u32 %v5284_v59, 16  ;;  %v999_v18 = vshrl.u32 %v771_v4, 16  ;;  %v1002_v55 = vshll.u32 %v771_v4, 16 }
  0xd2   : > { %v2201_v21 = vor.u32 %v2200_v47, %v2197_v15  ;;  %v2183_v10 = vsel %vm4674_vm11, %v2178_v54, %v2182_v2  ;;  %v2187_v40 = vor.u32 %v2186_v53, %v2182_v2  ;;  %v1008_v29 = vshll.u32 %v5289_v43, 16  ;;  %v5300_v9 = vpop.permute.xlu0 %3210  ;;  %v773_v54 = vld [vmem:[#allocation2 + $0x6c] sm:$0xf] }
  0xd3   : > { %v2211_v37 = vor.u32 %v2210_v60, %v2206_v28  ;;  %v2192_v24 = vrot.slane %v2190_v49, 5  ;;  %v1001_v8 = vrot.slane %v999_v18, 4  ;;  %v1004_v11 = vrot.slane %v1002_v55, 5 }
  0xd4   : > { %v2202_v30 = vrot.slane %v2201_v21, 4  ;;  %v2188_v4 = vrot.slane %v2187_v40, 4  ;;  %v1010_v41 = vrot.slane %v1008_v29, 5  ;;  %v1012_v23 = vshrl.u32 %v5289_v43, 16  ;;  %v5304_v53 = vld [vmem:[#allocation2 + $0x74] sm:$0x1] }
  0xd5   : > { %3048 = vrot.lane.b32.xlu1 %v4231_v51, %s4489_s28  ;;  %v2212_v15 = vrot.slane %v2211_v37, 4  ;;  %v1005_v47 = vor.u32 %v1004_v11, %v1001_v8  ;;  %v1018_v2 = vshll.u32 %v5295_v61, 16  ;;  %v4134_v60 = vrot.slane %v2416_v19, 9 }
  0xd6   : > { %v2207_v49 = vsel %vm4674_vm11, %v2202_v30, %v2206_v28  ;;  %v2214_v18 = vshll.u32 %v5304_v53, 16  ;;  %v2193_v55 = vsel %vm4674_vm11, %v2188_v4, %v2192_v24  ;;  %v1014_v21 = vrot.slane %v1012_v23, 4  ;;  %v5313_v37 = vpop.permute.xlu0 %2782  ;;  %v5316_v28 = vpop.permute.xlu1 %2704  ;;  %v796_v30 = vld [vmem:[#allocation2 + $0x74] sm:$0x1] }
  0xd7   : > { %v4262_v40 = vcombine.low %v2183_v10, %v2193_v55  ;;  %v1006_v29 = vrot.slane %v1005_v47, 4  ;;  %v1020_v0 = vrot.slane %v1018_v2, 5  ;;  %v2518_v51 = vrot.slane %v5235_v27, 5 }
  0xd8   : > { %v2216_v8 = vrot.slane %v2214_v18, 5  ;;  %v1015_v11 = vor.u32 %v1014_v21, %v1010_v41  ;;  %v2521_v19 = vrot.slane %v5284_v59, 5  ;;  %v1023_v56 = vshrl.u32 %v773_v54, 16  ;;  %v2417_v18 = vld [vmem:[#allocation2 + $0x6c] sm:$0xe] }
  0xd9   : > { %3144 = vrot.lane.b32.xlu1 %v4247_v6, %s4488_s27  ;;  %3222 = vrot.lane.b32.xlu0 %v4262_v40, %s4492_s6  ;;  %v1011_v10 = vsel %vm4674_vm11, %v1006_v29, %v1010_v41  ;;  %v2519_v27 = vsel %vm4654_vm7, %v4134_v60, %v2518_v51  ;;  %v2520_v24 = vrot.slane %v2518_v51, 4  ;;  %v1026_v4 = vshll.u32 %v773_v54, 16  ;;  %v1199_v41 = vld [vmem:[#allocation2 + $0x6c] sm:$0xe] }
  0xda   : > { %v2217_v23 = vsel %vm4674_vm11, %v2212_v15, %v2216_v8  ;;  %v1016_v59 = vrot.slane %v1015_v11, 4  ;;  %v1025_v47 = vrot.slane %v1023_v56, 4  ;;  %v1032_v2 = vshll.u32 %v774_v17, 16  ;;  %v5328_v29 = vpop.permute.xlu0 %2878  ;;  %v1198_v11 = vld [vmem:[#allocation2 + $0x60] sm:$0xe]  ;;  %v5336_v5 = vpop.permute.xlu1 %2784 }
  0xdb   : > { %v4263_v55 = vcombine.low %v2207_v49, %v2217_v23  ;;  %v2522_v6 = vsel %vm4654_vm7, %v2520_v24, %v2521_v19  ;;  %v1028_v21 = vrot.slane %v1026_v4, 5  ;;  %v1036_v40 = vshrl.u32 %v774_v17, 16 }
  0xdc   : > { %v1021_v60 = vsel %vm4674_vm11, %v1016_v59, %v1020_v0  ;;  %v4278_v54 = vcombine.low %v2519_v27, %v2522_v6  ;;  %v1034_v51 = vrot.slane %v1032_v2, 5  ;;  %v1042_v14 = vshll.u32 %v796_v30, 16 }
  0xdd   : > { %3224 = vrot.lane.b32.xlu1 %v4263_v55, %s4492_s6  ;;  %v4168_v56 = vcombine.low %v1011_v10, %v1021_v60  ;;  %v1029_v15 = vor.u32 %v1028_v21, %v1025_v47  ;;  %v1038_v8 = vrot.slane %v1036_v40, 4  ;;  %v4135_v49 = vrot.slane %v2417_v18, 9 }
  0xde   : > { %3302 = vrot.lane.b32.xlu0 %v4278_v54, %s4490_s29  ;;  %v1044_v19 = vrot.slane %v1042_v14, 5  ;;  %v2525_v24 = vrot.slane %v5265_v48, 5  ;;  %v2528_v4 = vrot.slane %v5304_v53, 5  ;;  %v4105_v23 = vrot.slane %v1199_v41, 9  ;;  %v300_v41 = vld [vmem:[%s4652_s23 + $0x48] sm:$0xf] }
  0xdf   : > { %v1030_v0 = vrot.slane %v1029_v15, 4  ;;  %v1039_v27 = vor.u32 %v1038_v8, %v1034_v51  ;;  %v1322_v59 = vrot.slane %v774_v17, 5  ;;  %v1325_v2 = vrot.slane %v796_v30, 5  ;;  %v5338_v10 = vpop.permute.xlu0 %2958  ;;  %v1385_v15 = vld [vmem:[#allocation2 + $0x6c] sm:$0xf] }
  0xe0   : > { %v2526_v47 = vsel %vm4654_vm7, %v4135_v49, %v2525_v24  ;;  %v2527_v18 = vrot.slane %v2525_v24, 4  ;;  %v4104_v55 = vrot.slane %v1198_v11, 9  ;;  %v1315_v14 = vrot.slane %v5289_v43, 5  ;;  %v5364_v24 = vld [vmem:[#allocation2 + $0x70] sm:$0xf] }
  0xe1   : > { %2714 = vrot.lane.b32.xlu1 %v4168_v56, %s4486_s25  ;;  %v1035_v48 = vsel %vm4674_vm11, %v1030_v0, %v1034_v51  ;;  %v1040_v53 = vrot.slane %v1039_v27, 4  ;;  %v1323_v17 = vsel %vm4654_vm7, %v4105_v23, %v1322_v59  ;;  %v1324_v30 = vrot.slane %v1322_v59, 4  ;;  %v301_v56 = vld [vmem:[%s4652_s23 + $0x4c] sm:$0xf] }
  0xe2   : > { %v2529_v6 = vsel %vm4654_vm7, %v2527_v18, %v2528_v4  ;;  %v1316_v21 = vsel %vm4654_vm7, %v4104_v55, %v1315_v14  ;;  %v1317_v40 = vrot.slane %v1315_v14, 4  ;;  %v1318_v43 = vrot.slane %v5295_v61, 5  ;;  %v4428_v61 = vld [vmem:[%s6297_s1 + $0x18] sm:$0xff]  }
  0xe3   : > { %v1045_v60 = vsel %vm4674_vm11, %v1040_v53, %v1044_v19  ;;  %v4279_v54 = vcombine.low %v2526_v47, %v2529_v6  ;;  %v1326_v51 = vsel %vm4654_vm7, %v1324_v30, %v1325_v2  ;;  %v5366_v19 = vpop.permute.xlu1 %2880  ;;  %v5368_v4 = vpop.permute.xlu0 %3038  ;;  %v471_v0 = vshrl.u32 %v300_v41, 16 }
  0xe4   : > { %v4169_v8 = vcombine.low %v1035_v48, %v1045_v60  ;;  %v4185_v49 = vcombine.low %v1323_v17, %v1326_v51  ;;  %v1319_v11 = vsel %vm4654_vm7, %v1317_v40, %v1318_v43  ;;  %v474_v27 = vshll.u32 %v300_v41, 16  ;;  %v706_v40 = vld [vmem:[#allocation2 + $0x78] sm:$0xf]  ;;  %v4431_v41 = vld [vmem:[%s6297_s1 + $0x10] sm:$0xff]  }
  0xe5   : > { %3304 = vrot.lane.b32.xlu0 %v4279_v54, %s4490_s29  ;;  %v4184_v23 = vcombine.low %v1316_v21, %v1319_v11  ;;  %v4493_v59 = vmov 65535   ;;  %v479_v47 = vshrl.u32 %v301_v56, 16  ;;  %v482_v18 = vshll.u32 %v301_v56, 16  ;;  %v710_v56 = vld [vmem:[#allocation2 + $0x80] sm:$0x1] }
  0xe6   : > { %2716 = vrot.lane.b32.xlu1 %v4169_v8, %s4486_s25  ;;  %v3675_v2 = vsel %vm3673_vm2, 4294967295, %v4493_v59  ;;  %v1610_v55 = vshrl.u32 %v1385_v15, 16  ;;  %v473_v48 = vrot.slane %v471_v0, 7  ;;  %v1613_v53 = vshll.u32 %v1385_v15, 16 }
  0xe7   : > { %v3676_v14 = vsel %vm3674_vm3, %v3675_v2, 0  ;;  %v1623_v17 = vshrl.u32 %v5364_v24, 16  ;;  %v481_v6 = vrot.slane %v479_v47, 7  ;;  %v4200_v21 = vcombine.low %v1385_v15, %v5364_v24 }
  0xe8   : > { %v3678_v30 = vand.u32 %v4428_v61, %v3676_v14  ;;  %v1612_v43 = vrot.slane %v1610_v55, 4  ;;  %v476_v60 = vor.u32 %v474_v27, %v473_v48  ;;  %v477_v54 = vrot.slane %v473_v48, 4  ;;  %v1409_v61 = vld [vmem:[#allocation2 + $0x74] sm:$0x1] }
  0xe9   : > { %2794 = vrot.lane.b32.xlu0 %v4184_v23, %s4485_s24  ;;  %v1615_v51 = vrot.slane %v1613_v53, 5  ;;  %v484_v8 = vor.u32 %v482_v18, %v481_v6  ;;  %v3375_v11 = vsel %vm3371_vm15, %v5275_v42, %v5179_v35  ;;  %v486_v15 = vrot.slane %v481_v6, 4  ;;  %v5386_v23 = vpop.permute.xlu0 %3134  ;;  %v1809_v18 = vld [vmem:[#allocation2 + $0x6c] sm:$0xe] }
  0xea   : > { %2796 = vrot.lane.b32.xlu1 %v4185_v49, %s4485_s24  ;;  %4337 = vmatprep.subr.bf16.mxu0 %v3678_v30  ;;  %v1619_v0 = vshll.u32 %v5364_v24, 16  ;;  %v5384_v59 = vpop.permute.xlu1 %2960  ;;  %v707_v27 = vsel %vm4668_vm10, %v476_v60, %v706_v40  ;;  %v3408_v49 = vsel %vm3404_vm1, %v3375_v11, %v5125_v57  ;;  %v1625_v47 = vrot.slane %v1623_v17, 4  ;;  %v4432_v57 = vld [vmem:[%s6297_s1 + $0x8] sm:$0xff]   ;;  %v5412_v40 = vld [vmem:[%s4652_s23 + $0x50] sm:$0xf] }
  0xeb   : > { %4338 = vmatpush3.bf16.msra.mxu0 %v3678_v30  ;;  %v1616_v2 = vor.u32 %v1615_v51, %v1612_v43  ;;  %4382 = vmatprep.subr.bf16.mxu1 %v3678_v30  ;;  %v3406_v35 = vsel %vm3404_vm1, %v5259_v39, %v5119_v45  ;;  %v485_v42 = vsel %vm4682_vm12, %v477_v54, %v484_v8  ;;  %v1629_v48 = vshll.u32 %v1409_v61, 16 }
  0xec   : > { %708 = vst [vmem:[#allocation2 + $0x78] sm:$0xf] %v707_v27  ;;  %4339 = vmatprep.subr.bf16.mxu0 %v4431_v41  ;;  %v711_v55 = vsel %vm4697_vm13, %v486_v15, %v710_v56  ;;  %v1621_v14 = vrot.slane %v1619_v0, 5  ;;  %4386 = vmatpush3.bf16.msra.mxu1 %v3678_v30  ;;  %709 = vst.msk [vmem:[#allocation2 + $0x7c] sm:$0xf] %vm226_vm0, %v485_v42  ;;  %v5406_v45 = vsel %vm3437_vm4, %v3408_v49, %v5237_v62  ;;  %vm3640_vm2 = vcmask 515072  }
  0xed   : > { %2890 = vrot.lane.b32.xlu0 %v4200_v21, %s4487_s26  ;;  %712 = vst [vmem:[#allocation2 + $0x80] sm:$0x1] %v711_v55  ;;  %v1617_v39 = vrot.slane %v1616_v2, 4  ;;  %4383 = vmatprep.subr.bf16.mxu1 %v4431_v41  ;;  %v3439_v17 = vsel %vm3437_vm4, %v3406_v35, %v5277_v7  ;;  %v4120_v6 = vrot.slane %v1809_v18, 9  ;;  %v1923_v30 = vrot.slane %v5364_v24, 5 }
  0xee   : > { %v1626_v53 = vor.u32 %v1625_v47, %v1621_v14  ;;  %v5414_v43 = vpop.permute.xlu1 %3040  ;;  %v1631_v62 = vrot.slane %v1629_v48, 5  ;;  %v6314_v21 = vcombine.low %v5197_v32, %v5199_v3  ;;  %v3472_v7 = vsel %vm3470_vm5, %v3439_v17, %v5157_v52  ;;  %v4433_v32 = vld [vmem:[%s6297_s1] sm:$0xff]   ;;  %v5433_v3 = vld [vmem:[%s4652_s23 + $0x54] sm:$0xf] }
  0xef   : > { %4340 = vmatpush3.bf16.msra.mxu0 %v4431_v41  ;;  %v1926_v54 = vrot.slane %v1409_v61, 5  ;;  %v1622_v24 = vsel %vm4674_vm11, %v1617_v39, %v1621_v14  ;;  %v1924_v56 = vsel %vm4654_vm7, %v4120_v6, %v1923_v30  ;;  %v1925_v8 = vrot.slane %v1923_v30, 4 }
  0xf0   : > { %v5421_v60 = vsel %vm3322_vm14, %v6314_v21, %v5298_v46  ;;  %v1627_v51 = vrot.slane %v1626_v53, 4  ;;  %4341 = vmatprep.subr.bf16.mxu0 %v4432_v57  ;;  %v5435_v46 = vpop.permute.xlu0 %3214  ;;  %4387 = vmatpush3.bf16.msra.mxu1 %v4431_v41  ;;  %v6315_v52 = vcombine.low %v5207_v12, %v5209_v26  ;;  %v488_v15 = vshrl.u32 %v5412_v40, 16 }
  0xf1   : > { %4384 = vmatprep.subr.bf16.mxu1 %v4432_v57  ;;  %v1927_v0 = vsel %vm4654_vm7, %v1925_v8, %v1926_v54  ;;  %v3505_v41 = vsel %vm3503_vm6, %v3472_v7, %v5133_v33  ;;  %v491_v27 = vshll.u32 %v5412_v40, 16  ;;  %v496_v18 = vshrl.u32 %v5433_v3, 16  ;;  %v713_v7 = vld [vmem:[#allocation2 + $0x84] sm:$0xf] }
  0xf2   : > { %v3334_v11 = vsel %vm3322_vm14, %v6315_v52, %v5316_v28  ;;  %v1632_v61 = vsel %vm4674_vm11, %v1627_v51, %v1631_v62  ;;  %v5450_v49 = vpop.permute.xlu1 %3136  ;;  %v4232_v2 = vcombine.low %v1924_v56, %v1927_v0  ;;  %v490_v47 = vrot.slane %v488_v15, 7 }
  0xf3   : > { %v1387_v12 = vld [vmem:[#allocation2 + $0x78] sm:$0xf]  ;;  %v4216_v26 = vcombine.low %v1622_v24, %v1632_v61  ;;  %4342 = vmatpush3.bf16.msra.mxu0 %v4432_v57  ;;  %v1388_v35 = vld [vmem:[#allocation2 + $0x7c] sm:$0xf]  ;;  %v3538_v33 = vsel %vm3536_vm8, %v3505_v41, %v5300_v9  ;;  %v5457_v39 = vsel %vm3371_vm15, %v3334_v11, %v5336_v5  ;;  %v3474_v51 = vsel %vm3470_vm5, %v5406_v45, %v5205_v25 }
  0xf4   : > { %v1810_v28 = vld [vmem:[#allocation2 + $0x78] sm:$0xe]  ;;  %v1634_v42 = vshrl.u32 %v1387_v12, 16  ;;  %v1637_v55 = vshll.u32 %v1387_v12, 16  ;;  %v1410_v14 = vld [vmem:[#allocation2 + $0x80] sm:$0x1]  ;;  %4343 = vmatprep.subr.bf16.mxu0 %v4433_v32  ;;  %4388 = vmatpush3.bf16.msra.mxu1 %v4432_v57  ;;  %v4201_v53 = vcombine.low %v1387_v12, %v1388_v35  ;;  %v493_v11 = vor.u32 %v491_v27, %v490_v47 }
  0xf5   : > { %v1647_v48 = vshrl.u32 %v1388_v35, 16  ;;  %v1643_v17 = vshll.u32 %v1388_v35, 16  ;;  %v1653_v6 = vshll.u32 %v1410_v14, 16  ;;  %2970 = vrot.lane.b32.xlu0 %v4216_v26, %s4491_s30  ;;  %4385 = vmatprep.subr.bf16.mxu1 %v4433_v32  ;;  %v4121_v62 = vrot.slane %v1810_v28, 9  ;;  %v1994_v57 = vld [vmem:[#allocation2 + $0x78] sm:$0xf] }
  0xf6   : > { %v1636_v30 = vrot.slane %v1634_v42, 4  ;;  %v1639_v40 = vrot.slane %v1637_v55, 5  ;;  %v1930_v21 = vrot.slane %v1388_v35, 5  ;;  %v5460_v54 = vpop.permute.xlu0 %3294  ;;  %2892 = vrot.lane.b32.xlu1 %v4201_v53, %s4487_s26  ;;  %v1933_v24 = vrot.slane %v1410_v14, 5  ;;  %v5466_v15 = vpop.permute.xlu1 %3216  ;;  %v5470_v26 = vld [vmem:[#allocation2 + $0x7c] sm:$0xf] }
  0xf7   : > { %v1645_v9 = vrot.slane %v1643_v17, 5  ;;  %v1649_v5 = vrot.slane %v1647_v48, 4  ;;  %4344 = vmatpush3.bf16.msra.mxu0 %v4433_v32  ;;  %v1655_v8 = vrot.slane %v1653_v6, 5  ;;  %v494_v0 = vrot.slane %v490_v47, 4  ;;  %v5488_v6 = vld [vmem:[#allocation2 + $0x80] sm:$0x1] }
  0xf8   : > { %v1640_v56 = vor.u32 %v1639_v40, %v1636_v30  ;;  %v1932_v52 = vrot.slane %v1930_v21, 4  ;;  %4389 = vmatpush3.bf16.msra.mxu1 %v4433_v32  ;;  %v498_v41 = vrot.slane %v496_v18, 7  ;;  %v499_v12 = vshll.u32 %v5433_v3, 16  ;;  %v4468_v1 = vld [vmem:[#allocation2 + $0x78] sm:$0xf] }
  0xf9   : > { %v1650_v61 = vor.u32 %v1649_v5, %v1645_v9  ;;  %3050 = vrot.lane.b32.xlu0 %v4232_v2, %s4489_s28  ;;  %v1931_v25 = vsel %vm4654_vm7, %v4121_v62, %v1930_v21  ;;  %v714_v45 = vsel %vm4668_vm10, %v493_v11, %v713_v7  ;;  %v2219_v27 = vshrl.u32 %v1994_v57, 16  ;;  %v717_v21 = vld [vmem:[#allocation2 + $0x8c] sm:$0x1] }
  0xfa   : > { %v1641_v28 = vrot.slane %v1640_v56, 4  ;;  %v1934_v32 = vsel %vm4654_vm7, %v1932_v52, %v1933_v24  ;;  %v501_v42 = vor.u32 %v499_v12, %v498_v41  ;;  %715 = vst [vmem:[#allocation2 + $0x84] sm:$0xf] %v714_v45  ;;  %v2222_v2 = vshll.u32 %v1994_v57, 16  ;;  %v5496_v7 = vpop.permute.xlu1 %2706  ;;  %v775_v56 = vld [vmem:[#allocation2 + $0x78] sm:$0xf] }
  0xfb   : > { %v1651_v35 = vrot.slane %v1650_v61, 4  ;;  %v2221_v47 = vrot.slane %v2219_v27, 4  ;;  %v2232_v18 = vshrl.u32 %v5470_v26, 16  ;;  %v4248_v55 = vcombine.low %v1994_v57, %v5470_v26 }
  0xfc   : > { %v1646_v3 = vsel %vm4674_vm11, %v1641_v28, %v1645_v9  ;;  %v5482_v14 = vpop.permute.xlu0 %3296  ;;  %v502_v53 = vsel %vm4682_vm12, %v494_v0, %v501_v42  ;;  %v2224_v17 = vrot.slane %v2222_v2, 5  ;;  %v3571_v40 = vsel %vm3569_vm9, %v3538_v33, %v5185_v16  ;;  %v5524_v42 = vld [vmem:[#allocation2 + $0x80] sm:$0x1]  ;;  %v2418_v2 = vld [vmem:[#allocation2 + $0x78] sm:$0xe] }
  0xfd   : > { %v1656_v48 = vsel %vm4674_vm11, %v1651_v35, %v1655_v8  ;;  %716 = vst.msk [vmem:[#allocation2 + $0x88] sm:$0xf] %vm226_vm0, %v502_v53  ;;  %3146 = vrot.lane.b32.xlu0 %v4248_v55, %s4488_s27  ;;  %v3507_v62 = vsel %vm3503_vm6, %v3474_v51, %v5147_v50  ;;  %v4233_v9 = vcombine.low %v1931_v25, %v1934_v32  ;;  %v503_v24 = vrot.slane %v498_v41, 4  ;;  %v5506_v8 = vld [vmem:[#allocation2 + $0x7c] sm:$0xf] }
  0xfe   : > { %v4217_v30 = vcombine.low %v1646_v3, %v1656_v48  ;;  %4345 = vmatprep.mubr.msk.bf16.mxu0 %vm3640_vm2, %v3571_v40  ;;  %v3540_v5 = vsel %vm3536_vm8, %v3507_v62, %v5261_v38  ;;  %v2225_v57 = vor.u32 %v2224_v17, %v2221_v47  ;;  %v2228_v33 = vshll.u32 %v5470_v26, 16  ;;  %v5526_v3 = vpop.permute.xlu1 %2708 }
  0xff   : > { %v3573_v16 = vsel %vm3569_vm9, %v3540_v5, %v5222_v22  ;;  %v2234_v50 = vrot.slane %v2232_v18, 4  ;;  %v2238_v51 = vshll.u32 %v5488_v6, 16  ;;  %v3377_v38 = vsel %vm3371_vm15, %v5421_v60, %v5313_v37 }
 0x100   : > { %2972 = vrot.lane.b32.xlu1 %v4217_v30, %s4491_s30  ;;  %v5508_v52 = vpop.permute.xlu0 %2786  ;;  %4346 = vmatmul.mubr.msk.bf16.vlgmr.msra.gmra.mxu0 %vm3640_vm2, %v3573_v16  ;;  %v718_v11 = vsel %vm4697_vm13, %v503_v24, %v717_v21  ;;  %v2226_v61 = vrot.slane %v2225_v57, 4  ;;  %v3412_v22 = vsel %vm3404_vm1, %v5457_v39, %v5366_v19  ;;  %v2230_v41 = vrot.slane %v2228_v33, 5 }
 0x101   : > { %v1996_v0 = vld [vmem:[#allocation2 + $0x84] sm:$0xf]  ;;  %719 = vst [vmem:[#allocation2 + $0x8c] sm:$0x1] %v718_v11  ;;  %v2240_v12 = vrot.slane %v2238_v51, 5  ;;  %v1047_v28 = vshrl.u32 %v775_v56, 16 }
 0x102   : > { %v1050_v25 = vshll.u32 %v775_v56, 16  ;;  %v2243_v45 = vshrl.u32 %v1996_v0, 16  ;;  %v2246_v27 = vshll.u32 %v1996_v0, 16  ;;  %v1056_v35 = vshll.u32 %v5506_v8, 16 }
 0x103   : > { %v1060_v37 = vshrl.u32 %v5506_v8, 16  ;;  %v2231_v60 = vsel %vm4674_vm11, %v2226_v61, %v2230_v41  ;;  %v2235_v32 = vor.u32 %v2234_v50, %v2230_v41  ;;  %v1049_v19 = vrot.slane %v1047_v28, 4 }
 0x104   : > { %3052 = vrot.lane.b32.xlu1 %v4233_v9, %s4489_s28  ;;  %v1052_v39 = vrot.slane %v1050_v25, 5  ;;  %v5528_v47 = vld [vmem:[#allocation2 + $0x88] sm:$0xf]  ;;  %v2245_v18 = vrot.slane %v2243_v45, 4  ;;  %v2248_v55 = vrot.slane %v2246_v27, 5  ;;  %v1058_v48 = vrot.slane %v1056_v35, 5  ;;  %v5533_v21 = vpop.permute.xlu0 %2882 }
 0x105   : > { %v1062_v53 = vrot.slane %v1060_v37, 4  ;;  %v2256_v17 = vshrl.u32 %v5528_v47, 16  ;;  %v4249_v30 = vcombine.low %v1996_v0, %v5528_v47  ;;  %v2252_v40 = vshll.u32 %v5528_v47, 16  ;;  %v777_v35 = vld [vmem:[#allocation2 + $0x84] sm:$0xf]  ;;  %v5543_v37 = vpop.permute.xlu1 %2788 }
 0x106   : > { %v2236_v62 = vrot.slane %v2235_v32, 4  ;;  %v2249_v9 = vor.u32 %v2248_v55, %v2245_v18  ;;  %v1053_v5 = vor.u32 %v1052_v39, %v1049_v19  ;;  %v1066_v57 = vshll.u32 %v5524_v42, 16  ;;  %v778_v39 = vld [vmem:[#allocation2 + $0x88] sm:$0xf] }
 0x107   : > { %v1063_v24 = vor.u32 %v1062_v53, %v1058_v48  ;;  %v2254_v56 = vrot.slane %v2252_v40, 5  ;;  %v2258_v16 = vrot.slane %v2256_v17, 4  ;;  %v4136_v50 = vrot.slane %v2418_v2, 9 }
 0x108   : > { %3148 = vrot.lane.b32.xlu1 %v4249_v30, %s4488_s27  ;;  %v2241_v33 = vsel %vm4674_vm11, %v2236_v62, %v2240_v12  ;;  %v5539_v51 = vld [vmem:[#allocation2 + $0x8c] sm:$0x1]  ;;  %v2250_v11 = vrot.slane %v2249_v9, 4  ;;  %v1054_v0 = vrot.slane %v1053_v5, 4  ;;  %v1068_v45 = vrot.slane %v1066_v57, 5 }
 0x109   : > { %v4264_v61 = vcombine.low %v2231_v60, %v2241_v33  ;;  %v1064_v41 = vrot.slane %v1063_v24, 4  ;;  %v2259_v28 = vor.u32 %v2258_v16, %v2254_v56  ;;  %v2262_v25 = vshll.u32 %v5539_v51, 16  ;;  %v798_v53 = vld [vmem:[#allocation2 + $0x8c] sm:$0x1]  ;;  %v2419_v5 = vld [vmem:[#allocation2 + $0x84] sm:$0xe] }
 0x10a   : > { %v2532_v27 = vrot.slane %v5470_v26, 5  ;;  %v2255_v32 = vsel %vm4674_vm11, %v2250_v11, %v2254_v56  ;;  %v3410_v12 = vsel %vm3404_vm1, %v3377_v38, %v5328_v29  ;;  %v1059_v60 = vsel %vm4674_vm11, %v1054_v0, %v1058_v48  ;;  %v5557_v17 = vpop.permute.xlu0 %2962 }
 0x10b   : > { %3226 = vrot.lane.b32.xlu0 %v4264_v61, %s4492_s6  ;;  %v2535_v19 = vrot.slane %v5488_v6, 5  ;;  %v2260_v2 = vrot.slane %v2259_v28, 4  ;;  %v2264_v18 = vrot.slane %v2262_v25, 5  ;;  %v1069_v26 = vsel %vm4674_vm11, %v1064_v41, %v1068_v45  ;;  %v1200_v45 = vld [vmem:[#allocation2 + $0x78] sm:$0xe] }
 0x10c   : > { %v3445_v55 = vsel %vm3437_vm4, %v3412_v22, %v5384_v59  ;;  %v4170_v30 = vcombine.low %v1059_v60, %v1069_v26  ;;  %v2533_v29 = vsel %vm4654_vm7, %v4136_v50, %v2532_v27  ;;  %v2534_v38 = vrot.slane %v2532_v27, 4  ;;  %v1201_v50 = vld [vmem:[#allocation2 + $0x84] sm:$0xe] }
 0x10d   : > { %v1071_v48 = vshrl.u32 %v777_v35, 16  ;;  %v2265_v6 = vsel %vm4674_vm11, %v2260_v2, %v2264_v18  ;;  %v1074_v40 = vshll.u32 %v777_v35, 16  ;;  %v1080_v62 = vshll.u32 %v778_v39, 16  ;;  %v5565_v61 = vpop.permute.xlu1 %2884 }
 0x10e   : > { %v1084_v9 = vshrl.u32 %v778_v39, 16  ;;  %v4265_v24 = vcombine.low %v2255_v32, %v2265_v6  ;;  %v2536_v59 = vsel %vm4654_vm7, %v2534_v38, %v2535_v19  ;;  %v1090_v57 = vshll.u32 %v798_v53, 16  ;;  %v5575_v19 = vpop.permute.xlu0 %3042  ;;  %v304_v6 = vld [vmem:[%s4652_s23 + $0x58] sm:$0xf] }
 0x10f   : > { %v1073_v22 = vrot.slane %v1071_v48, 4  ;;  %v4280_v56 = vcombine.low %v2533_v29, %v2536_v59  ;;  %v1076_v16 = vrot.slane %v1074_v40, 5  ;;  %v1082_v33 = vrot.slane %v1080_v62, 5 }
 0x110   : > { %v1086_v11 = vrot.slane %v1084_v9, 4  ;;  %3228 = vrot.lane.b32.xlu1 %v4265_v24, %s4492_s6  ;;  %v3443_v0 = vsel %vm3437_vm4, %v3410_v12, %v5338_v10  ;;  %v4137_v41 = vrot.slane %v2419_v5, 9  ;;  %v2539_v28 = vrot.slane %v5528_v47, 5 }
 0x111   : > { %v2542_v25 = vrot.slane %v5539_v51, 5  ;;  %3306 = vrot.lane.b32.xlu0 %v4280_v56, %s4490_s29  ;;  %v1077_v27 = vor.u32 %v1076_v16, %v1073_v22  ;;  %v1092_v32 = vrot.slane %v1090_v57, 5  ;;  %v3478_v60 = vsel %vm3470_vm5, %v3445_v55, %v5414_v43  ;;  %v1389_v22 = vld [vmem:[#allocation2 + $0x84] sm:$0xf] }
 0x112   : > { %v1087_v35 = vor.u32 %v1086_v11, %v1082_v33  ;;  %v2540_v10 = vsel %vm4654_vm7, %v4137_v41, %v2539_v28  ;;  %v2541_v12 = vrot.slane %v2539_v28, 4  ;;  %v4107_v2 = vrot.slane %v1201_v50, 9  ;;  %v5603_v11 = vpop.permute.xlu0 %3138 }
 0x113   : > { %v1336_v47 = vrot.slane %v778_v39, 5  ;;  %v1078_v51 = vrot.slane %v1077_v27, 4  ;;  %v1339_v26 = vrot.slane %v798_v53, 5  ;;  %v4106_v29 = vrot.slane %v1200_v45, 9 }
 0x114   : > { %v1088_v18 = vrot.slane %v1087_v35, 4  ;;  %2718 = vrot.lane.b32.xlu1 %v4170_v30, %s4486_s25  ;;  %v2543_v38 = vsel %vm4654_vm7, %v2541_v12, %v2542_v25  ;;  %v1329_v48 = vrot.slane %v5506_v8, 5  ;;  %v1332_v62 = vrot.slane %v5524_v42, 5  ;;  %v305_v30 = vld [vmem:[%s4652_s23 + $0x5c] sm:$0xf] }
 0x115   : > { %v1337_v43 = vsel %vm4654_vm7, %v4107_v2, %v1336_v47  ;;  %v1338_v55 = vrot.slane %v1336_v47, 4  ;;  %v1083_v40 = vsel %vm4674_vm11, %v1078_v51, %v1082_v33  ;;  %v4281_v53 = vcombine.low %v2540_v10, %v2543_v38  ;;  %v1390_v33 = vld [vmem:[#allocation2 + $0x88] sm:$0xf]  ;;  %v1411_v12 = vld [vmem:[#allocation2 + $0x8c] sm:$0x1] }
 0x116   : > { %v1093_v39 = vsel %vm4674_vm11, %v1088_v18, %v1092_v32  ;;  %v5592_v9 = vpop.permute.xlu1 %2964  ;;  %v1330_v8 = vsel %vm4654_vm7, %v4106_v29, %v1329_v48  ;;  %v1331_v59 = vrot.slane %v1329_v48, 4  ;;  %v3476_v57 = vsel %vm3470_vm5, %v3443_v0, %v5368_v4  ;;  %v720_v32 = vld [vmem:[#allocation2 + $0x90] sm:$0xf]  ;;  %v724_v29 = vld [vmem:[#allocation2 + $0x98] sm:$0x1] }
 0x117   : > { %v4171_v5 = vcombine.low %v1083_v40, %v1093_v39  ;;  %v1340_v24 = vsel %vm4654_vm7, %v1338_v55, %v1339_v26  ;;  %3308 = vrot.lane.b32.xlu0 %v4281_v53, %s4490_s29  ;;  %v3511_v42 = vsel %vm3503_vm6, %v3478_v60, %v5450_v49  ;;  %v505_v16 = vshrl.u32 %v304_v6, 16  ;;  %v1811_v48 = vld [vmem:[#allocation2 + $0x84] sm:$0xe] }
 0x118   : > { %v4187_v56 = vcombine.low %v1337_v43, %v1340_v24  ;;  %v1333_v50 = vsel %vm4654_vm7, %v1331_v59, %v1332_v62  ;;  %v508_v41 = vshll.u32 %v304_v6, 16  ;;  %v513_v28 = vshrl.u32 %v305_v30, 16 }
 0x119   : > { %2720 = vrot.lane.b32.xlu1 %v4171_v5, %s4486_s25  ;;  %v516_v25 = vshll.u32 %v305_v30, 16  ;;  %v4186_v45 = vcombine.low %v1330_v8, %v1333_v50  ;;  %v507_v27 = vrot.slane %v505_v16, 7  ;;  %v1658_v35 = vshrl.u32 %v1389_v22, 16  ;;  %v306_v8 = vld [vmem:[%s4652_s23 + $0x60] sm:$0xf] }
 0x11a   : > { %v1661_v4 = vshll.u32 %v1389_v22, 16  ;;  %v3509_v0 = vsel %vm3503_vm6, %v3476_v57, %v5386_v23  ;;  %v515_v49 = vrot.slane %v513_v28, 7  ;;  %v1671_v60 = vshrl.u32 %v1390_v33, 16  ;;  %v5610_v2 = vpop.permute.xlu1 %3044 }
 0x11b   : > { %v4202_v10 = vcombine.low %v1389_v22, %v1390_v33  ;;  %2798 = vrot.lane.b32.xlu0 %v4186_v45, %s4485_s24  ;;  %v510_v47 = vor.u32 %v508_v41, %v507_v27  ;;  %v511_v51 = vrot.slane %v507_v27, 4  ;;  %v1660_v18 = vrot.slane %v1658_v35, 4  ;;  %v5618_v62 = vpop.permute.xlu0 %3218 }
 0x11c   : > { %v1663_v26 = vrot.slane %v1661_v4, 5  ;;  %v518_v38 = vor.u32 %v516_v25, %v515_v49  ;;  %v3544_v23 = vsel %vm3536_vm8, %v3511_v42, %v5466_v15  ;;  %v520_v43 = vrot.slane %v515_v49, 4  ;;  %v307_v42 = vld [vmem:[%s4652_s23 + $0x64] sm:$0xf] }
 0x11d   : > { %2800 = vrot.lane.b32.xlu1 %v4187_v56, %s4485_s24  ;;  %v1667_v55 = vshll.u32 %v1390_v33, 16  ;;  %v721_v6 = vsel %vm4668_vm10, %v510_v47, %v720_v32  ;;  %v1673_v39 = vrot.slane %v1671_v60, 4  ;;  %v1677_v53 = vshll.u32 %v1411_v12, 16 }
 0x11e   : > { %v1664_v40 = vor.u32 %v1663_v26, %v1660_v18  ;;  %v519_v30 = vsel %vm4682_vm12, %v511_v51, %v518_v38  ;;  %722 = vst [vmem:[#allocation2 + $0x90] sm:$0xf] %v721_v6  ;;  %v3542_v5 = vsel %vm3536_vm8, %v3509_v0, %v5435_v46  ;;  %v725_v15 = vsel %vm4697_vm13, %v520_v43, %v724_v29  ;;  %v5638_v25 = vpop.permute.xlu1 %3140 }
 0x11f   : > { %v1669_v24 = vrot.slane %v1667_v55, 5  ;;  %723 = vst.msk [vmem:[#allocation2 + $0x94] sm:$0xf] %vm226_vm0, %v519_v30  ;;  %2894 = vrot.lane.b32.xlu0 %v4202_v10, %s4487_s26  ;;  %726 = vst [vmem:[#allocation2 + $0x98] sm:$0x1] %v725_v15  ;;  %v1679_v22 = vrot.slane %v1677_v53, 5  ;;  %v3575_v57 = vsel %vm3569_vm9, %v3542_v5, %v5460_v54  ;;  %v6316_v41 = vcombine.low %v4966_v13, %v4973_v58 }
 0x120   : > { %v1665_v59 = vrot.slane %v1664_v40, 4  ;;  %v4122_v56 = vrot.slane %v1811_v48, 9  ;;  %v1937_v50 = vrot.slane %v1390_v33, 5  ;;  %v1940_v46 = vrot.slane %v1411_v12, 5  ;;  %4349 = vmatprep.mubr.msk.bf16.mxu0 %vm3640_vm2, %v3575_v57  ;;  %v727_v30 = vld [vmem:[#allocation2 + $0x9c] sm:$0xf] }
 0x121   : > { %v1674_v16 = vor.u32 %v1673_v39, %v1669_v24  ;;  %v3340_v28 = vsel %vm3322_vm14, %v6316_v41, %v5526_v3  ;;  %v3577_v54 = vsel %vm3569_vm9, %v3544_v23, %v5482_v14  ;;  %v522_v27 = vshrl.u32 %v306_v8, 16 }
 0x122   : > { %v1670_v45 = vsel %vm4674_vm11, %v1665_v59, %v1669_v24  ;;  %v525_v35 = vshll.u32 %v306_v8, 16  ;;  %v1938_v4 = vsel %vm4654_vm7, %v4122_v56, %v1937_v50  ;;  %v1939_v0 = vrot.slane %v1937_v50, 4  ;;  %4350 = vmatmul.mubr.msk.bf16.gmra.mxu0 %vm3640_vm2, %v3577_v54  ;;  %v5654_v60 = vpop.permute.xlu0 %3298  ;;  %v5671_v6 = vpop.permute.xlu1 %3220 }
 0x123   : > { %v1675_v33 = vrot.slane %v1674_v16, 4  ;;  %v530_v49 = vshrl.u32 %v307_v42, 16  ;;  %v6317_v13 = vcombine.low %v4932_v31, %v4948_v20  ;;  %v524_v3 = vrot.slane %v522_v27, 7 }
 0x124   : > { %v533_v32 = vshll.u32 %v307_v42, 16  ;;  %v3383_v14 = vsel %vm3371_vm15, %v3340_v28, %v5543_v37  ;;  %v1941_v12 = vsel %vm4654_vm7, %v1939_v0, %v1940_v46 }
 0x125   : > { %v3337_v58 = vsel %vm3322_vm14, %v6317_v13, %v5496_v7  ;;  %v1680_v10 = vsel %vm4674_vm11, %v1675_v33, %v1679_v22  ;;  %v5660_v47 = vrot.slane %v530_v49, 7  ;;  %v1391_v20 = vld [vmem:[#allocation2 + $0x90] sm:$0xf]  ;;  %v4234_v18 = vcombine.low %v1938_v4, %v1941_v12 }
 0x126   : > { %v5664_v31 = vsel %vm3371_vm15, %v3337_v58, %v5508_v52  ;;  %v4218_v7 = vcombine.low %v1670_v45, %v1680_v10  ;;  %v1812_v51 = vld [vmem:[#allocation2 + $0x90] sm:$0xe]  ;;  %v528_v26 = vrot.slane %v524_v3, 4  ;;  %v5668_v37 = vsel %vm3404_vm1, %v3383_v14, %v5565_v61  ;;  %v1392_v29 = vld [vmem:[#allocation2 + $0x94] sm:$0xf] }
 0x127   : > { %v1682_v38 = vshrl.u32 %v1391_v20, 16  ;;  %v1685_v23 = vshll.u32 %v1391_v20, 16  ;;  %v1412_v43 = vld [vmem:[#allocation2 + $0x98] sm:$0x1]  ;;  %v527_v55 = vor.u32 %v525_v35, %v524_v3  ;;  %v535_v48 = vor.u32 %v533_v32, %v5660_v47  ;;  %v1998_v8 = vld [vmem:[#allocation2 + $0x90] sm:$0xf]  ;;  %v5695_v3 = vpop.permute.xlu1 %2710 }
 0x128   : > { %v1695_v52 = vshrl.u32 %v1392_v29, 16  ;;  %v4203_v40 = vcombine.low %v1391_v20, %v1392_v29  ;;  %v1691_v39 = vshll.u32 %v1392_v29, 16  ;;  %v1701_v53 = vshll.u32 %v1412_v43, 16  ;;  %2974 = vrot.lane.b32.xlu0 %v4218_v7, %s4491_s30  ;;  %v5675_v42 = vld [vmem:[#allocation2 + $0x94] sm:$0xf] }
 0x129   : > { %v1684_v5 = vrot.slane %v1682_v38, 4  ;;  %v1687_v15 = vrot.slane %v1685_v23, 5  ;;  %v4123_v61 = vrot.slane %v1812_v51, 9  ;;  %v1944_v24 = vrot.slane %v1392_v29, 5  ;;  %v5677_v16 = vpop.permute.xlu0 %3300  ;;  %v5693_v13 = vld [vmem:[#allocation2 + $0x98] sm:$0x1] }
 0x12a   : > { %2896 = vrot.lane.b32.xlu1 %v4203_v40, %s4487_s26  ;;  %v1693_v59 = vrot.slane %v1691_v39, 5  ;;  %v1697_v22 = vrot.slane %v1695_v52, 4  ;;  %v1703_v57 = vrot.slane %v1701_v53, 5  ;;  %v1947_v56 = vrot.slane %v1412_v43, 5  ;;  %v779_v58 = vld [vmem:[#allocation2 + $0x90] sm:$0xf] }
 0x12b   : > { %v1688_v50 = vor.u32 %v1687_v15, %v1684_v5  ;;  %v5681_v46 = vsel %vm4654_vm7, %v4123_v61, %v1944_v24  ;;  %v1946_v41 = vrot.slane %v1944_v24, 4  ;;  %v536_v28 = vsel %vm4682_vm12, %v528_v26, %v535_v48  ;;  %v731_v20 = vld [vmem:[#allocation2 + $0xa4] sm:$0x1]  ;;  %v5702_v29 = vld [vmem:[#allocation2 + $0x94] sm:$0xf] }
 0x12c   : > { %v1698_v45 = vor.u32 %v1697_v22, %v1693_v59  ;;  %3054 = vrot.lane.b32.xlu0 %v4234_v18, %s4489_s28  ;;  %v728_v54 = vsel %vm4668_vm10, %v527_v55, %v727_v30  ;;  %730 = vst.msk [vmem:[#allocation2 + $0xa0] sm:$0xf] %vm226_vm0, %v536_v28  ;;  %v2267_v27 = vshrl.u32 %v1998_v8, 16  ;;  %v2270_v35 = vshll.u32 %v1998_v8, 16  ;;  %v5708_v55 = vld [vmem:[#allocation2 + $0x98] sm:$0x1] }
 0x12d   : > { %v1689_v33 = vrot.slane %v1688_v50, 4  ;;  %v1948_v4 = vsel %vm4654_vm7, %v1946_v41, %v1947_v56  ;;  %729 = vst [vmem:[#allocation2 + $0x9c] sm:$0xf] %v728_v54  ;;  %v2280_v0 = vshrl.u32 %v5675_v42, 16  ;;  %v4250_v49 = vcombine.low %v1998_v8, %v5675_v42  ;;  %v5710_v52 = vpop.permute.xlu0 %2790  ;;  %v5720_v56 = vpop.permute.xlu1 %2712 }
 0x12e   : > { %v1699_v32 = vrot.slane %v1698_v45, 4  ;;  %v4235_v14 = vcombine.low %v5681_v46, %v1948_v4  ;;  %v2269_v10 = vrot.slane %v2267_v27, 4  ;;  %v2272_v12 = vrot.slane %v2270_v35, 5 }
 0x12f   : > { %v1694_v7 = vsel %vm4674_vm11, %v1689_v33, %v1693_v59  ;;  %v537_v51 = vrot.slane %v5660_v47, 4  ;;  %v2276_v18 = vshll.u32 %v5675_v42, 16  ;;  %v2282_v26 = vrot.slane %v2280_v0, 4 }
 0x130   : > { %v1704_v38 = vsel %vm4674_vm11, %v1699_v32, %v1703_v57  ;;  %3150 = vrot.lane.b32.xlu0 %v4250_v49, %s4488_s27  ;;  %v2273_v23 = vor.u32 %v2272_v12, %v2269_v10  ;;  %v2286_v43 = vshll.u32 %v5693_v13, 16  ;;  %v1095_v48 = vshrl.u32 %v779_v58, 16  ;;  %v2420_v32 = vld [vmem:[#allocation2 + $0x90] sm:$0xe] }
 0x131   : > { %v4219_v40 = vcombine.low %v1694_v7, %v1704_v38  ;;  %v732_v47 = vsel %vm4697_vm13, %v537_v51, %v731_v20  ;;  %v2278_v39 = vrot.slane %v2276_v18, 5  ;;  %v1098_v53 = vshll.u32 %v779_v58, 16  ;;  %v5727_v10 = vpop.permute.xlu0 %2886 }
 0x132   : > { %733 = vst [vmem:[#allocation2 + $0xa4] sm:$0x1] %v732_v47  ;;  %v2274_v30 = vrot.slane %v2273_v23, 4  ;;  %v2288_v5 = vrot.slane %v2286_v43, 5  ;;  %v1097_v15 = vrot.slane %v1095_v48, 4  ;;  %v1104_v61 = vshll.u32 %v5702_v29, 16 }
 0x133   : > { %2976 = vrot.lane.b32.xlu1 %v4219_v40, %s4491_s30  ;;  %v5716_v24 = vld [vmem:[#allocation2 + $0xa0] sm:$0xf]  ;;  %v2283_v8 = vor.u32 %v2282_v26, %v2278_v39  ;;  %v1100_v59 = vrot.slane %v1098_v53, 5  ;;  %v1108_v22 = vshrl.u32 %v5702_v29, 16  ;;  %v1114_v57 = vshll.u32 %v5708_v55, 16 }
 0x134   : > { %v2000_v50 = vld [vmem:[#allocation2 + $0x9c] sm:$0xf]  ;;  %v2304_v46 = vshrl.u32 %v5716_v24, 16  ;;  %v2300_v41 = vshll.u32 %v5716_v24, 16  ;;  %v2279_v28 = vsel %vm4674_vm11, %v2274_v30, %v2278_v39  ;;  %v1106_v45 = vrot.slane %v1104_v61, 5  ;;  %v5738_v39 = vpop.permute.xlu1 %2792 }
 0x135   : > { %v2291_v54 = vshrl.u32 %v2000_v50, 16  ;;  %v2294_v27 = vshll.u32 %v2000_v50, 16  ;;  %v4251_v35 = vcombine.low %v2000_v50, %v5716_v24  ;;  %v2284_v33 = vrot.slane %v2283_v8, 4  ;;  %v781_v61 = vld [vmem:[#allocation2 + $0x9c] sm:$0xf] }
 0x136   : > { %v2302_v4 = vrot.slane %v2300_v41, 5  ;;  %v2306_v0 = vrot.slane %v2304_v46, 4  ;;  %v1101_v49 = vor.u32 %v1100_v59, %v1097_v15  ;;  %v1110_v58 = vrot.slane %v1108_v22, 4  ;;  %v782_v59 = vld [vmem:[#allocation2 + $0xa0] sm:$0xf] }
 0x137   : > { %3056 = vrot.lane.b32.xlu1 %v4235_v14, %s4489_s28  ;;  %v2293_v12 = vrot.slane %v2291_v54, 4  ;;  %v2296_v20 = vrot.slane %v2294_v27, 5  ;;  %v2289_v7 = vsel %vm4674_vm11, %v2284_v33, %v2288_v5  ;;  %v1116_v51 = vrot.slane %v1114_v57, 5 }
 0x138   : > { %v2307_v18 = vor.u32 %v2306_v0, %v2302_v4  ;;  %v4266_v26 = vcombine.low %v2279_v28, %v2289_v7  ;;  %v1102_v38 = vrot.slane %v1101_v49, 4  ;;  %v1111_v23 = vor.u32 %v1110_v58, %v1106_v45  ;;  %v5754_v28 = vpop.permute.xlu0 %2966 }
 0x139   : > { %v5732_v43 = vld [vmem:[#allocation2 + $0xa4] sm:$0x1]  ;;  %v2297_v48 = vor.u32 %v2296_v20, %v2293_v12  ;;  %v3414_v40 = vsel %vm3404_vm1, %v5664_v31, %v5533_v21  ;;  %v4138_v47 = vrot.slane %v2420_v32, 9  ;;  %v2546_v14 = vrot.slane %v5675_v42, 5  ;;  %v1203_v20 = vld [vmem:[#allocation2 + $0x9c] sm:$0xe] }
 0x13a   : > { %v2308_v53 = vrot.slane %v2307_v18, 4  ;;  %v2310_v30 = vshll.u32 %v5732_v43, 16  ;;  %3230 = vrot.lane.b32.xlu0 %v4266_v26, %s4492_s6  ;;  %v1112_v5 = vrot.slane %v1111_v23, 4  ;;  %v1346_v15 = vrot.slane %v5708_v55, 5  ;;  %v800_v41 = vld [vmem:[#allocation2 + $0xa4] sm:$0x1] }
 0x13b   : > { %3152 = vrot.lane.b32.xlu1 %v4251_v35, %s4488_s27  ;;  %v2298_v8 = vrot.slane %v2297_v48, 4  ;;  %v2547_v21 = vsel %vm4654_vm7, %v4138_v47, %v2546_v14  ;;  %v2548_v31 = vrot.slane %v2546_v14, 4  ;;  %v2549_v42 = vrot.slane %v5693_v13, 5  ;;  %v2421_v35 = vld [vmem:[#allocation2 + $0x9c] sm:$0xe] }
 0x13c   : > { %v2312_v22 = vrot.slane %v2310_v30, 5  ;;  %v1107_v57 = vsel %vm4674_vm11, %v1102_v38, %v1106_v45  ;;  %v1117_v50 = vsel %vm4674_vm11, %v1112_v5, %v1116_v51  ;;  %v3449_v46 = vsel %vm3437_vm4, %v5668_v37, %v5592_v9  ;;  %v5772_v5 = vpop.permute.xlu0 %3046 }
 0x13d   : > { %v2303_v54 = vsel %vm4674_vm11, %v2298_v8, %v2302_v4  ;;  %v2550_v13 = vsel %vm4654_vm7, %v2548_v31, %v2549_v42  ;;  %v3447_v27 = vsel %vm3437_vm4, %v3414_v40, %v5557_v17  ;;  %v1119_v45 = vshrl.u32 %v781_v61, 16  ;;  %v5764_v4 = vpop.permute.xlu1 %2888  ;;  %v1202_v40 = vld [vmem:[#allocation2 + $0x90] sm:$0xe] }
 0x13e   : > { %v2313_v33 = vsel %vm4674_vm11, %v2308_v53, %v2312_v22  ;;  %v4282_v0 = vcombine.low %v2547_v21, %v2550_v13  ;;  %v1122_v49 = vshll.u32 %v781_v61, 16  ;;  %v1128_v9 = vshll.u32 %v782_v59, 16 }
 0x13f   : > { %v4267_v37 = vcombine.low %v2303_v54, %v2313_v33  ;;  %v1121_v58 = vrot.slane %v1119_v45, 4  ;;  %v1132_v32 = vshrl.u32 %v782_v59, 16  ;;  %v1138_v12 = vshll.u32 %v800_v41, 16 }
 0x140   : > { %v4172_v7 = vcombine.low %v1107_v57, %v1117_v50  ;;  %3310 = vrot.lane.b32.xlu0 %v4282_v0, %s4490_s29  ;;  %v1124_v51 = vrot.slane %v1122_v49, 5  ;;  %v1130_v17 = vrot.slane %v1128_v9, 5  ;;  %v4139_v18 = vrot.slane %v2421_v35, 9  ;;  %v308_v57 = vld [vmem:[%s4652_s23 + $0x68] sm:$0xf] }
 0x141   : > { %3232 = vrot.lane.b32.xlu1 %v4267_v37, %s4492_s6  ;;  %v1134_v26 = vrot.slane %v1132_v32, 4  ;;  %v1353_v38 = vrot.slane %v800_v41, 5  ;;  %v2553_v23 = vrot.slane %v5716_v24, 5  ;;  %v2556_v48 = vrot.slane %v5732_v43, 5  ;;  %v1393_v0 = vld [vmem:[#allocation2 + $0x9c] sm:$0xf] }
 0x142   : > { %v1125_v47 = vor.u32 %v1124_v51, %v1121_v58  ;;  %v1140_v14 = vrot.slane %v1138_v12, 5  ;;  %v3482_v53 = vsel %vm3470_vm5, %v3449_v46, %v5610_v2  ;;  %v4109_v30 = vrot.slane %v1203_v20, 9  ;;  %v5800_v49 = vld [vmem:[#allocation2 + $0xa0] sm:$0xf]  ;;  %v5809_v12 = vpop.permute.xlu0 %3142 }
 0x143   : > { %v1135_v61 = vor.u32 %v1134_v26, %v1130_v17  ;;  %v2554_v8 = vsel %vm4654_vm7, %v4139_v18, %v2553_v23  ;;  %v2555_v21 = vrot.slane %v2553_v23, 4  ;;  %v1350_v31 = vrot.slane %v782_v59, 5  ;;  %v5787_v59 = vpop.permute.xlu1 %2968  ;;  %v734_v26 = vld [vmem:[#allocation2 + $0xa8] sm:$0xf] }
 0x144   : > { %v1126_v24 = vrot.slane %v1125_v47, 4  ;;  %v3480_v43 = vsel %vm3470_vm5, %v3447_v27, %v5575_v19  ;;  %v4108_v42 = vrot.slane %v1202_v40, 9  ;;  %v1343_v22 = vrot.slane %v5702_v29, 5  ;;  %v309_v27 = vld [vmem:[%s4652_s23 + $0x6c] sm:$0xf] }
 0x145   : > { %2722 = vrot.lane.b32.xlu1 %v4172_v7, %s4486_s25  ;;  %v1136_v2 = vrot.slane %v1135_v61, 4  ;;  %v2557_v50 = vsel %vm4654_vm7, %v2555_v21, %v2556_v48  ;;  %v1352_v46 = vrot.slane %v1350_v31, 4  ;;  %v5785_v41 = vsel %vm3503_vm6, %v3482_v53, %v5638_v25  ;;  %v738_v47 = vld [vmem:[#allocation2 + $0xb0] sm:$0x1] }
 0x146   : > { %v1131_v19 = vsel %vm4674_vm11, %v1126_v24, %v1130_v17  ;;  %v4283_v54 = vcombine.low %v2554_v8, %v2557_v50  ;;  %v1344_v29 = vsel %vm4654_vm7, %v4108_v42, %v1343_v22  ;;  %v1345_v13 = vrot.slane %v1343_v22, 4 }
 0x147   : > { %v1141_v45 = vsel %vm4674_vm11, %v1136_v2, %v1140_v14  ;;  %v1351_v35 = vsel %vm4654_vm7, %v4109_v30, %v1350_v31  ;;  %v1354_v25 = vsel %vm4654_vm7, %v1352_v46, %v1353_v38  ;;  %v539_v33 = vshrl.u32 %v308_v57, 16  ;;  %v1413_v14 = vld [vmem:[#allocation2 + $0xa4] sm:$0x1]  ;;  %v5814_v53 = vpop.permute.xlu1 %3048  ;;  %v1813_v31 = vld [vmem:[#allocation2 + $0x9c] sm:$0xe] }
 0x148   : > { %v4173_v9 = vcombine.low %v1131_v19, %v1141_v45  ;;  %3312 = vrot.lane.b32.xlu0 %v4283_v54, %s4490_s29  ;;  %v1347_v37 = vsel %vm4654_vm7, %v1345_v13, %v1346_v15  ;;  %v3513_v58 = vsel %vm3503_vm6, %v3480_v43, %v5603_v11  ;;  %v542_v32 = vshll.u32 %v308_v57, 16  ;;  %v4460_v46 = vld [vmem:[#allocation2 + $0x48] sm:$0xf]  ;;  %v4461_v19 = vld [vmem:[#allocation2 + $0x4c] sm:$0xf] }
 0x149   : > { %v4188_v20 = vcombine.low %v1344_v29, %v1347_v37  ;;  %v541_v7 = vrot.slane %v539_v33, 7  ;;  %v547_v51 = vshrl.u32 %v309_v27, 16  ;;  %v550_v17 = vshll.u32 %v309_v27, 16  ;;  %v311_v37 = vld [vmem:[%s4652_s23 + $0x74] sm:$0xf] }
 0x14a   : > { %2724 = vrot.lane.b32.xlu1 %v4173_v9, %s4486_s25  ;;  %v4189_v18 = vcombine.low %v1351_v35, %v1354_v25  ;;  %v1706_v38 = vshrl.u32 %v1393_v0, 16  ;;  %v1709_v23 = vshll.u32 %v1393_v0, 16  ;;  %v1719_v55 = vshrl.u32 %v5800_v49, 16  ;;  %v310_v35 = vld [vmem:[%s4652_s23 + $0x70] sm:$0xf] }
 0x14b   : > { %v544_v48 = vor.u32 %v542_v32, %v541_v7  ;;  %v545_v15 = vrot.slane %v541_v7, 4  ;;  %v549_v40 = vrot.slane %v547_v51, 7  ;;  %v4204_v11 = vcombine.low %v1393_v0, %v5800_v49  ;;  %v5823_v54 = vpop.permute.xlu0 %3222  ;;  %v4462_v32 = vld [vmem:[#allocation2 + $0x54] sm:$0xf] }
 0x14c   : > { %2802 = vrot.lane.b32.xlu0 %v4188_v20, %s4485_s24  ;;  %v1708_v30 = vrot.slane %v1706_v38, 4  ;;  %v1711_v61 = vrot.slane %v1709_v23, 5  ;;  %v3546_v8 = vsel %vm3536_vm8, %v3513_v58, %v5618_v62  ;;  %v1715_v21 = vshll.u32 %v5800_v49, 16  ;;  %v4463_v20 = vld [vmem:[#allocation2 + $0x58] sm:$0xf] }
 0x14d   : > { %v552_v24 = vor.u32 %v550_v17, %v549_v40  ;;  %v735_v43 = vsel %vm4668_vm10, %v544_v48, %v734_v26  ;;  %v554_v42 = vrot.slane %v549_v40, 4  ;;  %v1721_v22 = vrot.slane %v1719_v55, 4  ;;  %v5842_v17 = vpop.permute.xlu1 %3144 }
 0x14e   : > { %2804 = vrot.lane.b32.xlu1 %v4189_v18, %s4485_s24  ;;  %736 = vst [vmem:[#allocation2 + $0xa8] sm:$0xf] %v735_v43  ;;  %v1712_v57 = vor.u32 %v1711_v61, %v1708_v30  ;;  %v1717_v2 = vrot.slane %v1715_v21, 5  ;;  %v1725_v50 = vshll.u32 %v1413_v14, 16  ;;  %v4150_v62 = vcombine.low %v4460_v46, %v4461_v19 }
 0x14f   : > { %v553_v29 = vsel %vm4682_vm12, %v545_v15, %v552_v24  ;;  %v739_v13 = vsel %vm4697_vm13, %v554_v42, %v738_v47  ;;  %v3579_v27 = vsel %vm3569_vm9, %v3546_v8, %v5654_v60  ;;  %v4124_v45 = vrot.slane %v1813_v31, 9  ;;  %v741_v8 = vld [vmem:[#allocation2 + $0xb4] sm:$0xf] }
 0x150   : > { %737 = vst.msk [vmem:[#allocation2 + $0xac] sm:$0xf] %vm226_vm0, %v553_v29  ;;  %2898 = vrot.lane.b32.xlu0 %v4204_v11, %s4487_s26  ;;  %v3548_v25 = vsel %vm3536_vm8, %v5785_v41, %v5671_v6  ;;  %740 = vst [vmem:[#allocation2 + $0xb0] sm:$0x1] %v739_v13  ;;  %v1713_v33 = vrot.slane %v1712_v57, 4  ;;  %v1722_v0 = vor.u32 %v1721_v22, %v1717_v2  ;;  %v1727_v9 = vrot.slane %v1725_v50, 5  ;;  %v5857_v11 = vpop.permute.xlu0 %3302 }
 0x151   : > { %4353 = vmatprep.mubr.msk.bf16.mxu0 %vm3640_vm2, %v3579_v27  ;;  %v1951_v58 = vrot.slane %v5800_v49, 5  ;;  %v1954_v60 = vrot.slane %v1413_v14, 5  ;;  %v4151_v7 = vcombine.low %v4462_v32, %v4463_v20  ;;  %v3581_v51 = vsel %vm3569_vm9, %v3548_v25, %v5677_v16 }
 0x152   : > { %v1718_v6 = vsel %vm4674_vm11, %v1713_v33, %v1717_v2  ;;  %v1723_v41 = vrot.slane %v1722_v0, 4  ;;  %v5848_v18 = vsel %vm3322_vm14, %v4150_v62, %v5695_v3  ;;  %v556_v26 = vshrl.u32 %v310_v35, 16  ;;  %4354 = vmatmul.mubr.msk.bf16.gmra.mxu0 %vm3640_vm2, %v3581_v51  ;;  %v5866_v62 = vpop.permute.xlu1 %3224 }
 0x153   : > { %v1952_v49 = vsel %vm4654_vm7, %v4124_v45, %v1951_v58  ;;  %v1953_v38 = vrot.slane %v1951_v58, 4  ;;  %v559_v23 = vshll.u32 %v310_v35, 16  ;;  %v564_v55 = vshrl.u32 %v311_v37, 16 }
 0x154   : > { %v1728_v16 = vsel %vm4674_vm11, %v1723_v41, %v1727_v9  ;;  %v3346_v48 = vsel %vm3322_vm14, %v4151_v7, %v5720_v56  ;;  %v558_v15 = vrot.slane %v556_v26, 7  ;;  %v567_v40 = vshll.u32 %v311_v37, 16  ;;  %v745_v41 = vld [vmem:[#allocation2 + $0xbc] sm:$0x1] }
 0x155   : > { %v1395_v3 = vld [vmem:[#allocation2 + $0xa8] sm:$0xf]  ;;  %v4220_v47 = vcombine.low %v1718_v6, %v1728_v16  ;;  %v1955_v30 = vsel %vm4654_vm7, %v1953_v38, %v1954_v60  ;;  %v566_v61 = vrot.slane %v564_v55, 7  ;;  %v5863_v21 = vsel %vm3371_vm15, %v3346_v48, %v5738_v39 }
 0x156   : > { %v1814_v14 = vld [vmem:[#allocation2 + $0xa8] sm:$0xe]  ;;  %v1730_v31 = vshrl.u32 %v1395_v3, 16  ;;  %v1733_v24 = vshll.u32 %v1395_v3, 16  ;;  %v4236_v56 = vcombine.low %v1952_v49, %v1955_v30  ;;  %v561_v2 = vor.u32 %v559_v23, %v558_v15 }
 0x157   : > { %v4125_v43 = vrot.slane %v1814_v14, 9  ;;  %v2002_v42 = vld [vmem:[#allocation2 + $0xa8] sm:$0xf]  ;;  %v1396_v22 = vld [vmem:[#allocation2 + $0xac] sm:$0xf]  ;;  %2978 = vrot.lane.b32.xlu0 %v4220_v47, %s4491_s30  ;;  %v562_v50 = vrot.slane %v558_v15, 4  ;;  %v569_v46 = vor.u32 %v567_v40, %v566_v61  ;;  %v5875_v32 = vpop.permute.xlu0 %3304  ;;  %v5896_v30 = vsel %vm3371_vm15, %v5848_v18, %v5710_v52 }
 0x158   : > { %v1414_v57 = vld [vmem:[#allocation2 + $0xb0] sm:$0x1]  ;;  %v2315_v19 = vshrl.u32 %v2002_v42, 16  ;;  %v1732_v29 = vrot.slane %v1730_v31, 4  ;;  %v1735_v13 = vrot.slane %v1733_v24, 5  ;;  %v1743_v27 = vshrl.u32 %v1396_v22, 16 }
 0x159   : > { %v4205_v39 = vcombine.low %v1395_v3, %v1396_v22  ;;  %v1739_v45 = vshll.u32 %v1396_v22, 16  ;;  %v1749_v35 = vshll.u32 %v1414_v57, 16  ;;  %v1958_v25 = vrot.slane %v1396_v22, 5  ;;  %v5868_v0 = vld [vmem:[#allocation2 + $0xac] sm:$0xf]  ;;  %v5889_v3 = vpop.permute.xlu1 %2714 }
 0x15a   : > { %v1961_v33 = vrot.slane %v1414_v57, 5  ;;  %v1736_v9 = vor.u32 %v1735_v13, %v1732_v29  ;;  %v1745_v37 = vrot.slane %v1743_v27, 4  ;;  %v570_v58 = vsel %vm4682_vm12, %v562_v50, %v569_v46  ;;  %v5884_v55 = vld [vmem:[#allocation2 + $0xb0] sm:$0x1]  ;;  %v5899_v31 = vld [vmem:[#allocation2 + $0xa8] sm:$0xf] }
 0x15b   : > { %2900 = vrot.lane.b32.xlu1 %v4205_v39, %s4487_s26  ;;  %v742_v60 = vsel %vm4668_vm10, %v561_v2, %v741_v8  ;;  %v1741_v20 = vrot.slane %v1739_v45, 5  ;;  %v1751_v7 = vrot.slane %v1749_v35, 5  ;;  %v5879_v51 = vsel %vm4654_vm7, %v4125_v43, %v1958_v25  ;;  %3058 = vrot.lane.b32.xlu0 %v4236_v56, %s4489_s28  ;;  %744 = vst.msk [vmem:[#allocation2 + $0xb8] sm:$0xf] %vm226_vm0, %v570_v58  ;;  %v5913_v2 = vpop.permute.xlu0 %2794 }
 0x15c   : > { %v1960_v6 = vrot.slane %v1958_v25, 4  ;;  %743 = vst [vmem:[#allocation2 + $0xb4] sm:$0xf] %v742_v60  ;;  %v1737_v26 = vrot.slane %v1736_v9, 4  ;;  %v2317_v49 = vrot.slane %v2315_v19, 4  ;;  %v2318_v38 = vshll.u32 %v2002_v42, 16 }
 0x15d   : > { %v2328_v23 = vshrl.u32 %v5868_v0, 16  ;;  %v1746_v16 = vor.u32 %v1745_v37, %v1741_v20  ;;  %v4252_v15 = vcombine.low %v2002_v42, %v5868_v0  ;;  %v571_v40 = vrot.slane %v566_v61, 4  ;;  %v5905_v42 = vld [vmem:[#allocation2 + $0xac] sm:$0xf]  ;;  %v5924_v37 = vpop.permute.xlu1 %2716 }
 0x15e   : > { %v1962_v48 = vsel %vm4654_vm7, %v1960_v6, %v1961_v33  ;;  %v1742_v47 = vsel %vm4674_vm11, %v1737_v26, %v1741_v20  ;;  %v2320_v14 = vrot.slane %v2318_v38, 5  ;;  %v2324_v8 = vshll.u32 %v5868_v0, 16  ;;  %v2422_v38 = vld [vmem:[#allocation2 + $0xa8] sm:$0xe] }
 0x15f   : > { %v1747_v24 = vrot.slane %v1746_v16, 4  ;;  %3154 = vrot.lane.b32.xlu0 %v4252_v15, %s4488_s27  ;;  %v746_v61 = vsel %vm4697_vm13, %v571_v40, %v745_v41  ;;  %v2330_v43 = vrot.slane %v2328_v23, 4  ;;  %v2334_v56 = vshll.u32 %v5884_v55, 16  ;;  %v5935_v40 = vpop.permute.xlu0 %2890 }
 0x160   : > { %v4237_v22 = vcombine.low %v5879_v51, %v1962_v48  ;;  %747 = vst [vmem:[#allocation2 + $0xbc] sm:$0x1] %v746_v61  ;;  %v2321_v52 = vor.u32 %v2320_v14, %v2317_v49  ;;  %v2326_v18 = vrot.slane %v2324_v8, 5  ;;  %v5911_v57 = vsel %vm3404_vm1, %v5863_v21, %v5764_v4 }
 0x161   : > { %v1752_v50 = vsel %vm4674_vm11, %v1747_v24, %v1751_v7  ;;  %v2336_v46 = vrot.slane %v2334_v56, 5  ;;  %v1143_v19 = vshrl.u32 %v5899_v31, 16  ;;  %v1146_v29 = vshll.u32 %v5899_v31, 16  ;;  %v5930_v7 = vld [vmem:[#allocation2 + $0xb0] sm:$0x1] }
 0x162   : > { %v4221_v13 = vcombine.low %v1742_v47, %v1752_v50  ;;  %v5919_v39 = vld [vmem:[#allocation2 + $0xb8] sm:$0xf]  ;;  %v2322_v45 = vrot.slane %v2321_v52, 4  ;;  %v2331_v35 = vor.u32 %v2330_v43, %v2326_v18  ;;  %v1152_v25 = vshll.u32 %v5905_v42, 16 }
 0x163   : > { %v2004_v27 = vld [vmem:[#allocation2 + $0xb4] sm:$0xf]  ;;  %v2352_v33 = vshrl.u32 %v5919_v39, 16  ;;  %v2348_v58 = vshll.u32 %v5919_v39, 16  ;;  %v1145_v51 = vrot.slane %v1143_v19, 4  ;;  %v1148_v49 = vrot.slane %v1146_v29, 5 }
 0x164   : > { %v2339_v4 = vshrl.u32 %v2004_v27, 16  ;;  %v2342_v21 = vshll.u32 %v2004_v27, 16  ;;  %v4253_v9 = vcombine.low %v2004_v27, %v5919_v39  ;;  %2980 = vrot.lane.b32.xlu1 %v4221_v13, %s4491_s30  ;;  %v2327_v60 = vsel %vm4674_vm11, %v2322_v45, %v2326_v18  ;;  %v5944_v13 = vpop.permute.xlu1 %2796 }
 0x165   : > { %v2332_v20 = vrot.slane %v2331_v35, 4  ;;  %v2354_v26 = vrot.slane %v2352_v33, 4  ;;  %v2350_v23 = vrot.slane %v2348_v58, 5  ;;  %v1154_v48 = vrot.slane %v1152_v25, 5  ;;  %v5956_v58 = vld [vmem:[#allocation2 + $0xb8] sm:$0xf] }
 0x166   : > { %v2341_v6 = vrot.slane %v2339_v4, 4  ;;  %v2344_v41 = vrot.slane %v2342_v21, 5  ;;  %v1156_v15 = vshrl.u32 %v5905_v42, 16  ;;  %v1149_v24 = vor.u32 %v1148_v49, %v1145_v51  ;;  %v2423_v49 = vld [vmem:[#allocation2 + $0xb4] sm:$0xe] }
 0x167   : > { %v2337_v16 = vsel %vm4674_vm11, %v2332_v20, %v2336_v46  ;;  %v5937_v47 = vld [vmem:[#allocation2 + $0xbc] sm:$0x1]  ;;  %v1162_v61 = vshll.u32 %v5930_v7, 16  ;;  %v2355_v43 = vor.u32 %v2354_v26, %v2350_v23  ;;  %v4140_v18 = vrot.slane %v2422_v38, 9 }
 0x168   : > { %v2345_v14 = vor.u32 %v2344_v41, %v2341_v6  ;;  %v4268_v8 = vcombine.low %v2327_v60, %v2337_v16  ;;  %3060 = vrot.lane.b32.xlu1 %v4237_v22, %s4489_s28  ;;  %v2358_v56 = vshll.u32 %v5937_v47, 16  ;;  %v1158_v52 = vrot.slane %v1156_v15, 4  ;;  %v5947_v22 = vld [vmem:[#allocation2 + $0xb4] sm:$0xf] }
 0x169   : > { %v1150_v46 = vrot.slane %v1149_v24, 4  ;;  %v1164_v19 = vrot.slane %v1162_v61, 5  ;;  %v2560_v29 = vrot.slane %v5868_v0, 5  ;;  %v2356_v27 = vrot.slane %v2355_v43, 4 }
 0x16a   : > { %v2346_v50 = vrot.slane %v2345_v14, 4  ;;  %3234 = vrot.lane.b32.xlu0 %v4268_v8, %s4492_s6  ;;  %v2360_v45 = vrot.slane %v2358_v56, 5  ;;  %v1159_v35 = vor.u32 %v1158_v52, %v1154_v48  ;;  %v2563_v25 = vrot.slane %v5884_v55, 5  ;;  %v5976_v8 = vpop.permute.xlu1 %2892  ;;  %v1205_v52 = vld [vmem:[#allocation2 + $0xb4] sm:$0xe] }
 0x16b   : > { %v3418_v21 = vsel %vm3404_vm1, %v5896_v30, %v5727_v10  ;;  %v2561_v33 = vsel %vm4654_vm7, %v4140_v18, %v2560_v29  ;;  %v2562_v0 = vrot.slane %v2560_v29, 4  ;;  %v1155_v60 = vsel %vm4674_vm11, %v1150_v46, %v1154_v48  ;;  %v802_v10 = vld [vmem:[#allocation2 + $0xbc] sm:$0x1]  ;;  %v5966_v30 = vpop.permute.xlu0 %2970  ;;  %v1204_v29 = vld [vmem:[#allocation2 + $0xa8] sm:$0xe] }
 0x16c   : > { %v2351_v4 = vsel %vm4674_vm11, %v2346_v50, %v2350_v23  ;;  %3156 = vrot.lane.b32.xlu1 %v4253_v9, %s4488_s27  ;;  %v2361_v55 = vsel %vm4674_vm11, %v2356_v27, %v2360_v45  ;;  %v1160_v20 = vrot.slane %v1159_v35, 4  ;;  %v3453_v51 = vsel %vm3437_vm4, %v5911_v57, %v5787_v59 }
 0x16d   : > { %v4269_v6 = vcombine.low %v2351_v4, %v2361_v55  ;;  %v2564_v41 = vsel %vm4654_vm7, %v2562_v0, %v2563_v25  ;;  %v1167_v9 = vshrl.u32 %v5947_v22, 16  ;;  %v1170_v26 = vshll.u32 %v5947_v22, 16 }
 0x16e   : > { %v1165_v38 = vsel %vm4674_vm11, %v1160_v20, %v1164_v19  ;;  %v4284_v23 = vcombine.low %v2561_v33, %v2564_v41  ;;  %v1176_v16 = vshll.u32 %v5956_v58, 16  ;;  %v1180_v59 = vshrl.u32 %v5956_v58, 16  ;;  %v312_v41 = vld [vmem:[%s4652_s23 + $0x78] sm:$0xf] }
 0x16f   : > { %v4174_v57 = vcombine.low %v1155_v60, %v1165_v38  ;;  %v1169_v48 = vrot.slane %v1167_v9, 4  ;;  %v1172_v15 = vrot.slane %v1170_v26, 5  ;;  %v1186_v14 = vshll.u32 %v802_v10, 16  ;;  %v5988_v4 = vpop.permute.xlu0 %3050 }
 0x170   : > { %3236 = vrot.lane.b32.xlu1 %v4269_v6, %s4492_s6  ;;  %3314 = vrot.lane.b32.xlu0 %v4284_v23, %s4490_s29  ;;  %v1178_v24 = vrot.slane %v1176_v16, 5  ;;  %v1182_v61 = vrot.slane %v1180_v59, 4  ;;  %v4141_v43 = vrot.slane %v2423_v49, 9  ;;  %v2567_v56 = vrot.slane %v5919_v39, 5  ;;  %v313_v23 = vld [vmem:[%s4652_s23 + $0x7c] sm:$0xf] }
 0x171   : > { %v3451_v18 = vsel %vm3437_vm4, %v3418_v21, %v5754_v28  ;;  %v1173_v50 = vor.u32 %v1172_v15, %v1169_v48  ;;  %v1188_v46 = vrot.slane %v1186_v14, 5  ;;  %v2570_v19 = vrot.slane %v5937_v47, 5  ;;  %v1397_v16 = vld [vmem:[#allocation2 + $0xb4] sm:$0xf]  ;;  %v6015_v14 = vld [vmem:[#allocation2 + $0xb8] sm:$0xf] }
 0x172   : > { %v1183_v27 = vor.u32 %v1182_v61, %v1178_v24  ;;  %v2568_v45 = vsel %vm4654_vm7, %v4141_v43, %v2567_v56  ;;  %v2569_v35 = vrot.slane %v2567_v56, 4  ;;  %v3486_v25 = vsel %vm3470_vm5, %v3453_v51, %v5814_v53  ;;  %s4314_s23 = sshll.u32 %s6320_s19, 4 }
 0x173   : > { %v1174_v39 = vrot.slane %v1173_v50, 4  ;;  %v4111_v33 = vrot.slane %v1205_v52, 9  ;;  %v1364_v28 = vrot.slane %v5956_v58, 5  ;;  %v1367_v21 = vrot.slane %v802_v10, 5  ;;  %v6000_v10 = vpop.permute.xlu1 %2972  ;;  %v6019_v56 = vpop.permute.xlu0 %3146 }
 0x174   : > { %2726 = vrot.lane.b32.xlu1 %v4174_v57, %s4486_s25  ;;  %v1184_v47 = vrot.slane %v1183_v27, 4  ;;  %v2571_v0 = vsel %vm4654_vm7, %v2569_v35, %v2570_v19  ;;  %v4110_v55 = vrot.slane %v1204_v29, 9  ;;  %v1357_v60 = vrot.slane %v5905_v42, 5  ;;  %v6025_v27 = vld [vmem:[#allocation2 + $0xbc] sm:$0x1] }
 0x175   : > { %v1179_v53 = vsel %vm4674_vm11, %v1174_v39, %v1178_v24  ;;  %v4285_v20 = vcombine.low %v2568_v45, %v2571_v0  ;;  %v1365_v51 = vsel %vm4654_vm7, %v4111_v33, %v1364_v28  ;;  %v1366_v6 = vrot.slane %v1364_v28, 4  ;;  %v748_v35 = vld [vmem:[#allocation2 + $0xc0] sm:$0xf]  ;;  %v752_v0 = vld [vmem:[#allocation2 + $0xc8] sm:$0x1] }
 0x176   : > { %v1189_v9 = vsel %vm4674_vm11, %v1184_v47, %v1188_v46  ;;  %v1358_v26 = vsel %vm4654_vm7, %v4110_v55, %v1357_v60  ;;  %v1359_v49 = vrot.slane %v1357_v60, 4  ;;  %v1360_v38 = vrot.slane %v5930_v7, 5 }
 0x177   : > { %v4175_v59 = vcombine.low %v1179_v53, %v1189_v9  ;;  %3316 = vrot.lane.b32.xlu0 %v4285_v20, %s4490_s29  ;;  %v3484_v57 = vsel %vm3470_vm5, %v3451_v18, %v5772_v5  ;;  %v1368_v48 = vsel %vm4654_vm7, %v1366_v6, %v1367_v21  ;;  %v3519_v15 = vsel %vm3503_vm6, %v3486_v25, %v5842_v17  ;;  %v6031_v28 = vpop.permute.xlu1 %3052  ;;  %v1815_v6 = vld [vmem:[#allocation2 + $0xb4] sm:$0xe] }
 0x178   : > { %v4191_v24 = vcombine.low %v1365_v51, %v1368_v48  ;;  %v1361_v7 = vsel %vm4654_vm7, %v1359_v49, %v1360_v38  ;;  %v573_v61 = vshrl.u32 %v312_v41, 16  ;;  %v576_v43 = vshll.u32 %v312_v41, 16 }
 0x179   : > { %2728 = vrot.lane.b32.xlu1 %v4175_v59, %s4486_s25  ;;  %v4190_v52 = vcombine.low %v1358_v26, %v1361_v7  ;;  %v581_v5 = vshrl.u32 %v313_v23, 16  ;;  %v584_v18 = vshll.u32 %v313_v23, 16  ;;  %v1754_v50 = vshrl.u32 %v1397_v16, 16  ;;  %v4465_v59 = vld [vmem:[#allocation2 + $0x64] sm:$0xf] }
 0x17a   : > { %v3517_v46 = vsel %vm3503_vm6, %v3484_v57, %v5809_v12  ;;  %v575_v17 = vrot.slane %v573_v61, 7  ;;  %v1757_v19 = vshll.u32 %v1397_v16, 16  ;;  %v1767_v29 = vshrl.u32 %v6015_v14, 16  ;;  %v4466_v61 = vld [vmem:[#allocation2 + $0x6c] sm:$0xf] }
 0x17b   : > { %2806 = vrot.lane.b32.xlu0 %v4190_v52, %s4485_s24  ;;  %v583_v45 = vrot.slane %v581_v5, 7  ;;  %v1756_v25 = vrot.slane %v1754_v50, 4  ;;  %v4206_v39 = vcombine.low %v1397_v16, %v6015_v14  ;;  %v3552_v33 = vsel %vm3536_vm8, %v3519_v15, %v5866_v62  ;;  %v4464_v16 = vld [vmem:[#allocation2 + $0x60] sm:$0xf]  ;;  %v6057_v5 = vpop.permute.xlu1 %3148 }
 0x17c   : > { %v578_v21 = vor.u32 %v576_v43, %v575_v17  ;;  %v579_v12 = vrot.slane %v575_v17, 4  ;;  %v1759_v47 = vrot.slane %v1757_v19, 5  ;;  %v1763_v55 = vshll.u32 %v6015_v14, 16  ;;  %v4467_v43 = vld [vmem:[#allocation2 + $0x70] sm:$0xf] }
 0x17d   : > { %2808 = vrot.lane.b32.xlu1 %v4191_v24, %s4485_s24  ;;  %v586_v60 = vor.u32 %v584_v18, %v583_v45  ;;  %v588_v53 = vrot.slane %v583_v45, 4  ;;  %v1769_v20 = vrot.slane %v1767_v29, 4  ;;  %v1773_v51 = vshll.u32 %v6025_v27, 16  ;;  %v6040_v49 = vpop.permute.xlu0 %3226  ;;  %v6064_v19 = vld [vmem:[#allocation2 + $0xd0] sm:$0xf] }
 0x17e   : > { %v749_v41 = vsel %vm4668_vm10, %v578_v21, %v748_v35  ;;  %v3550_v62 = vsel %vm3536_vm8, %v3517_v46, %v5823_v54  ;;  %v1760_v9 = vor.u32 %v1759_v47, %v1756_v25  ;;  %v1765_v26 = vrot.slane %v1763_v55, 5  ;;  %v6049_v54 = vld [vmem:[#allocation2 + $0xcc] sm:$0xf] }
 0x17f   : > { %v587_v38 = vsel %vm4682_vm12, %v579_v12, %v586_v60  ;;  %750 = vst [vmem:[#allocation2 + $0xc0] sm:$0xf] %v749_v41  ;;  %2902 = vrot.lane.b32.xlu0 %v4206_v39, %s4487_s26  ;;  %v753_v23 = vsel %vm4697_vm13, %v588_v53, %v752_v0  ;;  %v4152_v34 = vcombine.low %v4464_v16, %v4465_v59  ;;  %v1775_v15 = vrot.slane %v1773_v51, 5 }
 0x180   : > { %v3583_v57 = vsel %vm3569_vm9, %v3550_v62, %v5857_v11  ;;  %751 = vst.msk [vmem:[#allocation2 + $0xc4] sm:$0xf] %vm226_vm0, %v587_v38  ;;  %754 = vst [vmem:[#allocation2 + $0xc8] sm:$0x1] %v753_v23  ;;  %v1761_v48 = vrot.slane %v1760_v9, 4  ;;  %v1770_v44 = vor.u32 %v1769_v20, %v1765_v26  ;;  %v4126_v24 = vrot.slane %v1815_v6, 9 }
 0x181   : > { %4357 = vmatprep.mubr.msk.bf16.mxu0 %vm3640_vm2, %v3583_v57  ;;  %v1965_v63 = vrot.slane %v6015_v14, 5  ;;  %v1968_v7 = vrot.slane %v6025_v27, 5  ;;  %v4153_v52 = vcombine.low %v4466_v61, %v4467_v43  ;;  %v3585_v11 = vsel %vm3569_vm9, %v3552_v33, %v5875_v32 }
 0x182   : > { %v1766_v18 = vsel %vm4674_vm11, %v1761_v48, %v1765_v26  ;;  %v1771_v50 = vrot.slane %v1770_v44, 4  ;;  %v2387_v46 = vshrl.u32 %v6049_v54, 16  ;;  %v2390_v17 = vshll.u32 %v6049_v54, 16  ;;  %4358 = vmatmul.mubr.msk.bf16.gmra.mxu0 %vm3640_vm2, %v3585_v11  ;;  %v6092_v62 = vpop.permute.xlu1 %3228 }
 0x183   : > { %v1967_v14 = vrot.slane %v1965_v63, 4  ;;  %v1966_v32 = vsel %vm4654_vm7, %v4126_v24, %v1965_v63  ;;  %v6074_v35 = vpop.permute.xlu0 %3306  ;;  %v3349_v39 = vsel %vm3322_vm14, %v4152_v34, %v5889_v3  ;;  %v3352_v21 = vsel %vm3322_vm14, %v4153_v52, %v5924_v37 }
 0x184   : > { %v1776_v29 = vsel %vm4674_vm11, %v1771_v50, %v1775_v15  ;;  %v6070_v27 = vrot.slane %v2387_v46, 4  ;;  %v6072_v45 = vrot.slane %v2390_v17, 5  ;;  %v2400_v0 = vshrl.u32 %v6064_v19, 16  ;;  %v6104_v17 = vld [vmem:[#allocation2 + $0xd4] sm:$0x1] }
 0x185   : > { %v4222_v25 = vcombine.low %v1766_v18, %v1776_v29  ;;  %v1969_v33 = vsel %vm4654_vm7, %v1967_v14, %v1968_v7  ;;  %v4255_v55 = vcombine.low %v6049_v54, %v6064_v19  ;;  %v3391_v60 = vsel %vm3371_vm15, %v3352_v21, %v5944_v13 }
 0x186   : > { %v1399_v12 = vld [vmem:[#allocation2 + $0xc0] sm:$0xf]  ;;  %v3389_v53 = vsel %vm3371_vm15, %v3349_v39, %v5913_v2  ;;  %v4238_v37 = vcombine.low %v1966_v32, %v1969_v33  ;;  %v2393_v41 = vor.u32 %v6072_v45, %v6070_v27  ;;  %v3424_v24 = vsel %vm3404_vm1, %v3391_v60, %v5976_v8  ;;  %v6110_v27 = vpop.permute.xlu1 %2718 }
 0x187   : > { %v1816_v47 = vld [vmem:[#allocation2 + $0xc0] sm:$0xe]  ;;  %v1400_v3 = vld [vmem:[#allocation2 + $0xc4] sm:$0xf]  ;;  %v1778_v20 = vshrl.u32 %v1399_v12, 16  ;;  %v1781_v51 = vshll.u32 %v1399_v12, 16  ;;  %2982 = vrot.lane.b32.xlu0 %v4222_v25, %s4491_s30  ;;  %v3422_v32 = vsel %vm3404_vm1, %v3389_v53, %v5935_v40 }
 0x188   : > { %v1416_v6 = vld [vmem:[#allocation2 + $0xc8] sm:$0x1]  ;;  %v1791_v9 = vshrl.u32 %v1400_v3, 16  ;;  %v4207_v26 = vcombine.low %v1399_v12, %v1400_v3  ;;  %v1787_v38 = vshll.u32 %v1400_v3, 16  ;;  %v2006_v13 = vld [vmem:[#allocation2 + $0xc0] sm:$0xf] }
 0x189   : > { %v1797_v23 = vshll.u32 %v1416_v6, 16  ;;  %v1780_v16 = vrot.slane %v1778_v20, 4  ;;  %v1783_v59 = vrot.slane %v1781_v51, 5  ;;  %v4127_v2 = vrot.slane %v1816_v47, 9  ;;  %v6094_v57 = vld [vmem:[#allocation2 + $0xc4] sm:$0xf]  ;;  %v6099_v63 = vpop.permute.xlu0 %3308 }
 0x18a   : > { %v1972_v34 = vrot.slane %v1400_v3, 5  ;;  %2904 = vrot.lane.b32.xlu1 %v4207_v26, %s4487_s26  ;;  %v1789_v48 = vrot.slane %v1787_v38, 5  ;;  %v1793_v44 = vrot.slane %v1791_v9, 4  ;;  %v1975_v15 = vrot.slane %v1416_v6, 5  ;;  %v2024_v21 = vld [vmem:[#allocation2 + $0xc8] sm:$0x1]  ;;  %s224_s26 = scalar_lea.vmem %s6301_s5, %s4314_s23 }
 0x18b   : > { %v1784_v7 = vor.u32 %v1783_v59, %v1780_v16  ;;  %v1799_v61 = vrot.slane %v1797_v23, 5  ;;  %3062 = vrot.lane.b32.xlu0 %v4238_v37, %s4489_s28  ;;  %v2363_v52 = vshrl.u32 %v2006_v13, 16  ;;  %v2366_v18 = vshll.u32 %v2006_v13, 16  ;;  %v2424_v23 = vld [vmem:[#allocation2 + $0xc0] sm:$0xe] }
 0x18c   : > { %v1974_v43 = vrot.slane %v1972_v34, 4  ;;  %v1794_v11 = vor.u32 %v1793_v44, %v1789_v48  ;;  %v2376_v50 = vshrl.u32 %v6094_v57, 16  ;;  %v4254_v46 = vcombine.low %v2006_v13, %v6094_v57  ;;  %v2425_v44 = vld [vmem:[#allocation2 + $0xcc] sm:$0xe] }
 0x18d   : > { %v1785_v14 = vrot.slane %v1784_v7, 4  ;;  %v1973_v8 = vsel %vm4654_vm7, %v4127_v2, %v1972_v34  ;;  %v2365_v29 = vrot.slane %v2363_v52, 4  ;;  %v2368_v39 = vrot.slane %v2366_v18, 5  ;;  %v6115_v12 = vpop.permute.xlu0 %2798  ;;  %v6128_v7 = vpop.permute.xlu1 %2720 }
 0x18e   : > { %v1795_v45 = vrot.slane %v1794_v11, 4  ;;  %v1976_v25 = vsel %vm4654_vm7, %v1974_v43, %v1975_v15  ;;  %v2396_v33 = vshll.u32 %v6064_v19, 16  ;;  %v2402_v60 = vrot.slane %v2400_v0, 4 }
 0x18f   : > { %v1790_v47 = vsel %vm4674_vm11, %v1785_v14, %v1789_v48  ;;  %3158 = vrot.lane.b32.xlu0 %v4254_v46, %s4488_s27  ;;  %v2406_v40 = vshll.u32 %v6104_v17, 16  ;;  %v2372_v53 = vshll.u32 %v6094_v57, 16  ;;  %v2369_v51 = vor.u32 %v2368_v39, %v2365_v29 }
 0x190   : > { %v1800_v3 = vsel %vm4674_vm11, %v1795_v45, %v1799_v61  ;;  %v2398_v20 = vrot.slane %v2396_v33, 5  ;;  %v2378_v6 = vrot.slane %v2376_v50, 4  ;;  %v2394_v9 = vrot.slane %v2393_v41, 4 }
 0x191   : > { %v4223_v37 = vcombine.low %v1790_v47, %v1800_v3  ;;  %v2374_v26 = vrot.slane %v2372_v53, 5  ;;  %v2382_v38 = vshll.u32 %v2024_v21, 16  ;;  %v4239_v13 = vcombine.low %v1973_v8, %v1976_v25  ;;  %v2895_v11 = vpop.permute.xlu0 %2894  ;;  %v2801_v47 = vpop.permute.xlu1 %2800 }
 0x192   : > { %v2403_v16 = vor.u32 %v2402_v60, %v2398_v20  ;;  %v2370_v59 = vrot.slane %v2369_v51, 4  ;;  %v3457_v0 = vsel %vm3437_vm4, %v3424_v24, %v6000_v10  ;;  %v2408_v2 = vrot.slane %v2406_v40, 5 }
 0x193   : > { %2984 = vrot.lane.b32.xlu1 %v4223_v37, %s4491_s30  ;;  %v2379_v34 = vor.u32 %v2378_v6, %v2374_v26  ;;  %v2384_v48 = vrot.slane %v2382_v38, 5  ;;  %v2581_v15 = vrot.slane %v6064_v19, 5  ;;  %v4142_v61 = vrot.slane %v2424_v23, 9 }
 0x194   : > { %v2404_v41 = vrot.slane %v2403_v16, 4  ;;  %v2574_v43 = vrot.slane %v6094_v57, 5  ;;  %v3455_v52 = vsel %vm3437_vm4, %v3422_v32, %v5966_v30  ;;  %v2399_v10 = vsel %vm4674_vm11, %v2394_v9, %v2398_v20  ;;  %v4469_v20 = vld [vmem:[#allocation2 + $0x7c] sm:$0xf]  ;;  %v4471_v16 = vld [vmem:[#allocation2 + $0x88] sm:$0xf] }
 0x195   : > { %v2375_v24 = vsel %vm4674_vm11, %v2370_v59, %v2374_v26  ;;  %v2380_v18 = vrot.slane %v2379_v34, 4  ;;  %v2577_v50 = vrot.slane %v2024_v21, 5  ;;  %v4143_v46 = vrot.slane %v2425_v44, 9 }
 0x196   : > { %v2583_v14 = vrot.slane %v2581_v15, 4  ;;  %v2584_v8 = vrot.slane %v6104_v17, 5  ;;  %v2576_v29 = vrot.slane %v2574_v43, 4  ;;  %v2409_v57 = vsel %vm4674_vm11, %v2404_v41, %v2408_v2 }
 0x197   : > { %3064 = vrot.lane.b32.xlu1 %v4239_v13, %s4489_s28  ;;  %v2385_v30 = vsel %vm4674_vm11, %v2380_v18, %v2384_v48  ;;  %v2575_v32 = vsel %vm4654_vm7, %v4142_v61, %v2574_v43  ;;  %v3490_v45 = vsel %vm3470_vm5, %v3457_v0, %v6031_v28  ;;  %v3488_v17 = vsel %vm3470_vm5, %v3455_v52, %v5988_v4  ;;  %v4470_v13 = vld [vmem:[#allocation2 + $0x84] sm:$0xf] }
 0x198   : > { %v4270_v25 = vcombine.low %v2375_v24, %v2385_v30  ;;  %v2578_v39 = vsel %vm4654_vm7, %v2576_v29, %v2577_v50  ;;  %v3523_v33 = vsel %vm3503_vm6, %v3490_v45, %v6057_v5  ;;  %v3521_v36 = vsel %vm3503_vm6, %v3488_v17, %v6019_v56 }
 0x199   : > { %v3556_v21 = vsel %vm3536_vm8, %v3523_v33, %v6092_v62  ;;  %v4286_v28 = vcombine.low %v2575_v32, %v2578_v39  ;;  %v3554_v60 = vsel %vm3536_vm8, %v3521_v36, %v6040_v49  ;;  %v4271_v56 = vcombine.low %v2399_v10, %v2409_v57 }
 0x19a   : > { %3238 = vrot.lane.b32.xlu0 %v4270_v25, %s4492_s6  ;;  %v3589_v40 = vsel %vm3569_vm9, %v3556_v21, %v6099_v63  ;;  %v2975_v4 = vpop.permute.xlu0 %2974  ;;  %v3587_v5 = vsel %vm3569_vm9, %v3554_v60, %v6074_v35  ;;  %v4158_v62 = vcombine.low %v5899_v31, %v5905_v42  ;;  %v2582_v53 = vsel %vm4654_vm7, %v4143_v46, %v2581_v15 }
 0x19b   : > { %3160 = vrot.lane.b32.xlu1 %v4255_v55, %s4488_s27  ;;  %v2585_v49 = vsel %vm4654_vm7, %v2583_v14, %v2584_v8  ;;  %4361 = vmatprep.mubr.msk.bf16.mxu0 %vm3640_vm2, %v3587_v5  ;;  %v4159_v63 = vcombine.low %v5947_v22, %v5956_v58  ;;  %v4154_v51 = vcombine.low %v4468_v1, %v4469_v20  ;;  %v6205_v14 = vld [vmem:[%s6298_s2] ss:$0 sm:$0xff]  ;;  %v4474_v20 = vld [vmem:[#allocation2 + $0x9c] sm:$0xf]  ;;  %vm4495_vm0 = vmmov 0  }
 0x19c   : > { %4362 = vmatmul.mubr.msk.bf16.gmra.mxu0 %vm3640_vm2, %v3589_v40  ;;  %v4287_v54 = vcombine.low %v2582_v53, %v2585_v49  ;;  %v2897_v19 = vpop.permute.xlu1 %2896  ;;  %v4155_v59 = vcombine.low %v4470_v13, %v4471_v16  ;;  %v4472_v53 = vld [vmem:[#allocation2 + $0x90] sm:$0xf]  ;;  %v4473_v49 = vld [vmem:[#allocation2 + $0x94] sm:$0xf]  ;;  %vm3943_vm7 = vcmask 64512  }
 0x19d   : > { %v3355_v37 = vsel %vm3322_vm14, %v4154_v51, %v6110_v27  ;;  %v4475_v51 = vld [vmem:[#allocation2 + $0xa0] sm:$0xf] }
 0x19e   : > { %3318 = vrot.lane.b32.xlu0 %v4286_v28, %s4490_s29  ;;  %v3055_v35 = vpop.permute.xlu0 %3054  ;;  %v3393_v26 = vsel %vm3371_vm15, %v3355_v37, %v6115_v12  ;;  %v3358_v12 = vsel %vm3322_vm14, %v4155_v59, %v6128_v7 }
 0x19f   : > { %3240 = vrot.lane.b32.xlu1 %v4271_v56, %s4492_s6  ;;  %v3426_v38 = vsel %vm3404_vm1, %v3393_v26, %v2895_v11  ;;  %v3395_v15 = vsel %vm3371_vm15, %v3358_v12, %v2801_v47 }
 0x1a0   : > { %v3459_v23 = vsel %vm3437_vm4, %v3426_v38, %v2975_v4  ;;  %v3428_v41 = vsel %vm3404_vm1, %v3395_v15, %v2897_v19 }
 0x1a1   : > { %v3492_v0 = vsel %vm3470_vm5, %v3459_v23, %v3055_v35 }
 0x1a2   : > { %v3151_v3 = vpop.permute.xlu0 %3150 }
 0x1a3   : > { %3320 = vrot.lane.b32.xlu1 %v4287_v54, %s4490_s29  ;;  %v3525_v34 = vsel %vm3503_vm6, %v3492_v0, %v3151_v3  ;;  %v4156_v54 = vcombine.low %v4472_v53, %v4473_v49 }
 0x1a5   : > { %v2977_v55 = vpop.permute.xlu1 %2976 }
 0x1a6   : > { %v3461_v61 = vsel %vm3437_vm4, %v3428_v41, %v2977_v55 }
 0x1a9   : > { %v3057_v6 = vpop.permute.xlu1 %3056 }
 0x1aa   : > { %v3494_v52 = vsel %vm3470_vm5, %v3461_v61, %v3057_v6  ;;  %v4157_v6 = vcombine.low %v4474_v20, %v4475_v51 }
 0x1ac   : > { %v3231_v9 = vpop.permute.xlu0 %3230 }
 0x1ad   : > { %v3153_v2 = vpop.permute.xlu1 %3152  ;;  %v3558_v48 = vsel %vm3536_vm8, %v3525_v34, %v3231_v9 }
 0x1ae   : > { %v3527_v11 = vsel %vm3503_vm6, %v3494_v52, %v3153_v2 }
 0x1b2   : > { %v3311_v44 = vpop.permute.xlu0 %3310 }
 0x1b3   : > { %v3591_v27 = vsel %vm3569_vm9, %v3558_v48, %v3311_v44  ;;  %v3233_v43 = vpop.permute.xlu1 %3232 }
 0x1b4   : > { %4365 = vmatprep.mubr.msk.bf16.mxu1 %vm3640_vm2, %v3591_v27  ;;  %v3560_v10 = vsel %vm3536_vm8, %v3527_v11, %v3233_v43 }
 0x1b7   : > { %v2723_v7 = vpop.permute.xlu1 %2722 }
 0x1b8   : > { %v3361_v35 = vsel %vm3322_vm14, %v4156_v54, %v2723_v7 }
 0x1ba   : > { %v3313_v24 = vpop.permute.xlu0 %3312 }
 0x1bb   : > { %v3593_v18 = vsel %vm3569_vm9, %v3560_v10, %v3313_v24 }
 0x1bc   : > { %4366 = vmatmul.mubr.msk.bf16.vlgmr.msra.gmra.mxu1 %vm3640_vm2, %v3593_v18  ;;  %v2725_v29 = vpop.permute.xlu1 %2724 }
 0x1bd   : > { %v3364_v16 = vsel %vm3322_vm14, %v4157_v6, %v2725_v29 }
 0x1be   : > { %v2803_v50 = vpop.permute.xlu0 %2802 }
 0x1bf   : > { %v3397_v3 = vsel %vm3371_vm15, %v3361_v35, %v2803_v50 }
 0x1c0   : > { %v4347_v46 = vpop.f32.mrf.mxu0  ;;  %v2805_v17 = vpop.permute.xlu1 %2804 }
 0x1c1   : > { %v3723_v36 = vadd.f32 %v4347_v46, %v6205_v14  ;;  %v3399_v2 = vsel %vm3371_vm15, %v3364_v16, %v2805_v17 }
 0x1c2   : > { %v3714_v8 = vpop.f32.mrf.mxu0  ;;  %v2899_v57 = vpop.permute.xlu0 %2898 }
 0x1c3   : > { %v3715_v30 = vadd.f32 %v6205_v14, %v3714_v8  ;;  %v3843_v47 = vmax.f32 %v3723_v36, 0.0  ;;  %v3430_v1 = vsel %vm3404_vm1, %v3397_v3, %v2899_v57 }
 0x1c4   : > { %v4348_v32 = vpop.f32.mrf.mxu0 }
 0x1c5   : > { %v3841_v45 = vmax.f32 %v3715_v30, 0.0  ;;  %v3726_v28 = vadd.f32 %v4348_v32, %v6205_v14 }
 0x1c6   : > { %v3717_v25 = vpop.f32.mrf.mxu0 }
 0x1c7   : > { %v3718_v39 = vadd.f32 %v6205_v14, %v3717_v25  ;;  %3873 = vxpose.xlu0.b32.start [1/16] (narrow) %v3841_v45, 8  ;;  %v3844_v4 = vmax.f32 %v3726_v28, 0.0 }
 0x1c9   : > { %v2979_v33 = vpop.permute.xlu0 %2978  ;;  %v3842_v21 = vmax.f32 %v3718_v39, 0.0 }
 0x1ca   : > { %v3463_v37 = vsel %vm3437_vm4, %v3430_v1, %v2979_v33 }
 0x1cb   : > { %3874 = vxpose.xlu0.b32.cont [2/16] (narrow) %v3842_v21, 8 }
 0x1cd   : > { %v2901_v60 = vpop.permute.xlu1 %2900  ;;  %v3059_v40 = vpop.permute.xlu0 %3058 }
 0x1ce   : > { %v3496_v9 = vsel %vm3470_vm5, %v3463_v37, %v3059_v40  ;;  %v3432_v34 = vsel %vm3404_vm1, %v3399_v2, %v2901_v60 }
 0x1cf   : > { %3875 = vxpose.xlu0.b32.cont [3/16] (narrow) %v3843_v47, 8 }
 0x1d1   : > { %v3155_v5 = vpop.permute.xlu0 %3154 }
 0x1d2   : > { %v3529_v38 = vsel %vm3503_vm6, %v3496_v9, %v3155_v5 }
 0x1d3   : > { %3876 = vxpose.xlu0.b32.cont [4/16] (narrow) %v3844_v4, 8 }
 0x1d6   : > { %v2981_v56 = vpop.permute.xlu1 %2980 }
 0x1d7   : > { %v3465_v44 = vsel %vm3437_vm4, %v3432_v34, %v2981_v56 }
 0x1da   : > { %v3061_v19 = vpop.permute.xlu1 %3060 }
 0x1db   : > { %v3498_v15 = vsel %vm3470_vm5, %v3465_v44, %v3061_v19 }
 0x1dc   : > { %v3235_v55 = vpop.permute.xlu0 %3234 }
 0x1dd   : > { %v3562_v23 = vsel %vm3536_vm8, %v3529_v38, %v3235_v55 }
 0x1de   : > { %v3157_v26 = vpop.permute.xlu1 %3156 }
 0x1df   : > { %v3531_v61 = vsel %vm3503_vm6, %v3498_v15, %v3157_v26 }
 0x1e2   : > { %v3315_v13 = vpop.permute.xlu0 %3314  ;;  %v4351_v0 = vpop.f32.mrf.mxu0 }
 0x1e3   : > { %v3595_v59 = vsel %vm3569_vm9, %v3562_v23, %v3315_v13  ;;  %v3237_v27 = vpop.permute.xlu1 %3236  ;;  %v3739_v7 = vadd.f32 %v4351_v0, %v6205_v14 }
 0x1e4   : > { %4369 = vmatprep.mubr.msk.bf16.mxu1 %vm3640_vm2, %v3595_v59  ;;  %v3730_v48 = vpop.f32.mrf.mxu0  ;;  %v3564_v52 = vsel %vm3536_vm8, %v3531_v61, %v3237_v27 }
 0x1e5   : > { %v3731_v12 = vadd.f32 %v6205_v14, %v3730_v48  ;;  %v3847_v29 = vmax.f32 %v3739_v7, 0.0 }
 0x1e6   : > { %v4352_v41 = vpop.f32.mrf.mxu0 }
 0x1e7   : > { %v3845_v43 = vmax.f32 %v3731_v12, 0.0  ;;  %v2727_v46 = vpop.permute.xlu1 %2726  ;;  %v3742_v57 = vadd.f32 %v4352_v41, %v6205_v14 }
 0x1e8   : > { %v3733_v10 = vpop.f32.mrf.mxu0  ;;  %v3367_v28 = vsel %vm3322_vm14, %v4158_v62, %v2727_v46 }
 0x1e9   : > { %v3317_v11 = vpop.permute.xlu0 %3316  ;;  %v3734_v18 = vadd.f32 %v6205_v14, %v3733_v10  ;;  %3877 = vxpose.xlu0.b32.cont [5/16] (narrow) %v3845_v43, 8  ;;  %v3848_v45 = vmax.f32 %v3742_v57, 0.0 }
 0x1ea   : > { %v3597_v24 = vsel %vm3569_vm9, %v3564_v52, %v3317_v11 }
 0x1eb   : > { %4370 = vmatmul.mubr.msk.bf16.gmra.mxu1 %vm3640_vm2, %v3597_v24  ;;  %v3846_v50 = vmax.f32 %v3734_v18, 0.0  ;;  %v2729_v30 = vpop.permute.xlu1 %2728 }
 0x1ec   : > { %v3370_v49 = vsel %vm3322_vm14, %v4159_v63, %v2729_v30 }
 0x1ed   : > { %v2807_v8 = vpop.permute.xlu0 %2806  ;;  %3878 = vxpose.xlu0.b32.cont [6/16] (narrow) %v3846_v50, 8 }
 0x1ee   : > { %v3401_v60 = vsel %vm3371_vm15, %v3367_v28, %v2807_v8 }
 0x1ef   : > { %v2809_v25 = vpop.permute.xlu1 %2808 }
 0x1f0   : > { %v3403_v31 = vsel %vm3371_vm15, %v3370_v49, %v2809_v25 }
 0x1f1   : > { %3879 = vxpose.xlu0.b32.cont [7/16] (narrow) %v3847_v29, 8  ;;  %v2903_v32 = vpop.permute.xlu0 %2902 }
 0x1f2   : > { %v3434_v40 = vsel %vm3404_vm1, %v3401_v60, %v2903_v32 }
 0x1f5   : > { %3880 = vxpose.xlu0.b32.cont [8/16] (narrow) %v3848_v45, 8 }
 0x1f9   : > { %v2983_v39 = vpop.permute.xlu0 %2982 }
 0x1fa   : > { %v3467_v56 = vsel %vm3437_vm4, %v3434_v40, %v2983_v39 }
 0x1fc   : > { %v2905_v17 = vpop.permute.xlu1 %2904 }
 0x1fd   : > { %v3063_v33 = vpop.permute.xlu0 %3062  ;;  %v3436_v19 = vsel %vm3404_vm1, %v3403_v31, %v2905_v17 }
 0x1fe   : > { %v3500_v53 = vsel %vm3470_vm5, %v3467_v56, %v3063_v33  ;;  %v6318_v33 = vmov 0  }
 0x201   : > { %v3159_v21 = vpop.permute.xlu0 %3158 }
 0x202   : > { %v3533_v54 = vsel %vm3503_vm6, %v3500_v53, %v3159_v21 }
 0x205   : > { %v2985_v36 = vpop.permute.xlu1 %2984 }
 0x206   : > { %v3469_v3 = vsel %vm3437_vm4, %v3436_v19, %v2985_v36 }
 0x209   : > { %v3065_v47 = vpop.permute.xlu1 %3064 }
 0x20a   : > { %v3502_v22 = vsel %vm3470_vm5, %v3469_v3, %v3065_v47 }
 0x20c   : > { %v3239_v4 = vpop.permute.xlu0 %3238 }
 0x20d   : > { %v3161_v5 = vpop.permute.xlu1 %3160  ;;  %v3566_v42 = vsel %vm3536_vm8, %v3533_v54, %v3239_v4 }
 0x20e   : > { %v3535_v58 = vsel %vm3503_vm6, %v3502_v22, %v3161_v5 }
 0x210   : > { %v3319_v62 = vpop.permute.xlu0 %3318 }
 0x211   : > { %v3241_v35 = vpop.permute.xlu1 %3240  ;;  %v3599_v55 = vsel %vm3569_vm9, %v3566_v42, %v3319_v62 }
 0x212   : > { %4373 = vmatprep.mubr.msk.bf16.mxu1 %vm3640_vm2, %v3599_v55  ;;  %v4355_v1 = vpop.f32.mrf.mxu0  ;;  %v3568_v20 = vsel %vm3536_vm8, %v3535_v58, %v3241_v35 }
 0x213   : > { %v3755_v13 = vadd.f32 %v4355_v1, %v6205_v14 }
 0x214   : > { %v3746_v63 = vpop.f32.mrf.mxu0 }
 0x215   : > { %v3321_v51 = vpop.permute.xlu1 %3320  ;;  %v3747_v6 = vadd.f32 %v6205_v14, %v3746_v63  ;;  %v3851_v59 = vmax.f32 %v3755_v13, 0.0 }
 0x216   : > { %v3601_v37 = vsel %vm3569_vm9, %v3568_v20, %v3321_v51  ;;  %v4356_v9 = vpop.f32.mrf.mxu0 }
 0x217   : > { %4374 = vmatmul.mubr.msk.bf16.gmra.mxu1 %vm3640_vm2, %v3601_v37  ;;  %v3849_v26 = vmax.f32 %v3747_v6, 0.0  ;;  %v3758_v0 = vadd.f32 %v4356_v9, %v6205_v14 }
 0x218   : > { %v3749_v38 = vpop.f32.mrf.mxu0 }
 0x219   : > { %v3750_v23 = vadd.f32 %v6205_v14, %v3749_v38  ;;  %3881 = vxpose.xlu0.b32.cont [9/16] (narrow) %v3849_v26, 8  ;;  %v3852_v2 = vmax.f32 %v3758_v0, 0.0 }
 0x21b   : > { %v3850_v16 = vmax.f32 %v3750_v23, 0.0 }
 0x21d   : > { %3882 = vxpose.xlu0.b32.cont [10/16] (narrow) %v3850_v16, 8 }
 0x221   : > { %3883 = vxpose.xlu0.b32.cont [11/16] (narrow) %v3851_v59, 8 }
 0x225   : > { %3884 = vxpose.xlu0.b32.cont [12/16] (narrow) %v3852_v2, 8 }
 0x242   : > { %v4359_v34 = vpop.f32.mrf.mxu0 }
 0x243   : > { %v3771_v61 = vadd.f32 %v4359_v34, %v6205_v14 }
 0x244   : > { %v3762_v48 = vpop.f32.mrf.mxu0 }
 0x245   : > { %v3763_v44 = vadd.f32 %v6205_v14, %v3762_v48  ;;  %v3855_v52 = vmax.f32 %v3771_v61, 0.0  ;;  %v4494_v48 = vmov 0.0  }
 0x246   : > { %v4360_v27 = vpop.f32.mrf.mxu0  ;;  %4377 = vmatprep.subr.mxu1 %v4494_v48  ;;  %4379 = vmatprep.mubr.msk.f32.mxu1 %vm4495_vm0, %v4494_v48 }
 0x247   : > { %v3853_v12 = vmax.f32 %v3763_v44, 0.0  ;;  %v3774_v11 = vadd.f32 %v4360_v27, %v6205_v14 }
 0x248   : > { %v3765_v15 = vpop.f32.mrf.mxu0 }
 0x249   : > { %v3766_v41 = vadd.f32 %v6205_v14, %v3765_v15  ;;  %3885 = vxpose.xlu0.b32.cont [13/16] (narrow) %v3853_v12, 8  ;;  %v3856_v10 = vmax.f32 %v3774_v11, 0.0  ;;  %v3942_v12 = vld [vmem:[%s6300_s4] sm:$0xff] }
 0x24b   : > { %v3854_v43 = vmax.f32 %v3766_v41, 0.0 }
 0x24d   : > { %3886 = vxpose.xlu0.b32.cont [14/16] (narrow) %v3854_v43, 8 }
 0x251   : > { %3887 = vxpose.xlu0.b32.cont [15/16] (narrow) %v3855_v52, 8 }
 0x255   : > { %3888 = vxpose.xlu0.b32.end [16/16] (narrow) %v3856_v10, 8 }
 0x25c   : > { %v4363_v24 = vpop.f32.mrf.mxu0 }
 0x25d   : > { %v3787_v57 = vadd.f32 %v4363_v24, %v6205_v14 }
 0x25e   : > { %v3778_v18 = vpop.f32.mrf.mxu0 }
 0x25f   : > { %v3779_v7 = vadd.f32 %v6205_v14, %v3778_v18  ;;  %v3859_v32 = vmax.f32 %v3787_v57, 0.0 }
 0x260   : > { %v4364_v50 = vpop.f32.mrf.mxu0 }
 0x261   : > { %v3857_v46 = vmax.f32 %v3779_v7, 0.0  ;;  %v3790_v45 = vadd.f32 %v4364_v50, %v6205_v14 }
 0x262   : > { %v3781_v8 = vpop.f32.mrf.mxu0 }
 0x263   : > { %v3782_v29 = vadd.f32 %v6205_v14, %v3781_v8  ;;  %3905 = vxpose.xlu1.b32.start [1/16] (narrow) %v3857_v46, 8  ;;  %v3860_v25 = vmax.f32 %v3790_v45, 0.0 }
 0x265   : > { %v3858_v30 = vmax.f32 %v3782_v29, 0.0 }
 0x267   : > { %3906 = vxpose.xlu1.b32.cont [2/16] (narrow) %v3858_v30, 8 }
 0x26b   : > { %3907 = vxpose.xlu1.b32.cont [3/16] (narrow) %v3859_v32, 8 }
 0x26f   : > { %3908 = vxpose.xlu1.b32.cont [4/16] (narrow) %v3860_v25, 8 }
 0x27c   : > { %v4367_v39 = vpop.f32.mrf.mxu1 }
 0x27d   : > { %v3803_v40 = vadd.f32 %v4367_v39, %v6205_v14 }
 0x27e   : > { %v3794_v17 = vpop.f32.mrf.mxu1  ;;  %4411 = vset.pattern.permute.xlu0 %v6318_v33 }
 0x27f   : > { %v3795_v36 = vadd.f32 %v6205_v14, %v3794_v17  ;;  %v3863_v56 = vmax.f32 %v3803_v40, 0.0 }
 0x280   : > { %v4368_v21 = vpop.f32.mrf.mxu1 }
 0x281   : > { %v3861_v47 = vmax.f32 %v3795_v36, 0.0  ;;  %v3806_v5 = vadd.f32 %v4368_v21, %v6205_v14 }
 0x282   : > { %v3797_v28 = vpop.f32.mrf.mxu1 }
 0x283   : > { %v3798_v60 = vadd.f32 %v6205_v14, %v3797_v28  ;;  %3909 = vxpose.xlu1.b32.cont [5/16] (narrow) %v3861_v47, 8  ;;  %v3864_v53 = vmax.f32 %v3806_v5, 0.0 }
 0x285   : > { %v3862_v4 = vmax.f32 %v3798_v60, 0.0 }
 0x287   : > { %3910 = vxpose.xlu1.b32.cont [6/16] (narrow) %v3862_v4, 8 }
 0x28b   : > { %3911 = vxpose.xlu1.b32.cont [7/16] (narrow) %v3863_v56, 8 }
 0x28f   : > { %3912 = vxpose.xlu1.b32.cont [8/16] (narrow) %v3864_v53, 8 }
 0x295   : > { %v3889_v0 = vpop.trf.xlu0 }
 0x2ab   : > { %v4371_v49 = vpop.f32.mrf.mxu1 }
 0x2ac   : > { %v3819_v55 = vadd.f32 %v4371_v49, %v6205_v14 }
 0x2ad   : > { %v3810_v54 = vpop.f32.mrf.mxu1 }
 0x2ae   : > { %v3811_v31 = vadd.f32 %v6205_v14, %v3810_v54  ;;  %v3867_v1 = vmax.f32 %v3819_v55, 0.0 }
 0x2af   : > { %v4372_v42 = vpop.f32.mrf.mxu1 }
 0x2b0   : > { %v3865_v62 = vmax.f32 %v3811_v31, 0.0  ;;  %v3822_v22 = vadd.f32 %v4372_v42, %v6205_v14 }
 0x2b1   : > { %v3813_v19 = vpop.f32.mrf.mxu1 }
 0x2b2   : > { %v3814_v35 = vadd.f32 %v6205_v14, %v3813_v19  ;;  %3913 = vxpose.xlu1.b32.cont [9/16] (narrow) %v3865_v62, 8  ;;  %v3868_v58 = vmax.f32 %v3822_v22, 0.0 }
 0x2b4   : > { %v3866_v3 = vmax.f32 %v3814_v35, 0.0 }
 0x2b6   : > { %3914 = vxpose.xlu1.b32.cont [10/16] (narrow) %v3866_v3, 8 }
 0x2ba   : > { %3915 = vxpose.xlu1.b32.cont [11/16] (narrow) %v3867_v1, 8 }
 0x2be   : > { %3916 = vxpose.xlu1.b32.cont [12/16] (narrow) %v3868_v58, 8 }
 0x2d7   : > { %v4375_v63 = vpop.f32.mrf.mxu1 }
 0x2d8   : > { %v3835_v38 = vadd.f32 %v4375_v63, %v6205_v14 }
 0x2d9   : > { %v3826_v20 = vpop.f32.mrf.mxu1 }
 0x2da   : > { %v3827_v51 = vadd.f32 %v6205_v14, %v3826_v20  ;;  %v3871_v13 = vmax.f32 %v3835_v38, 0.0 }
 0x2db   : > { %v4376_v6 = vpop.f32.mrf.mxu1 }
 0x2dc   : > { %v3869_v37 = vmax.f32 %v3827_v51, 0.0  ;;  %v3838_v16 = vadd.f32 %v4376_v6, %v6205_v14 }
 0x2dd   : > { %v3829_v9 = vpop.f32.mrf.mxu1 }
 0x2de   : > { %v3830_v26 = vadd.f32 %v6205_v14, %v3829_v9  ;;  %3917 = vxpose.xlu1.b32.cont [13/16] (narrow) %v3869_v37, 8  ;;  %v3872_v59 = vmax.f32 %v3838_v16, 0.0  ;;  %v3941_v14 = vld [vmem:[%s6299_s3] sm:$0xff] }
 0x2e0   : > { %v3870_v23 = vmax.f32 %v3830_v26, 0.0 }
 0x2e2   : > { %3918 = vxpose.xlu1.b32.cont [14/16] (narrow) %v3870_v23, 8 }
 0x2e6   : > { %3919 = vxpose.xlu1.b32.cont [15/16] (narrow) %v3871_v13, 8 }
 0x2ea   : > { %3920 = vxpose.xlu1.b32.end [16/16] (narrow) %v3872_v59, 8 }
 0x308   : > { %4410 = vset.pattern.permute.xlu1 %v6318_v33 }
 0x32a   : > { %v3921_v2 = vpop.trf.xlu1 }
 0x32b   : > { %v3937_v34 = vadd.f32 %v3921_v2, %v3889_v0 }
 0x32d   : > { %3938 = vadd.xlane.f32.xlu0 %v3937_v34 }
 0x3b6   : > { %v3939_v44 = vpop.xlane.xlu0 %3938 }
 0x3b7   : > { %v3940_v27 = vmul.f32 0.00390625, %v3939_v44 }
 0x3b9   : > { %4378 = vmatpush3.msra.mxu1 %v3940_v27 }
 0x3ba   : > { %4380 = vmatmul.mubr.msk.f32.vlgmr.msra.gmra.mxu1 %vm3943_vm7, %v3941_v14 }
 0x47a   : > { %v4013_v15 = vpop.f32.mrf.mxu1 }
 0x47b   : > { %v4014_v41 = vadd.f32 %v4013_v15, %v3942_v12 }
 0x47c   : > { %v4381_v61 = vpop.f32.mrf.mxu1 }
 0x47d   : > { %v4310_v43 = vmul.f32 -1.442695, %v4014_v41 }
 0x47f   : > { %4448 = vpow2.f32 %v4310_v43 }
 0x48c   : > { %v4449_v52 = vpop.eup %4448 }
 0x48d   : > { %v4020_v11 = vadd.f32 1.0, %v4449_v52 }
 0x48f   : > { %4450 = vrcp.f32 %v4020_v11 }
 0x49c   : > { %v4451_v10 = vpop.eup %4450 }
 0x49d   : > { %4025 = vperm.xlu1 %4410, %v4451_v10  }
 0x518   : > { %v4026_v24 = vpop.permute.xlu1 %4025 }
 0x519   : > { %v4028_v18 = vmul.f32 %v4026_v24, %v3889_v0  ;;  %v4029_v7 = vmul.f32 %v4026_v24, %v3921_v2 }
 0x51b   : > { %4030 = vst [vmem:[%s224_s26] sm:$0xff] %v4028_v18  ;;  %4031 = vst [vmem:[%s224_s26 + $0x8] sm:$0xff] %v4029_v7 }
 0x51c PF: > { %s15_s18 = sadd.s32 1, %s4482_s18  }
 0x51d   : > { %p12_p4 = scmp.ge.s32.totalorder %s15_s18, 4  }
 0x51f   :  { %14 = sbr.rel (!%p12_p4) target bundleno = 1 (0x1), region = 72 }

</bundles_post_ra>
